<compile_context>
chip_gen: v7x
topology: tpu7x:2x2x1
jax: 0.10.0
libtpu: 0.0.40
codegen_flags: <defaults>
</compile_context>

<pallas_src>
import functools

import jax
import jax.numpy as jnp
from jax import lax
from jax.experimental import pallas as pl
from jax.experimental.pallas import tpu as pltpu


# ---------------------------------------------------------------------------
# Fused Pallas kernel: direct conv + InstanceNorm2d + ReLU
# ---------------------------------------------------------------------------

def _trans_kernel(*refs, kh, kw, stride, oh, ow, eps):
    """One grid step = one batch image x one output-channel tile.

    refs = (phase_0 .. phase_{s*s-1}, w, out)
      phase_p : (PH_p, PW_p, IC)  bf16  parity sub-grid of the padded input
      w       : (KH*KW, IC, TN)   bf16  per-tap weight slabs
      out     : (OH, OW, TN)      f32
    """
    n_phase = stride * stride
    phases = refs[:n_phase]
    w_ref, o_ref = refs[n_phase], refs[n_phase + 1]
    tn = o_ref.shape[-1]
    m = oh * ow

    # Direct conv: statically-unrolled tap loop, each tap a bf16 MXU matmul
    # with f32 accumulation.  No K grid axis needed (KH*KW*IC is small).
    acc = jnp.zeros((m, tn), jnp.float32)
    for di in range(kh):
        for dj in range(kw):
            ph = phases[(di % stride) * stride + (dj % stride)]
            r0, c0 = di // stride, dj // stride
            patch = ph[r0:r0 + oh, c0:c0 + ow, :]          # (OH, OW, IC) bf16
            a = patch.reshape(m, patch.shape[-1])          # (OH*OW, IC)
            wt = w_ref[di * kw + dj]                       # (IC, TN)
            acc = acc + jnp.dot(a, wt, preferred_element_type=jnp.float32)

    # InstanceNorm2d (affine=False, biased variance, per-sample per-channel
    # stats over the full spatial extent held by this grid step) + ReLU.
    # Conv bias intentionally omitted: exactly cancelled by mean subtraction.
    mean = jnp.mean(acc, axis=0, keepdims=True)
    yc = acc - mean
    var = jnp.mean(yc * yc, axis=0, keepdims=True)
    out = jnp.maximum(yc * lax.rsqrt(var + eps), 0.0)
    o_ref[...] = out.reshape(oh, ow, tn).astype(o_ref.dtype)


def _pick_oc_tile(oc):
    """Output-channel tile: full OC for small widths, else a 128-multiple divisor."""
    if oc <= 256:
        return oc
    for tn in (256, 128):
        if oc % tn == 0:
            return tn
    return oc


def conv_in_relu(x, w, b, *, ksize, stride, pad, eps=1e-5):
    """Fused conv(ksize, stride, pad) + InstanceNorm + ReLU.

    x: NHWC f32, w: PyTorch layout (OC, IC, KH, KW), b: (OC,) (unused: the
    conv bias is a mathematical no-op under InstanceNorm).  Returns NHWC f32.
    """
    del b  # exactly cancelled by the InstanceNorm mean subtraction
    n, h, wdt, ic = x.shape
    oc = w.shape[0]
    oh = (h + 2 * pad - ksize) // stride + 1
    ow = (wdt + 2 * pad - ksize) // stride + 1

    # bf16 activations for the MXU; pad spatially (cheap, +2 rows/cols).
    xb = x.astype(jnp.bfloat16)
    if pad:
        xb = jnp.pad(xb, ((0, 0), (pad, pad), (pad, pad), (0, 0)))

    # Parity-phase decomposition: for stride s, phase (p, q) = xb[:, p::s, q::s, :].
    # Total bytes == input bytes (no im2col replication); every in-kernel tap
    # slice becomes a contiguous window of one phase.
    if stride == 1:
        phases = [xb]
    else:
        phases = [xb[:, p::stride, q::stride, :]
                  for p in range(stride) for q in range(stride)]

    # Weight (OC, IC, KH, KW) -> (KH*KW, IC, OC) bf16.
    w2 = jnp.transpose(w, (2, 3, 1, 0)).reshape(ksize * ksize, ic, oc)
    w2 = w2.astype(jnp.bfloat16)

    tn = _pick_oc_tile(oc)
    grid = (n, oc // tn)

    phase_specs = [
        pl.BlockSpec((None,) + ph.shape[1:], lambda i, j: (i, 0, 0, 0))
        for ph in phases
    ]
    in_specs = phase_specs + [
        pl.BlockSpec((ksize * ksize, ic, tn), lambda i, j: (0, 0, j)),
    ]
    out_spec = pl.BlockSpec((None, oh, ow, tn), lambda i, j: (i, 0, 0, j))

    kernel = functools.partial(_trans_kernel, kh=ksize, kw=ksize, stride=stride,
                               oh=oh, ow=ow, eps=eps)

    # Advisory cost hint for XLA's scheduler around the custom call.
    cost = pl.CostEstimate(
        flops=2 * n * oh * ow * ksize * ksize * ic * oc + 6 * n * oh * ow * oc,
        transcendentals=n * oc,
        bytes_accessed=(sum(int(p.size) for p in phases) * 2
                        + ksize * ksize * ic * oc * 2
                        + n * oh * ow * oc * 4),
    )

    # TODO(synk): for very large spatial extents, add a spatial tile axis with a
    # two-pass (stats then normalize) IN; full-image-per-step is fine for the
    # feature-map sizes this block sees.
    return pl.pallas_call(
        kernel,
        out_shape=jax.ShapeDtypeStruct((n, oh, ow, oc), jnp.float32),
        grid=grid,
        in_specs=in_specs,
        out_specs=out_spec,
        compiler_params=pltpu.CompilerParams(
            dimension_semantics=("parallel", "parallel"),
            # explicit scoped-VMEM budget: safe on v5e/v6e (128 MiB) and well
            # under the v7x 64 MiB physical VMEM.
            vmem_limit_bytes=32 * 1024 * 1024,
        ),
        cost_estimate=cost,
    )(*phases, w2)


# ---------------------------------------------------------------------------
# Bilinear upsample (UpsamplingBilinear2d == align_corners=True)
# ---------------------------------------------------------------------------

def _bilinear_resize(x, oh, ow, align_corners=True):
    # TODO(synk): gather + blend kept in plain JAX/XLA glue (memory-bound data
    # movement with static weights; a Pallas version would need lane-dim
    # relayouts with no MXU win at these sizes).  Separable form: 4 gathers +
    # 2 blends instead of 8 chained gathers.
    n, h, w, c = x.shape

    def coords(osz, isz):
        if align_corners:
            s = (jnp.arange(osz, dtype=jnp.float32) * ((isz - 1) / (osz - 1))
                 if osz > 1 else jnp.zeros((osz,), jnp.float32))
        else:
            s = (jnp.arange(osz, dtype=jnp.float32) + 0.5) * (isz / osz) - 0.5
            s = jnp.clip(s, 0.0, isz - 1)
        i0 = jnp.clip(jnp.floor(s).astype(jnp.int32), 0, isz - 1)
        i1 = jnp.minimum(i0 + 1, isz - 1)
        return i0, i1, s - i0.astype(jnp.float32)

    y0, y1, wy = coords(oh, h)
    x0, x1, wx = coords(ow, w)
    wy = wy[None, :, None, None]
    wx = wx[None, None, :, None]
    rows = x[:, y0] * (1.0 - wy) + x[:, y1] * wy          # (N, oh, W, C)
    return rows[:, :, x0] * (1.0 - wx) + rows[:, :, x1] * wx


# ---------------------------------------------------------------------------
# Trans module: params + forward (NCHW at the API boundary)
# ---------------------------------------------------------------------------

def make_trans_params(key, in_planes, planes, mod):
    if mod in ("same", "down"):
        ksize = 3
    elif mod == "up":
        ksize = 1
    else:
        raise ValueError("Wrong mod")
    k_w, k_b = jax.random.split(key)
    w = 0.05 * jax.random.normal(k_w, (planes, in_planes, ksize, ksize), jnp.float32)
    b = 0.05 * jax.random.normal(k_b, (planes,), jnp.float32)
    return {"mod": mod, "w": w, "b": b}


def trans_forward(params, x_nchw):
    mod = params["mod"]
    x = jnp.transpose(x_nchw, (0, 2, 3, 1)).astype(jnp.float32)   # NCHW -> NHWC
    if mod == "same":
        y = conv_in_relu(x, params["w"], params["b"], ksize=3, stride=1, pad=1)
    elif mod == "up":
        y = conv_in_relu(x, params["w"], params["b"], ksize=1, stride=1, pad=0)
        _, oh, ow, _ = y.shape
        y = _bilinear_resize(y, 2 * oh, 2 * ow, align_corners=True)
    elif mod == "down":
        y = conv_in_relu(x, params["w"], params["b"], ksize=3, stride=2, pad=1)
    else:
        raise ValueError("Wrong mod")
    return jnp.transpose(y, (0, 3, 1, 2))                          # NHWC -> NCHW


# ---------------------------------------------------------------------------
# Pure-JAX reference (for correctness check only; includes the conv bias to
# demonstrate it is cancelled by InstanceNorm)
# ---------------------------------------------------------------------------

def _trans_reference(params, x_nchw):
    mod, w, b = params["mod"], params["w"], params["b"]
    if mod == "same":
        stride, pad = 1, 1
    elif mod == "down":
        stride, pad = 2, 1
    else:
        stride, pad = 1, 0
    y = lax.conv_general_dilated(x_nchw, w, (stride, stride),
                                 [(pad, pad), (pad, pad)],
                                 dimension_numbers=("NCHW", "OIHW", "NCHW"))
    y = y + b[None, :, None, None]
    mean = jnp.mean(y, axis=(2, 3), keepdims=True)
    var = jnp.mean((y - mean) ** 2, axis=(2, 3), keepdims=True)
    y = jnp.maximum((y - mean) * lax.rsqrt(var + 1e-5), 0.0)
    if mod == "up":
        yh = jnp.transpose(y, (0, 2, 3, 1))
        yh = _bilinear_resize(yh, 2 * yh.shape[1], 2 * yh.shape[2],
                              align_corners=True)
        y = jnp.transpose(yh, (0, 3, 1, 2))
    return y


if __name__ == "__main__":
    root = jax.random.PRNGKey(0)
    k_x, k_same, k_up, k_down = jax.random.split(root, 4)

    N, in_planes, H, W = 2, 16, 16, 16
    planes = 32
    x = jax.random.normal(k_x, (N, in_planes, H, W), jnp.float32)   # NCHW

    expected = {"same": (N, planes, H, W),
                "up":   (N, planes, 2 * H, 2 * W),
                "down": (N, planes, H // 2, W // 2)}

    for mod, key in (("same", k_same), ("up", k_up), ("down", k_down)):
        params = make_trans_params(key, in_planes, planes, mod)
        y = jax.block_until_ready(trans_forward(params, x))
        assert y.shape == expected[mod], (mod, y.shape)
        assert bool(jnp.all(jnp.isfinite(y))), mod
        y_ref = _trans_reference(params, x)
        err = float(jnp.max(jnp.abs(y - y_ref)))
        assert err < 5e-2, (mod, err)   # bf16 MXU inputs, f32 accumulation

    print("KERNEL_OK")
</pallas_src>

<mosaic_0001>
module attributes {stable_mosaic.version = 11 : i64} {
  func.func @_trans_kernel(%arg0: i32, %arg1: i32, %arg2: memref<1x18x18x16xbf16, #tpu.memory_space<vmem>>, %arg3: memref<9x16x32xbf16, #tpu.memory_space<vmem>>, %arg4: memref<1x16x16x32xf32, #tpu.memory_space<vmem>>) attributes {dimension_semantics = [#tpu.dimension_semantics<parallel>, #tpu.dimension_semantics<parallel>], iteration_bounds = array<i64: 2, 1>, scalar_prefetch = 0 : i64, scratch_operands = 0 : i64, tpu.core_type = #tpu.core_type<tc>, window_params = [{transform_indices = @transform_0, window_bounds = array<i64: 1, 18, 18, 16>}, {transform_indices = @transform_1, window_bounds = array<i64: 9, 16, 32>}, {transform_indices = @transform_2, window_bounds = array<i64: 1, 16, 16, 32>}]} {
    %cst = arith.constant 0.000000e+00 : f32
    %0 = vector.broadcast %cst : f32 to vector<256x32xf32>
    %c0 = arith.constant 0 : index
    %c0_0 = arith.constant 0 : index
    %c0_1 = arith.constant 0 : index
    %c0_2 = arith.constant 0 : index
    %1 = vector.load %arg2[%c0, %c0_0, %c0_1, %c0_2] : memref<1x18x18x16xbf16, #tpu.memory_space<vmem>>, vector<1x16x16x16xbf16>
    %2 = vector.shape_cast %1 : vector<1x16x16x16xbf16> to vector<16x16x16xbf16>
    %3 = vector.shape_cast %2 : vector<16x16x16xbf16> to vector<256x16xbf16>
    %c0_3 = arith.constant 0 : index
    %c0_4 = arith.constant 0 : index
    %c0_5 = arith.constant 0 : index
    %4 = vector.load %arg3[%c0_3, %c0_4, %c0_5] : memref<9x16x32xbf16, #tpu.memory_space<vmem>>, vector<1x16x32xbf16>
    %5 = vector.shape_cast %4 : vector<1x16x32xbf16> to vector<16x32xbf16>
    %cst_6 = arith.constant dense<0.000000e+00> : vector<256x32xf32>
    %6 = tpu.matmul %3, %5, %cst_6 {dimension_numbers = #tpu.dot_dimension_numbers<[1], [0], [0], [1], [0, 0, 1, 1], [], []>} : vector<256x16xbf16>, vector<16x32xbf16>, vector<256x32xf32> -> vector<256x32xf32>
    %7 = arith.addf %0, %6 : vector<256x32xf32>
    %c0_7 = arith.constant 0 : index
    %c0_8 = arith.constant 0 : index
    %c1 = arith.constant 1 : index
    %c0_9 = arith.constant 0 : index
    %8 = vector.load %arg2[%c0_7, %c0_8, %c1, %c0_9] : memref<1x18x18x16xbf16, #tpu.memory_space<vmem>>, vector<1x16x16x16xbf16>
    %9 = vector.shape_cast %8 : vector<1x16x16x16xbf16> to vector<16x16x16xbf16>
    %10 = vector.shape_cast %9 : vector<16x16x16xbf16> to vector<256x16xbf16>
    %c1_10 = arith.constant 1 : index
    %c0_11 = arith.constant 0 : index
    %c0_12 = arith.constant 0 : index
    %11 = vector.load %arg3[%c1_10, %c0_11, %c0_12] : memref<9x16x32xbf16, #tpu.memory_space<vmem>>, vector<1x16x32xbf16>
    %12 = vector.shape_cast %11 : vector<1x16x32xbf16> to vector<16x32xbf16>
    %cst_13 = arith.constant dense<0.000000e+00> : vector<256x32xf32>
    %13 = tpu.matmul %10, %12, %cst_13 {dimension_numbers = #tpu.dot_dimension_numbers<[1], [0], [0], [1], [0, 0, 1, 1], [], []>} : vector<256x16xbf16>, vector<16x32xbf16>, vector<256x32xf32> -> vector<256x32xf32>
    %14 = arith.addf %7, %13 : vector<256x32xf32>
    %c0_14 = arith.constant 0 : index
    %c0_15 = arith.constant 0 : index
    %c2 = arith.constant 2 : index
    %c0_16 = arith.constant 0 : index
    %15 = vector.load %arg2[%c0_14, %c0_15, %c2, %c0_16] : memref<1x18x18x16xbf16, #tpu.memory_space<vmem>>, vector<1x16x16x16xbf16>
    %16 = vector.shape_cast %15 : vector<1x16x16x16xbf16> to vector<16x16x16xbf16>
    %17 = vector.shape_cast %16 : vector<16x16x16xbf16> to vector<256x16xbf16>
    %c2_17 = arith.constant 2 : index
    %c0_18 = arith.constant 0 : index
    %c0_19 = arith.constant 0 : index
    %18 = vector.load %arg3[%c2_17, %c0_18, %c0_19] : memref<9x16x32xbf16, #tpu.memory_space<vmem>>, vector<1x16x32xbf16>
    %19 = vector.shape_cast %18 : vector<1x16x32xbf16> to vector<16x32xbf16>
    %cst_20 = arith.constant dense<0.000000e+00> : vector<256x32xf32>
    %20 = tpu.matmul %17, %19, %cst_20 {dimension_numbers = #tpu.dot_dimension_numbers<[1], [0], [0], [1], [0, 0, 1, 1], [], []>} : vector<256x16xbf16>, vector<16x32xbf16>, vector<256x32xf32> -> vector<256x32xf32>
    %21 = arith.addf %14, %20 : vector<256x32xf32>
    %c0_21 = arith.constant 0 : index
    %c1_22 = arith.constant 1 : index
    %c0_23 = arith.constant 0 : index
    %c0_24 = arith.constant 0 : index
    %22 = vector.load %arg2[%c0_21, %c1_22, %c0_23, %c0_24] : memref<1x18x18x16xbf16, #tpu.memory_space<vmem>>, vector<1x16x16x16xbf16>
    %23 = vector.shape_cast %22 : vector<1x16x16x16xbf16> to vector<16x16x16xbf16>
    %24 = vector.shape_cast %23 : vector<16x16x16xbf16> to vector<256x16xbf16>
    %c3 = arith.constant 3 : index
    %c0_25 = arith.constant 0 : index
    %c0_26 = arith.constant 0 : index
    %25 = vector.load %arg3[%c3, %c0_25, %c0_26] : memref<9x16x32xbf16, #tpu.memory_space<vmem>>, vector<1x16x32xbf16>
    %26 = vector.shape_cast %25 : vector<1x16x32xbf16> to vector<16x32xbf16>
    %cst_27 = arith.constant dense<0.000000e+00> : vector<256x32xf32>
    %27 = tpu.matmul %24, %26, %cst_27 {dimension_numbers = #tpu.dot_dimension_numbers<[1], [0], [0], [1], [0, 0, 1, 1], [], []>} : vector<256x16xbf16>, vector<16x32xbf16>, vector<256x32xf32> -> vector<256x32xf32>
    %28 = arith.addf %21, %27 : vector<256x32xf32>
    %c0_28 = arith.constant 0 : index
    %c1_29 = arith.constant 1 : index
    %c1_30 = arith.constant 1 : index
    %c0_31 = arith.constant 0 : index
    %29 = vector.load %arg2[%c0_28, %c1_29, %c1_30, %c0_31] : memref<1x18x18x16xbf16, #tpu.memory_space<vmem>>, vector<1x16x16x16xbf16>
    %30 = vector.shape_cast %29 : vector<1x16x16x16xbf16> to vector<16x16x16xbf16>
    %31 = vector.shape_cast %30 : vector<16x16x16xbf16> to vector<256x16xbf16>
    %c4 = arith.constant 4 : index
    %c0_32 = arith.constant 0 : index
    %c0_33 = arith.constant 0 : index
    %32 = vector.load %arg3[%c4, %c0_32, %c0_33] : memref<9x16x32xbf16, #tpu.memory_space<vmem>>, vector<1x16x32xbf16>
    %33 = vector.shape_cast %32 : vector<1x16x32xbf16> to vector<16x32xbf16>
    %cst_34 = arith.constant dense<0.000000e+00> : vector<256x32xf32>
    %34 = tpu.matmul %31, %33, %cst_34 {dimension_numbers = #tpu.dot_dimension_numbers<[1], [0], [0], [1], [0, 0, 1, 1], [], []>} : vector<256x16xbf16>, vector<16x32xbf16>, vector<256x32xf32> -> vector<256x32xf32>
    %35 = arith.addf %28, %34 : vector<256x32xf32>
    %c0_35 = arith.constant 0 : index
    %c1_36 = arith.constant 1 : index
    %c2_37 = arith.constant 2 : index
    %c0_38 = arith.constant 0 : index
    %36 = vector.load %arg2[%c0_35, %c1_36, %c2_37, %c0_38] : memref<1x18x18x16xbf16, #tpu.memory_space<vmem>>, vector<1x16x16x16xbf16>
    %37 = vector.shape_cast %36 : vector<1x16x16x16xbf16> to vector<16x16x16xbf16>
    %38 = vector.shape_cast %37 : vector<16x16x16xbf16> to vector<256x16xbf16>
    %c5 = arith.constant 5 : index
    %c0_39 = arith.constant 0 : index
    %c0_40 = arith.constant 0 : index
    %39 = vector.load %arg3[%c5, %c0_39, %c0_40] : memref<9x16x32xbf16, #tpu.memory_space<vmem>>, vector<1x16x32xbf16>
    %40 = vector.shape_cast %39 : vector<1x16x32xbf16> to vector<16x32xbf16>
    %cst_41 = arith.constant dense<0.000000e+00> : vector<256x32xf32>
    %41 = tpu.matmul %38, %40, %cst_41 {dimension_numbers = #tpu.dot_dimension_numbers<[1], [0], [0], [1], [0, 0, 1, 1], [], []>} : vector<256x16xbf16>, vector<16x32xbf16>, vector<256x32xf32> -> vector<256x32xf32>
    %42 = arith.addf %35, %41 : vector<256x32xf32>
    %c0_42 = arith.constant 0 : index
    %c2_43 = arith.constant 2 : index
    %c0_44 = arith.constant 0 : index
    %c0_45 = arith.constant 0 : index
    %43 = vector.load %arg2[%c0_42, %c2_43, %c0_44, %c0_45] : memref<1x18x18x16xbf16, #tpu.memory_space<vmem>>, vector<1x16x16x16xbf16>
    %44 = vector.shape_cast %43 : vector<1x16x16x16xbf16> to vector<16x16x16xbf16>
    %45 = vector.shape_cast %44 : vector<16x16x16xbf16> to vector<256x16xbf16>
    %c6 = arith.constant 6 : index
    %c0_46 = arith.constant 0 : index
    %c0_47 = arith.constant 0 : index
    %46 = vector.load %arg3[%c6, %c0_46, %c0_47] : memref<9x16x32xbf16, #tpu.memory_space<vmem>>, vector<1x16x32xbf16>
    %47 = vector.shape_cast %46 : vector<1x16x32xbf16> to vector<16x32xbf16>
    %cst_48 = arith.constant dense<0.000000e+00> : vector<256x32xf32>
    %48 = tpu.matmul %45, %47, %cst_48 {dimension_numbers = #tpu.dot_dimension_numbers<[1], [0], [0], [1], [0, 0, 1, 1], [], []>} : vector<256x16xbf16>, vector<16x32xbf16>, vector<256x32xf32> -> vector<256x32xf32>
    %49 = arith.addf %42, %48 : vector<256x32xf32>
    %c0_49 = arith.constant 0 : index
    %c2_50 = arith.constant 2 : index
    %c1_51 = arith.constant 1 : index
    %c0_52 = arith.constant 0 : index
    %50 = vector.load %arg2[%c0_49, %c2_50, %c1_51, %c0_52] : memref<1x18x18x16xbf16, #tpu.memory_space<vmem>>, vector<1x16x16x16xbf16>
    %51 = vector.shape_cast %50 : vector<1x16x16x16xbf16> to vector<16x16x16xbf16>
    %52 = vector.shape_cast %51 : vector<16x16x16xbf16> to vector<256x16xbf16>
    %c7 = arith.constant 7 : index
    %c0_53 = arith.constant 0 : index
    %c0_54 = arith.constant 0 : index
    %53 = vector.load %arg3[%c7, %c0_53, %c0_54] : memref<9x16x32xbf16, #tpu.memory_space<vmem>>, vector<1x16x32xbf16>
    %54 = vector.shape_cast %53 : vector<1x16x32xbf16> to vector<16x32xbf16>
    %cst_55 = arith.constant dense<0.000000e+00> : vector<256x32xf32>
    %55 = tpu.matmul %52, %54, %cst_55 {dimension_numbers = #tpu.dot_dimension_numbers<[1], [0], [0], [1], [0, 0, 1, 1], [], []>} : vector<256x16xbf16>, vector<16x32xbf16>, vector<256x32xf32> -> vector<256x32xf32>
    %56 = arith.addf %49, %55 : vector<256x32xf32>
    %c0_56 = arith.constant 0 : index
    %c2_57 = arith.constant 2 : index
    %c2_58 = arith.constant 2 : index
    %c0_59 = arith.constant 0 : index
    %57 = vector.load %arg2[%c0_56, %c2_57, %c2_58, %c0_59] : memref<1x18x18x16xbf16, #tpu.memory_space<vmem>>, vector<1x16x16x16xbf16>
    %58 = vector.shape_cast %57 : vector<1x16x16x16xbf16> to vector<16x16x16xbf16>
    %59 = vector.shape_cast %58 : vector<16x16x16xbf16> to vector<256x16xbf16>
    %c8 = arith.constant 8 : index
    %c0_60 = arith.constant 0 : index
    %c0_61 = arith.constant 0 : index
    %60 = vector.load %arg3[%c8, %c0_60, %c0_61] : memref<9x16x32xbf16, #tpu.memory_space<vmem>>, vector<1x16x32xbf16>
    %61 = vector.shape_cast %60 : vector<1x16x32xbf16> to vector<16x32xbf16>
    %cst_62 = arith.constant dense<0.000000e+00> : vector<256x32xf32>
    %62 = tpu.matmul %59, %61, %cst_62 {dimension_numbers = #tpu.dot_dimension_numbers<[1], [0], [0], [1], [0, 0, 1, 1], [], []>} : vector<256x16xbf16>, vector<16x32xbf16>, vector<256x32xf32> -> vector<256x32xf32>
    %63 = arith.addf %56, %62 : vector<256x32xf32>
    %cst_63 = arith.constant dense<0.000000e+00> : vector<32xf32>
    %64 = vector.multi_reduction <add>, %63, %cst_63 [0] : vector<256x32xf32> to vector<32xf32>
    %65 = vector.shape_cast %64 : vector<32xf32> to vector<1x32xf32>
    %cst_64 = arith.constant 2.560000e+02 : f32
    %66 = vector.broadcast %cst_64 : f32 to vector<1x32xf32>
    %67 = arith.divf %65, %66 : vector<1x32xf32>
    %68 = vector.broadcast %67 : vector<1x32xf32> to vector<256x32xf32>
    %69 = arith.subf %63, %68 : vector<256x32xf32>
    %70 = arith.mulf %69, %69 : vector<256x32xf32>
    %cst_65 = arith.constant dense<0.000000e+00> : vector<32xf32>
    %71 = vector.multi_reduction <add>, %70, %cst_65 [0] : vector<256x32xf32> to vector<32xf32>
    %72 = vector.shape_cast %71 : vector<32xf32> to vector<1x32xf32>
    %cst_66 = arith.constant 2.560000e+02 : f32
    %73 = vector.broadcast %cst_66 : f32 to vector<1x32xf32>
    %74 = arith.divf %72, %73 : vector<1x32xf32>
    %cst_67 = arith.constant 9.99999974E-6 : f32
    %75 = vector.broadcast %cst_67 : f32 to vector<1x32xf32>
    %76 = arith.addf %74, %75 : vector<1x32xf32>
    %77 = math.rsqrt %76 : vector<1x32xf32>
    %78 = vector.broadcast %77 : vector<1x32xf32> to vector<256x32xf32>
    %79 = arith.mulf %69, %78 : vector<256x32xf32>
    %cst_68 = arith.constant 0.000000e+00 : f32
    %80 = vector.broadcast %cst_68 : f32 to vector<256x32xf32>
    %81 = arith.maximumf %79, %80 : vector<256x32xf32>
    %82 = vector.shape_cast %81 : vector<256x32xf32> to vector<16x16x32xf32>
    %c0_69 = arith.constant 0 : index
    %c0_70 = arith.constant 0 : index
    %c0_71 = arith.constant 0 : index
    %c0_72 = arith.constant 0 : index
    %83 = vector.load %arg4[%c0_69, %c0_70, %c0_71, %c0_72] : memref<1x16x16x32xf32, #tpu.memory_space<vmem>>, vector<1x16x16x32xf32>
    %84 = vector.shape_cast %83 : vector<1x16x16x32xf32> to vector<16x16x32xf32>
    %85 = vector.shape_cast %82 : vector<16x16x32xf32> to vector<1x16x16x32xf32>
    tpu.vector_store %arg4[%c0_69, %c0_70, %c0_71, %c0_72], %85 {strides = array<i32>} : memref<1x16x16x32xf32, #tpu.memory_space<vmem>>, vector<1x16x16x32xf32>,
    return
  }
  func.func @transform_0(%arg0: i32, %arg1: i32) -> (i32, i32, i32, i32) {
    %c0_i32 = arith.constant 0 : i32
    %c0_i32_0 = arith.constant 0 : i32
    %c0_i32_1 = arith.constant 0 : i32
    %c0_i32_2 = arith.constant 0 : i32
    return %arg0, %c0_i32, %c0_i32_0, %c0_i32_1 : i32, i32, i32, i32
  }
  func.func @transform_1(%arg0: i32, %arg1: i32) -> (i32, i32, i32) {
    %c0_i32 = arith.constant 0 : i32
    %c0_i32_0 = arith.constant 0 : i32
    %c0_i32_1 = arith.constant 0 : i32
    return %c0_i32, %c0_i32_0, %arg1 : i32, i32, i32
  }
  func.func @transform_2(%arg0: i32, %arg1: i32) -> (i32, i32, i32, i32) {
    %c0_i32 = arith.constant 0 : i32
    %c0_i32_0 = arith.constant 0 : i32
    %c0_i32_1 = arith.constant 0 : i32
    return %arg0, %c0_i32, %c0_i32_0, %arg1 : i32, i32, i32, i32
  }
}

</mosaic_0001>

<bundles_post_ra>
// kernel: tpu_custom_call.1
= control target key start
LH: loop header
LB: loop body
LE: loop exit
PB: predicated region body
PF: predicated region fallthrough
CT: control target
= control target key end

     0   :  { %7 = vsyncpa [#allocation3], 0  ;;  %s8950_s0 = inlined_call_operand.vmem [shape: bf16[2,18,18,16], index: 0, kind: input, shape index: {}]   ;;  %s8951_s1 = inlined_call_operand.vmem [shape: bf16[9,16,32], index: 1, kind: input, shape index: {}]   ;;  %s8952_s2 = inlined_call_operand.hbm [shape: f32[2,16,16,32], index: 2, kind: output, shape index: {}]  }
   0x1   :  { %9 = vsyncpa [#allocation3 + $0x1], 0  ;;  %s6732_s9 = smov 0   ;;  %s6734_s10 = smov 0  }
   0x2   :  { %s6736_s11 = smov 0   ;;  %s6738_s12 = smov 0  }
   0x3   :  { %s6740_s13 = smov 0   ;;  %s6742_s14 = smov 0  }
   0x4 LB: > { %s5174_s15 = sadd.s32 4294967295, %s6712_s14   ;;  %s5175_s16 = sadd.s32 4294967294, %s6712_s14   ;;  %s6712_s14 = sphi %s6742_s14, %s15_s14   ;;  %s6708_s13 = sphi %s6740_s13, %s9023_s13   ;;  %s6704_s12 = sphi %s6738_s12, %s9022_s12   ;;  %s6700_s11 = sphi %s6736_s11, %s9021_s11   ;;  %s6696_s10 = sphi %s6734_s10, %s9020_s10   ;;  %s6692_s9 = sphi %s6732_s9, %s9019_s9  }
   0x5   : > { %s27_s17 = sadd.s32 1, %s6708_s13  ;;  %s88_s18 = sadd.s32 1, %s6700_s11 }
   0x6   : > { %p29_p0 = scmp.ge.s32.totalorder %s27_s17, 2  ;;  %p98_p1 = scmp.ne.s32.totalorder %s6700_s11, %s6696_s10 }
   0x7   : > { %p99_p2 = scmp.eq.s32.totalorder %s5174_s15, 1  ;;  %p104_p3 = scmp.ne.s32.totalorder %s6696_s10, %s6692_s9 }
   0x8   : > { %s9025_s17 = smov (%p29_p0, %s27_s17), 0  ;;  %p105_p5 = scmp.eq.s32.totalorder %s5175_s16, 1 }
   0x9   : > { %p6772_p4 = por %p99_p2, %p98_p1  ;;  %s83_s20 = ssub.s32 %s6708_s13, %s9025_s17 }
   0xa   : > { %p5179_p6 = scmp.ge.s32.totalorder %s6712_s14, 1  ;;  %p86_p7 = scmp.eq.s32.totalorder %s83_s20, 0 }
   0xb   : > { %p6779_p8 = por %p105_p5, %p104_p3  ;;  %p138_p9 = scmp.lt.s32.totalorder %s6712_s14, 3 }
   0xc   : > { %s6785_s22 = scalar_select %p86_p7, %s6700_s11, %s88_s18  }
   0xd   : > { %p139_p10 = pnand %p5179_p6, %p138_p9 }
   0xf   : > { %142 = sbr.rel (%p139_p10) target bundleno = 752 (0x2f0), region = 28 }
  0x16   : > { %v6516_v0 = vld [vmem:[%s8951_s1 + $0x8] sm:$0xff]   ;;  %p164_p11 = scmp.lt.s32.totalorder %s6704_s12, 1  ;;  %v6517_v1 = vld [vmem:[%s8951_s1 + $0x20] sm:$0xff]   ;;  %vm224_vm0 = vsmask.f32 3328  ;;  %vm668_vm3 = vcmask 130048  }
  0x17   : > { %5894 = vmatprep.subr.bf16.mxu1 %v6516_v0  ;;  %v6798_v2 = vld [vmem:[%s8951_s1] sm:$0xff]   ;;  %6030 = vmatprep.subr.bf16.mxu0 %v6517_v1  ;;  %v6804_v3 = vld [vmem:[%s8951_s1 + $0x28] sm:$0xff]   ;;  %vm225_vm1 = vsmask.f32 7440  ;;  %vm1221_vm4 = vcmask 1042432   ;;  %vm1222_vm5 = vcmask 1046532  }
  0x18   : > { %s165_s27 = scalar_select %p164_p11, %s6704_s12, 1  ;;  %5895 = vmatpush3.bf16.msra.mxu1 %v6516_v0  ;;  %6031 = vmatpush3.bf16.msra.mxu0 %v6517_v1  ;;  %vm6828_vm2 = vmor %vm224_vm0, %vm225_vm1  ;;  %vm4768_vm7 = vcmask 261120  }
  0x19   : > { %5928 = vmatprep.subr.bf16.mxu1 %v6798_v2  ;;  %6064 = vmatprep.subr.bf16.mxu0 %v6804_v3  ;;  %vm7050_vm6 = vmor %vm1221_vm4, %vm1222_vm5  ;;  %s161_s4 = sand.u32 1, %s6696_s10   ;;  %s6714_s23 = smov [#allocation2]  }
  0x1a   : > { %s6458_s30 = smul.u32 216, %s165_s27  ;;  %s5180_s5 = sshll.u32 %s161_s4, 8 }
  0x1b   : > { %s8774_s6 = scalar_lea.vmem [#allocation2], %s5180_s5  ;;  %s8904_s18 = scalar_lea.sflag [#allocation3], %s161_s4 }
  0x1c   : > { %s6809_s7 = scalar_lea.vmem %s8950_s0, %s6458_s30  ;;  %s5087_s8 = sshll.u32 %s8774_s6, 4  ;;  %s8872_s8 = int_to_ptr.vmem [resolvable:$true] %s5087_s8 }
  0x1d   : > { %v174_v4 = vld [vmem:[%s6809_s7] sm:$0xf]  ;;  %v175_v5 = vld [vmem:[%s6809_s7 + $0x4] sm:$0xf]  ;;  %v208_v6 = vld [vmem:[%s6809_s7 + $0x8] sm:$0x1] }
  0x1e   : > { %v228_v7 = vshrl.u32 %v174_v4, 16  ;;  %v231_v8 = vshll.u32 %v174_v4, 16  ;;  %v237_v9 = vshll.u32 %v175_v5, 16  ;;  %v241_v10 = vshrl.u32 %v175_v5, 16  ;;  %v5368_v11 = vld [vmem:[%s6809_s7 + $0xc] sm:$0xf] }
  0x1f   : > { %v247_v12 = vshll.u32 %v208_v6, 16  ;;  %v6817_v13 = vld [vmem:[%s6809_s7 + $0x10] sm:$0xf]  ;;  %v6820_v14 = vld [vmem:[%s6809_s7 + $0x14] sm:$0x1]  ;;  %v2046_v20 = vshrl.u32 %v5368_v11, 16 }
  0x20   : > { %v230_v15 = vrot.slane %v228_v7, 4  ;;  %v233_v16 = vrot.slane %v231_v8, 5  ;;  %v239_v17 = vrot.slane %v237_v9, 5  ;;  %v243_v18 = vrot.slane %v241_v10, 4  ;;  %v176_v27 = vld [vmem:[%s6809_s7 + $0xc] sm:$0xf] }
  0x21   : > { %v249_v19 = vrot.slane %v247_v12, 5  ;;  %v2049_v21 = vshll.u32 %v5368_v11, 16  ;;  %v2055_v22 = vshll.u32 %v6817_v13, 16  ;;  %v2059_v25 = vshrl.u32 %v6817_v13, 16  ;;  %v177_v32 = vld [vmem:[%s6809_s7 + $0x10] sm:$0xf] }
  0x22   : > { %v234_v23 = vor.u32 %v233_v16, %v230_v15  ;;  %v244_v24 = vor.u32 %v243_v18, %v239_v17  ;;  %v2065_v26 = vshll.u32 %v6820_v14, 16  ;;  %v2048_v29 = vrot.slane %v2046_v20, 4  ;;  %v209_v38 = vld [vmem:[%s6809_s7 + $0x14] sm:$0x1]  ;;  %v5371_v49 = vld [vmem:[%s6809_s7 + $0x18] sm:$0xf] }
  0x23   : > { %v2051_v30 = vrot.slane %v2049_v21, 5  ;;  %v2057_v31 = vrot.slane %v2055_v22, 5  ;;  %v2061_v35 = vrot.slane %v2059_v25, 4  ;;  %v252_v39 = vshrl.u32 %v176_v27, 16  ;;  %v6840_v54 = vld [vmem:[%s6809_s7 + $0x1c] sm:$0xf] }
  0x24   : > { %v235_v33 = vrot.slane %v234_v23, 4  ;;  %v245_v34 = vrot.slane %v244_v24, 4  ;;  %v2067_v37 = vrot.slane %v2065_v26, 5  ;;  %v255_v40 = vshll.u32 %v176_v27, 16  ;;  %v6848_v59 = vld [vmem:[%s6809_s7 + $0x20] sm:$0x1] }
  0x25   : > { %v2052_v36 = vor.u32 %v2051_v30, %v2048_v29  ;;  %v2062_v43 = vor.u32 %v2061_v35, %v2057_v31  ;;  %v261_v44 = vshll.u32 %v177_v32, 16  ;;  %v254_v47 = vrot.slane %v252_v39, 4  ;;  %v178_v10 = vld [vmem:[%s6809_s7 + $0x18] sm:$0xf]  ;;  %v210_v24 = vld [vmem:[%s6809_s7 + $0x20] sm:$0x1] }
  0x26   : > { %v240_v41 = vsel %vm6828_vm2, %v235_v33, %v239_v17  ;;  %v250_v42 = vsel %vm6828_vm2, %v245_v34, %v249_v19  ;;  %v257_v48 = vrot.slane %v255_v40, 5  ;;  %v265_v52 = vshrl.u32 %v177_v32, 16  ;;  %v179_v17 = vld [vmem:[%s6809_s7 + $0x1c] sm:$0xf]  ;;  %v5374_v32 = vld [vmem:[%s6809_s7 + $0x24] sm:$0xf] }
  0x27   : > { %v5184_v45 = vcombine.low %v240_v41, %v250_v42  ;;  %v2053_v46 = vrot.slane %v2052_v36, 4  ;;  %v2063_v50 = vrot.slane %v2062_v43, 4  ;;  %v263_v51 = vrot.slane %v261_v44, 5  ;;  %s6634_s20 = scalar_lea.vmem %s8872_s8, 4096  ;;  %s6638_s24 = sshll.u32 %s6714_s23, 4  ;;  %s6639_s24 = int_to_ptr.vmem [resolvable:$false] %s6638_s24 }
  0x28   : > { %v271_v53 = vshll.u32 %v209_v38, 16  ;;  %v2793_v56 = vrot.slane %v6817_v13, 5  ;;  %v2796_v57 = vrot.slane %v6820_v14, 5  ;;  %v258_v58 = vor.u32 %v257_v48, %v254_v47  ;;  %v6522_v38 = vld [vmem:[%s8951_s1 + $0x10] sm:$0xff]   ;;  %v7083_v14 = vld [vmem:[%s6809_s7 + $0x7c] sm:$0xf]  ;;  %p6635_p12 = scmp.ne.s32.totalorder %s8872_s8, %s6634_s20  ;;  %p6641_p1 = scmp.lt.s32.totalorder %s8872_s8, %s6639_s24 }
  0x29   : > { %5896 = vmatprep.mubr.msk.bf16.mxu1 %vm668_vm3, %v5184_v45  ;;  %v2058_v55 = vsel %vm6828_vm2, %v2053_v46, %v2057_v31  ;;  %v2068_v60 = vsel %vm6828_vm2, %v2063_v50, %v2067_v37  ;;  %v267_v61 = vrot.slane %v265_v52, 4  ;;  %v2070_v63 = vshrl.u32 %v5371_v49, 16  ;;  %v6871_v37 = vld [vmem:[%s6809_s7 + $0x28] sm:$0xf]  ;;  %v6880_v45 = vld [vmem:[%s6809_s7 + $0x2c] sm:$0x1] }
  0x2a   : > { %v273_v62 = vrot.slane %v271_v53, 5  ;;  %v5418_v0 = vcombine.low %v2058_v55, %v2068_v60  ;;  %v259_v1 = vrot.slane %v258_v58, 4  ;;  %v2073_v4 = vshll.u32 %v5371_v49, 16  ;;  %v180_v52 = vld [vmem:[%s6809_s7 + $0x24] sm:$0xf]  ;;  %p6636_p13 = pnand %p6635_p12, %p6772_p4  ;;  %s6640_s25 = scalar_lea.vmem %s6639_s24, 8192 }
  0x2b   : > { %v2079_v5 = vshll.u32 %v6840_v54, 16  ;;  %v268_v6 = vor.u32 %v267_v61, %v263_v51  ;;  %v2072_v7 = vrot.slane %v2070_v63, 4  ;;  %v2083_v8 = vshrl.u32 %v6840_v54, 16  ;;  %v181_v61 = vld [vmem:[%s6809_s7 + $0x28] sm:$0xf]  ;;  %p6642_p2 = scmp.lt.s32.totalorder %s6640_s25, %s6634_s20 }
  0x2c   : > { %v2089_v9 = vshll.u32 %v6848_v59, 16  ;;  %6032 = vmatprep.mubr.msk.bf16.mxu0 %vm668_vm3, %v5418_v0  ;;  %v264_v11 = vsel %vm6828_vm2, %v259_v1, %v263_v51  ;;  %v2075_v12 = vrot.slane %v2073_v4, 5  ;;  %v2800_v16 = vrot.slane %v6840_v54, 5  ;;  %p6637_p0 = pneg %p6636_p13 }
  0x2d   : > { %v2081_v15 = vrot.slane %v2079_v5, 5  ;;  %v269_v18 = vrot.slane %v268_v6, 4  ;;  %v2085_v19 = vrot.slane %v2083_v8, 4  ;;  %v2803_v21 = vrot.slane %v6848_v59, 5  ;;  %v211_v6 = vld [vmem:[%s6809_s7 + $0x2c] sm:$0x1]  ;;  %p6643_p3 = por %p6642_p2, %p6641_p1 }
  0x2e   : > { %v2091_v20 = vrot.slane %v2089_v9, 5  ;;  %v2076_v22 = vor.u32 %v2075_v12, %v2072_v7  ;;  %v6864_v23 = vrot.slane %v2800_v16, 4  ;;  %v276_v25 = vshrl.u32 %v178_v10, 16 }
  0x2f   : > { %v279_v26 = vshll.u32 %v178_v10, 16  ;;  %v274_v27 = vsel %vm6828_vm2, %v269_v18, %v273_v62  ;;  %v2086_v29 = vor.u32 %v2085_v19, %v2081_v15  ;;  %v285_v30 = vshll.u32 %v179_v17, 16  ;;  %v6891_v62 = vld [vmem:[%s8951_s1 + $0x30] sm:$0xff]   ;;  %p6644_p5 = pnand %p6643_p3, %p6637_p0 }
  0x30   : > { %v289_v31 = vshrl.u32 %v179_v17, 16  ;;  %v5185_v33 = vcombine.low %v264_v11, %v274_v27  ;;  %v2077_v34 = vrot.slane %v2076_v22, 4  ;;  %v278_v35 = vrot.slane %v276_v25, 4  ;;  %v6904_v22 = vld [vmem:[%s6809_s7 + $0x34] sm:$0xf] }
  0x31   : > { %v281_v36 = vrot.slane %v279_v26, 5  ;;  %v2087_v39 = vrot.slane %v2086_v29, 4  ;;  %v287_v40 = vrot.slane %v285_v30, 5  ;;  %v295_v42 = vshll.u32 %v210_v24, 16  ;;  %v6911_v30 = vld [vmem:[%s6809_s7 + $0x38] sm:$0x1] }
  0x32   : > { %v291_v41 = vrot.slane %v289_v31, 4  ;;  %5897 = vmatmul.mubr.msk.bf16.vlgmr.msra.gmra.mrb[0].mxu1 %vm668_vm3, %v5185_v33  ;;  %v2082_v43 = vsel %vm6828_vm2, %v2077_v34, %v2081_v15  ;;  %v2094_v46 = vshrl.u32 %v5374_v32, 16  ;;  %v2097_v47 = vshll.u32 %v5374_v32, 16  ;;  %v5377_v15 = vld [vmem:[%s6809_s7 + $0x30] sm:$0xf] }
  0x33   : > { %v282_v44 = vor.u32 %v281_v36, %v278_v35  ;;  %5929 = vmatpush3.bf16.msra.mxu1 %v6798_v2  ;;  %v2092_v48 = vsel %vm6828_vm2, %v2087_v39, %v2091_v20  ;;  %v297_v50 = vrot.slane %v295_v42, 5  ;;  %v2103_v51 = vshll.u32 %v6871_v37, 16  ;;  %v182_v42 = vld [vmem:[%s6809_s7 + $0x30] sm:$0xf] }
  0x34   : > { %v292_v49 = vor.u32 %v291_v41, %v287_v40  ;;  %v5419_v53 = vcombine.low %v2082_v43, %v2092_v48  ;;  %v2096_v58 = vrot.slane %v2094_v46, 4  ;;  %v2099_v60 = vrot.slane %v2097_v47, 5  ;;  %5962 = vmatprep.subr.bf16.mxu1 %v6522_v38  ;;  %v183_v48 = vld [vmem:[%s6809_s7 + $0x34] sm:$0xf] }
  0x35   : > { %v283_v55 = vrot.slane %v282_v44, 4  ;;  %v2105_v63 = vrot.slane %v2103_v51, 5  ;;  %v2107_v0 = vshrl.u32 %v6871_v37, 16  ;;  %v2113_v1 = vshll.u32 %v6880_v45, 16 }
  0x36   : > { %v293_v2 = vrot.slane %v292_v49, 4  ;;  %6033 = vmatmul.mubr.msk.bf16.vlgmr.msra.gmra.mrb[0].mxu0 %vm668_vm3, %v5419_v53  ;;  %v2100_v5 = vor.u32 %v2099_v60, %v2096_v58  ;;  %v300_v7 = vshrl.u32 %v180_v52, 16  ;;  %v303_v8 = vshll.u32 %v180_v52, 16  ;;  %v212_v53 = vld [vmem:[%s6809_s7 + $0x38] sm:$0x1] }
  0x37   : > { %v288_v4 = vsel %vm6828_vm2, %v283_v55, %v287_v40  ;;  %6065 = vmatpush3.bf16.msra.mxu0 %v6804_v3  ;;  %v2109_v10 = vrot.slane %v2107_v0, 4  ;;  %v2115_v11 = vrot.slane %v2113_v1, 5  ;;  %v309_v12 = vshll.u32 %v181_v61, 16 }
  0x38   : > { %v298_v9 = vsel %vm6828_vm2, %v293_v2, %v297_v50  ;;  %v2101_v18 = vrot.slane %v2100_v5, 4  ;;  %v302_v19 = vrot.slane %v300_v7, 4  ;;  %v305_v20 = vrot.slane %v303_v8, 5  ;;  %6098 = vmatprep.subr.bf16.mxu0 %v6891_v62 }
  0x39   : > { %v5186_v17 = vcombine.low %v288_v4, %v298_v9  ;;  %v2110_v24 = vor.u32 %v2109_v10, %v2105_v63  ;;  %v311_v25 = vrot.slane %v309_v12, 5  ;;  %v313_v26 = vshrl.u32 %v181_v61, 16  ;;  %v5380_v4 = vld [vmem:[%s6809_s7 + $0x3c] sm:$0xf]  ;;  %v6928_v9 = vld [vmem:[%s6809_s7 + $0x40] sm:$0xf] }
  0x3a   : > { %v319_v3 = vshll.u32 %v211_v6, 16  ;;  %v2106_v27 = vsel %vm6828_vm2, %v2101_v18, %v2105_v63  ;;  %v306_v29 = vor.u32 %v305_v20, %v302_v19  ;;  %v2118_v31 = vshrl.u32 %v5377_v15, 16  ;;  %v6933_v20 = vld [vmem:[%s6809_s7 + $0x44] sm:$0x1] }
  0x3b   : > { %5900 = vmatprep.mubr.msk.bf16.mxu1 %vm668_vm3, %v5186_v17  ;;  %v2121_v32 = vshll.u32 %v5377_v15, 16  ;;  %v2111_v33 = vrot.slane %v2110_v24, 4  ;;  %v315_v34 = vrot.slane %v313_v26, 4  ;;  %v2127_v36 = vshll.u32 %v6904_v22, 16 }
  0x3c   : > { %v321_v35 = vrot.slane %v319_v3, 5  ;;  %v307_v38 = vrot.slane %v306_v29, 4  ;;  %v2120_v39 = vrot.slane %v2118_v31, 4  ;;  %v2131_v41 = vshrl.u32 %v6904_v22, 16  ;;  %v184_v29 = vld [vmem:[%s6809_s7 + $0x3c] sm:$0xf] }
  0x3d   : > { %v2123_v40 = vrot.slane %v2121_v32, 5  ;;  %v2116_v43 = vsel %vm6828_vm2, %v2111_v33, %v2115_v11  ;;  %v316_v44 = vor.u32 %v315_v34, %v311_v25  ;;  %v2129_v46 = vrot.slane %v2127_v36, 5 }
  0x3e   : > { %v2137_v47 = vshll.u32 %v6911_v30, 16  ;;  %v5420_v49 = vcombine.low %v2106_v27, %v2116_v43  ;;  %v312_v50 = vsel %vm6828_vm2, %v307_v38, %v311_v25  ;;  %v2133_v52 = vrot.slane %v2131_v41, 4 }
  0x3f   : > { %v2124_v51 = vor.u32 %v2123_v40, %v2120_v39  ;;  %v317_v55 = vrot.slane %v316_v44, 4  ;;  %v324_v60 = vshrl.u32 %v182_v42, 16  ;;  %v327_v61 = vshll.u32 %v182_v42, 16 }
  0x40   : > { %v2139_v58 = vrot.slane %v2137_v47, 5  ;;  %6036 = vmatprep.mubr.msk.bf16.mxu0 %vm668_vm3, %v5420_v49  ;;  %v2134_v63 = vor.u32 %v2133_v52, %v2129_v46  ;;  %v333_v0 = vshll.u32 %v183_v48, 16  ;;  %v337_v1 = vshrl.u32 %v183_v48, 16  ;;  %v213_v49 = vld [vmem:[%s6809_s7 + $0x44] sm:$0x1] }
  0x41   : > { %v2125_v2 = vrot.slane %v2124_v51, 4  ;;  %v322_v5 = vsel %vm6828_vm2, %v317_v55, %v321_v35  ;;  %v326_v6 = vrot.slane %v324_v60, 4  ;;  %v329_v7 = vrot.slane %v327_v61, 5  ;;  %v185_v35 = vld [vmem:[%s6809_s7 + $0x40] sm:$0xf] }
  0x42   : > { %v343_v8 = vshll.u32 %v212_v53, 16  ;;  %v5187_v10 = vcombine.low %v312_v50, %v322_v5  ;;  %v2135_v12 = vrot.slane %v2134_v63, 4  ;;  %v335_v15 = vrot.slane %v333_v0, 5  ;;  %v5383_v51 = vld [vmem:[%s6809_s7 + $0x48] sm:$0xf] }
  0x43   : > { %v2130_v11 = vsel %vm6828_vm2, %v2125_v2, %v2129_v46  ;;  %v330_v17 = vor.u32 %v329_v7, %v326_v6  ;;  %v339_v18 = vrot.slane %v337_v1, 4  ;;  %v2142_v24 = vshrl.u32 %v5380_v4, 16  ;;  %v6951_v60 = vld [vmem:[%s6809_s7 + $0x4c] sm:$0xf] }
  0x44   : > { %v345_v19 = vrot.slane %v343_v8, 5  ;;  %5901 = vmatmul.mubr.msk.bf16.gmra.mrb[4].mxu1 %vm668_vm3, %v5187_v10  ;;  %v2140_v25 = vsel %vm6828_vm2, %v2135_v12, %v2139_v58  ;;  %v2145_v26 = vshll.u32 %v5380_v4, 16  ;;  %v2151_v3 = vshll.u32 %v6928_v9, 16  ;;  %v6959_v10 = vld [vmem:[%s6809_s7 + $0x50] sm:$0x1] }
  0x45   : > { %v2155_v27 = vshrl.u32 %v6928_v9, 16  ;;  %v5421_v31 = vcombine.low %v2130_v11, %v2140_v25  ;;  %v331_v32 = vrot.slane %v330_v17, 4  ;;  %v340_v33 = vor.u32 %v339_v18, %v335_v15  ;;  %v6966_v25 = vld [vmem:[%s6809_s7 + $0x4c] sm:$0xf] }
  0x46   : > { %v2144_v34 = vrot.slane %v2142_v24, 4  ;;  %v2147_v36 = vrot.slane %v2145_v26, 5  ;;  %v2153_v38 = vrot.slane %v2151_v3, 5  ;;  %v2161_v40 = vshll.u32 %v6933_v20, 16 }
  0x47   : > { %v2157_v39 = vrot.slane %v2155_v27, 4  ;;  %6037 = vmatmul.mubr.msk.bf16.gmra.mrb[4].mxu0 %vm668_vm3, %v5421_v31  ;;  %v336_v41 = vsel %vm6828_vm2, %v331_v32, %v335_v15  ;;  %v341_v42 = vrot.slane %v340_v33, 4  ;;  %v348_v43 = vshrl.u32 %v184_v29, 16  ;;  %v6963_v15 = vld [vmem:[%s6809_s7 + $0x48] sm:$0xf] }
  0x48   : > { %v351_v44 = vshll.u32 %v184_v29, 16  ;;  %v2148_v46 = vor.u32 %v2147_v36, %v2144_v34  ;;  %v2163_v48 = vrot.slane %v2161_v40, 5  ;;  %v357_v50 = vshll.u32 %v185_v35, 16  ;;  %v214_v34 = vld [vmem:[%s6809_s7 + $0x50] sm:$0x1] }
  0x49   : > { %v2158_v47 = vor.u32 %v2157_v39, %v2153_v38  ;;  %v346_v52 = vsel %vm6828_vm2, %v341_v42, %v345_v19  ;;  %v350_v53 = vrot.slane %v348_v43, 4  ;;  %v361_v58 = vshrl.u32 %v185_v35, 16 }
  0x4a   : > { %v353_v55 = vrot.slane %v351_v44, 5  ;;  %v5188_v61 = vcombine.low %v336_v41, %v346_v52  ;;  %v2149_v2 = vrot.slane %v2148_v46, 4  ;;  %v359_v0 = vrot.slane %v357_v50, 5  ;;  %v5386_v41 = vld [vmem:[%s6809_s7 + $0x54] sm:$0xf] }
  0x4b   : > { %v2159_v63 = vrot.slane %v2158_v47, 4  ;;  %v363_v4 = vrot.slane %v361_v58, 4  ;;  %v367_v5 = vshll.u32 %v213_v49, 16  ;;  %v2166_v6 = vshrl.u32 %v5383_v51, 16 }
  0x4c   : > { %v354_v1 = vor.u32 %v353_v55, %v350_v53  ;;  %5904 = vmatprep.mubr.msk.bf16.mxu1 %vm668_vm3, %v5188_v61  ;;  %v2154_v7 = vsel %vm6828_vm2, %v2149_v2, %v2153_v38  ;;  %v2169_v11 = vshll.u32 %v5383_v51, 16  ;;  %v2175_v12 = vshll.u32 %v6951_v60, 16  ;;  %v6982_v51 = vld [vmem:[%s6809_s7 + $0x58] sm:$0xf] }
  0x4d   : > { %v2164_v8 = vsel %vm6828_vm2, %v2159_v63, %v2163_v48  ;;  %v364_v19 = vor.u32 %v363_v4, %v359_v0  ;;  %v369_v24 = vrot.slane %v367_v5, 5  ;;  %v2168_v26 = vrot.slane %v2166_v6, 4 }
  0x4e   : > { %v5422_v17 = vcombine.low %v2154_v7, %v2164_v8  ;;  %v355_v18 = vrot.slane %v354_v1, 4  ;;  %v2171_v3 = vrot.slane %v2169_v11, 5  ;;  %v2177_v27 = vrot.slane %v2175_v12, 5  ;;  %v6992_v8 = vld [vmem:[%s6809_s7 + $0x54] sm:$0xf] }
  0x4f   : > { %v2179_v29 = vshrl.u32 %v6951_v60, 16  ;;  %v365_v32 = vrot.slane %v364_v19, 4  ;;  %v2185_v33 = vshll.u32 %v6959_v10, 16  ;;  %v372_v35 = vshrl.u32 %v6963_v15, 16  ;;  %v6998_v19 = vld [vmem:[%s6809_s7 + $0x58] sm:$0xf] }
  0x50   : > { %6040 = vmatprep.mubr.msk.bf16.mxu0 %vm668_vm3, %v5422_v17  ;;  %v360_v31 = vsel %vm6828_vm2, %v355_v18, %v359_v0  ;;  %v2172_v36 = vor.u32 %v2171_v3, %v2168_v26  ;;  %v375_v39 = vshll.u32 %v6963_v15, 16  ;;  %v381_v40 = vshll.u32 %v6966_v25, 16  ;;  %v6988_v0 = vld [vmem:[%s6809_s7 + $0x5c] sm:$0x1] }
  0x51   : > { %v2181_v38 = vrot.slane %v2179_v29, 4  ;;  %v370_v42 = vsel %vm6828_vm2, %v365_v32, %v369_v24  ;;  %v2187_v43 = vrot.slane %v2185_v33, 5  ;;  %v374_v44 = vrot.slane %v372_v35, 4  ;;  %v215_v33 = vld [vmem:[%s6809_s7 + $0x5c] sm:$0x1] }
  0x52   : > { %v385_v46 = vshrl.u32 %v6966_v25, 16  ;;  %v5189_v47 = vcombine.low %v360_v31, %v370_v42  ;;  %v2173_v48 = vrot.slane %v2172_v36, 4  ;;  %v377_v50 = vrot.slane %v375_v39, 5 }
  0x53   : > { %v2182_v49 = vor.u32 %v2181_v38, %v2177_v27  ;;  %v383_v52 = vrot.slane %v381_v40, 5  ;;  %v391_v55 = vshll.u32 %v214_v34, 16  ;;  %v2190_v58 = vshrl.u32 %v5386_v41, 16  ;;  %v5389_v40 = vld [vmem:[%s6809_s7 + $0x60] sm:$0xf] }
  0x54   : > { %v387_v53 = vrot.slane %v385_v46, 4  ;;  %5905 = vmatmul.mubr.msk.bf16.gmra.mrb[8].mxu1 %vm668_vm3, %v5189_v47  ;;  %v2178_v61 = vsel %vm6828_vm2, %v2173_v48, %v2177_v27  ;;  %v378_v63 = vor.u32 %v377_v50, %v374_v44  ;;  %v2193_v1 = vshll.u32 %v5386_v41, 16  ;;  %v7012_v46 = vld [vmem:[%s6809_s7 + $0x64] sm:$0xf] }
  0x55   : > { %v2183_v2 = vrot.slane %v2182_v49, 4  ;;  %v393_v5 = vrot.slane %v391_v55, 5  ;;  %v2192_v6 = vrot.slane %v2190_v58, 4  ;;  %v2199_v7 = vshll.u32 %v6982_v51, 16  ;;  %v7019_v55 = vld [vmem:[%s6809_s7 + $0x68] sm:$0x1] }
  0x56   : > { %v388_v4 = vor.u32 %v387_v53, %v383_v52  ;;  %v379_v12 = vrot.slane %v378_v63, 4  ;;  %v2195_v17 = vrot.slane %v2193_v1, 5  ;;  %v2203_v18 = vshrl.u32 %v6982_v51, 16 }
  0x57   : > { %v2188_v11 = vsel %vm6828_vm2, %v2183_v2, %v2187_v43  ;;  %v2201_v3 = vrot.slane %v2199_v7, 5  ;;  %v2209_v27 = vshll.u32 %v6988_v0, 16  ;;  %v396_v34 = vshrl.u32 %v6992_v8, 16 }
  0x58   : > { %v5423_v24 = vcombine.low %v2178_v61, %v2188_v11  ;;  %v389_v26 = vrot.slane %v388_v4, 4  ;;  %v384_v29 = vsel %vm6828_vm2, %v379_v12, %v383_v52  ;;  %v2196_v31 = vor.u32 %v2195_v17, %v2192_v6  ;;  %v7029_v17 = vld [vmem:[%s6809_s7 + $0x64] sm:$0xf] }
  0x59   : > { %v2205_v32 = vrot.slane %v2203_v18, 4  ;;  %v2211_v36 = vrot.slane %v2209_v27, 5  ;;  %v399_v38 = vshll.u32 %v6992_v8, 16  ;;  %v405_v39 = vshll.u32 %v6998_v19, 16 }
  0x5a   : > { %6041 = vmatmul.mubr.msk.bf16.gmra.mrb[8].mxu0 %vm668_vm3, %v5423_v24  ;;  %v394_v35 = vsel %vm6828_vm2, %v389_v26, %v393_v5  ;;  %v2197_v42 = vrot.slane %v2196_v31, 4  ;;  %v398_v44 = vrot.slane %v396_v34, 4  ;;  %v409_v49 = vshrl.u32 %v6998_v19, 16  ;;  %v7023_v5 = vld [vmem:[%s6809_s7 + $0x60] sm:$0xf] }
  0x5b   : > { %v5190_v41 = vcombine.low %v384_v29, %v394_v35  ;;  %v2206_v43 = vor.u32 %v2205_v32, %v2201_v3  ;;  %v401_v47 = vrot.slane %v399_v38, 5  ;;  %v407_v48 = vrot.slane %v405_v39, 5  ;;  %v216_v35 = vld [vmem:[%s6809_s7 + $0x68] sm:$0x1] }
  0x5c   : > { %v415_v50 = vshll.u32 %v215_v33, 16  ;;  %v2202_v52 = vsel %vm6828_vm2, %v2197_v42, %v2201_v3  ;;  %v2214_v58 = vshrl.u32 %v5389_v40, 16  ;;  %v2217_v61 = vshll.u32 %v5389_v40, 16 }
  0x5d   : > { %5908 = vmatprep.mubr.msk.bf16.mxu1 %vm668_vm3, %v5190_v41  ;;  %v2207_v53 = vrot.slane %v2206_v43, 4  ;;  %v402_v2 = vor.u32 %v401_v47, %v398_v44  ;;  %v411_v63 = vrot.slane %v409_v49, 4  ;;  %v2223_v4 = vshll.u32 %v7012_v46, 16  ;;  %v5451_v43 = vld [vmem:[%s6809_s7 + $0xc] sm:$0xe] }
  0x5e   : > { %v417_v1 = vrot.slane %v415_v50, 5  ;;  %v2216_v7 = vrot.slane %v2214_v58, 4  ;;  %v2219_v11 = vrot.slane %v2217_v61, 5  ;;  %v2227_v12 = vshrl.u32 %v7012_v46, 16 }
  0x5f   : > { %v2212_v6 = vsel %vm6828_vm2, %v2207_v53, %v2211_v36  ;;  %v403_v24 = vrot.slane %v402_v2, 4  ;;  %v412_v26 = vor.u32 %v411_v63, %v407_v48  ;;  %v2225_v3 = vrot.slane %v2223_v4, 5 }
  0x60   : > { %v5424_v18 = vcombine.low %v2202_v52, %v2212_v6  ;;  %v2220_v27 = vor.u32 %v2219_v11, %v2216_v7  ;;  %v2229_v29 = vrot.slane %v2227_v12, 4  ;;  %v2233_v31 = vshll.u32 %v7019_v55, 16  ;;  %v7057_v7 = vld [vmem:[%s6809_s7 + $0x70] sm:$0xf] }
  0x61   : > { %v420_v32 = vshrl.u32 %v7023_v5, 16  ;;  %v408_v33 = vsel %vm6828_vm2, %v403_v24, %v407_v48  ;;  %v413_v34 = vrot.slane %v412_v26, 4  ;;  %v423_v36 = vshll.u32 %v7023_v5, 16  ;;  %v7044_v48 = vld [vmem:[%s6809_s7 + $0x6c] sm:$0xf] }
  0x62   : > { %6044 = vmatprep.mubr.msk.bf16.mxu0 %vm668_vm3, %v5424_v18  ;;  %v429_v38 = vshll.u32 %v7029_v17, 16  ;;  %v2221_v39 = vrot.slane %v2220_v27, 4  ;;  %v2230_v40 = vor.u32 %v2229_v29, %v2225_v3  ;;  %v2235_v41 = vrot.slane %v2233_v31, 5  ;;  %v217_v31 = vld [vmem:[%s6809_s7 + $0x74] sm:$0x1] }
  0x63   : > { %v422_v42 = vrot.slane %v420_v32, 4  ;;  %v418_v44 = vsel %vm6828_vm2, %v413_v34, %v417_v1  ;;  %v425_v47 = vrot.slane %v423_v36, 5  ;;  %v433_v50 = vshrl.u32 %v7029_v17, 16  ;;  %v5452_v32 = vld [vmem:[%s6809_s7 + $0x18] sm:$0xe] }
  0x64   : > { %v431_v49 = vrot.slane %v429_v38, 5  ;;  %v5191_v52 = vcombine.low %v408_v33, %v418_v44  ;;  %v2226_v53 = vsel %vm6828_vm2, %v2221_v39, %v2225_v3  ;;  %v2231_v58 = vrot.slane %v2230_v40, 4  ;;  %v7076_v38 = vld [vmem:[%s6809_s7 + $0x78] sm:$0xf] }
  0x65   : > { %v439_v61 = vshll.u32 %v216_v35, 16  ;;  %v426_v63 = vor.u32 %v425_v47, %v422_v42  ;;  %v435_v1 = vrot.slane %v433_v50, 4  ;;  %v5467_v4 = vrot.slane %v5451_v43, 9  ;;  %v5453_v47 = vld [vmem:[%s6809_s7 + $0x24] sm:$0xe] }
  0x66   : > { %v2795_v6 = vrot.slane %v2793_v56, 4  ;;  %5909 = vmatmul.mubr.msk.bf16.gmra.mrb[12].mxu1 %vm668_vm3, %v5191_v52  ;;  %v2236_v11 = vsel %vm6828_vm2, %v2231_v58, %v2235_v41  ;;  %v444_v18 = vshrl.u32 %v7044_v48, 16  ;;  %v447_v24 = vshll.u32 %v7044_v48, 16  ;;  %v218_v41 = vld [vmem:[%s6809_s7 + $0x80] sm:$0x1] }
  0x67   : > { %v441_v12 = vrot.slane %v439_v61, 5  ;;  %v5425_v26 = vcombine.low %v2226_v53, %v2236_v11  ;;  %v427_v3 = vrot.slane %v426_v63, 4  ;;  %v436_v27 = vor.u32 %v435_v1, %v431_v49 }
  0x68   : > { %v2794_v29 = vsel %vm7050_vm6, %v5467_v4, %v2793_v56  ;;  %v2797_v33 = vsel %vm7050_vm6, %v2795_v6, %v2796_v57  ;;  %v446_v34 = vrot.slane %v444_v18, 4  ;;  %v449_v35 = vrot.slane %v447_v24, 5  ;;  %v7110_v24 = vld [vmem:[%s6809_s7 + $0x88] sm:$0xf] }
  0x69   : > { %v453_v36 = vshll.u32 %v7057_v7, 16  ;;  %6045 = vmatmul.mubr.msk.bf16.gmra.mrb[12].mxu0 %vm668_vm3, %v5425_v26  ;;  %v432_v13 = vsel %vm6828_vm2, %v427_v3, %v431_v49  ;;  %v437_v56 = vrot.slane %v436_v27, 4  ;;  %v5485_v39 = vcombine.low %v2794_v29, %v2797_v33 }
  0x6a   : > { %v457_v40 = vshrl.u32 %v7057_v7, 16  ;;  %v450_v57 = vor.u32 %v449_v35, %v446_v34  ;;  %v463_v43 = vshll.u32 %v217_v31, 16  ;;  %v5468_v44 = vrot.slane %v5452_v32, 9  ;;  %v219_v35 = vld [vmem:[%s6809_s7 + $0x8c] sm:$0x1] }
  0x6b   : > { %v455_v42 = vrot.slane %v453_v36, 5  ;;  %v442_v50 = vsel %vm6828_vm2, %v437_v56, %v441_v12  ;;  %6066 = vmatprep.mubr.msk.bf16.mxu0 %vm668_vm3, %v5485_v39  ;;  %v2804_v49 = vsel %vm7050_vm6, %v6864_v23, %v2803_v21  ;;  %v468_v53 = vshrl.u32 %v7076_v38, 16  ;;  %v7102_v12 = vld [vmem:[%s6809_s7 + $0x84] sm:$0xf] }
  0x6c   : > { %v459_v52 = vrot.slane %v457_v40, 4  ;;  %v5192_v58 = vcombine.low %v432_v13, %v442_v50  ;;  %v451_v61 = vrot.slane %v450_v57, 4  ;;  %v465_v63 = vrot.slane %v463_v43, 5  ;;  %v5454_v40 = vld [vmem:[%s6809_s7 + $0x30] sm:$0xe] }
  0x6d   : > { %v2801_v1 = vsel %vm7050_vm6, %v5468_v44, %v2800_v16  ;;  %v470_v11 = vrot.slane %v468_v53, 4  ;;  %v471_v59 = vshll.u32 %v7076_v38, 16  ;;  %v477_v23 = vshll.u32 %v7083_v14, 16  ;;  %v7115_v16 = vld [vmem:[%s8951_s1 + $0x38] sm:$0xff]   ;;  %v7134_v50 = vld [vmem:[%s6809_s7 + $0x90] sm:$0xf] }
  0x6e   : > { %v460_v4 = vor.u32 %v459_v52, %v455_v42  ;;  %v5486_v6 = vcombine.low %v2801_v1, %v2804_v49  ;;  %5912 = vmatprep.mubr.msk.bf16.mxu1 %vm668_vm3, %v5192_v58  ;;  %v456_v21 = vsel %vm6828_vm2, %v451_v61, %v455_v42  ;;  %v481_v54 = vshrl.u32 %v7083_v14, 16  ;;  %v7139_v58 = vld [vmem:[%s6809_s7 + $0x94] sm:$0xf] }
  0x6f   : > { %v487_v18 = vshll.u32 %v218_v41, 16  ;;  %v473_v3 = vrot.slane %v471_v59, 5  ;;  %v5469_v27 = vrot.slane %v5453_v47, 9  ;;  %v2807_v29 = vrot.slane %v6871_v37, 5 }
  0x70   : > { %v461_v26 = vrot.slane %v460_v4, 4  ;;  %v479_v31 = vrot.slane %v477_v23, 5  ;;  %v483_v32 = vrot.slane %v481_v54, 4  ;;  %v2810_v34 = vrot.slane %v6880_v45, 5  ;;  %v220_v23 = vld [vmem:[%s6809_s7 + $0x98] sm:$0x1] }
  0x71   : > { %v489_v33 = vrot.slane %v487_v18, 5  ;;  %6067 = vmatmul.mubr.msk.bf16.vlgmr.msra.gmra.mrb[0].mxu0 %vm668_vm3, %v5486_v6  ;;  %v474_v13 = vor.u32 %v473_v3, %v470_v11  ;;  %v2808_v56 = vsel %vm7050_vm6, %v5469_v27, %v2807_v29  ;;  %v2809_v39 = vrot.slane %v2807_v29, 4  ;;  %v5455_v27 = vld [vmem:[%s6809_s7 + $0x3c] sm:$0xe] }
  0x72   : > { %v466_v36 = vsel %vm6828_vm2, %v461_v26, %v465_v63  ;;  %6099 = vmatpush3.bf16.msra.mxu0 %v6891_v62  ;;  %v484_v37 = vor.u32 %v483_v32, %v479_v31  ;;  %v492_v45 = vshrl.u32 %v7102_v12, 16  ;;  %v495_v57 = vshll.u32 %v7102_v12, 16 }
  0x73   : > { %v5193_v41 = vcombine.low %v456_v21, %v466_v36  ;;  %v475_v42 = vrot.slane %v474_v13, 4  ;;  %v2811_v43 = vsel %vm7050_vm6, %v2809_v39, %v2810_v34  ;;  %v501_v44 = vshll.u32 %v7110_v24, 16  ;;  %6132 = vmatprep.subr.bf16.mxu0 %v7115_v16 }
  0x74   : > { %v505_v47 = vshrl.u32 %v7110_v24, 16  ;;  %v485_v62 = vrot.slane %v484_v37, 4  ;;  %v5487_v52 = vcombine.low %v2808_v56, %v2811_v43  ;;  %v494_v49 = vrot.slane %v492_v45, 4 }
  0x75   : > { %5913 = vmatmul.mubr.msk.bf16.gmra.mrb[16].mxu1 %vm668_vm3, %v5193_v41  ;;  %v497_v53 = vrot.slane %v495_v57, 5  ;;  %v480_v61 = vsel %vm6828_vm2, %v475_v42, %v479_v31  ;;  %v503_v63 = vrot.slane %v501_v44, 5  ;;  %v511_v4 = vshll.u32 %v219_v35, 16  ;;  %v7167_v42 = vld [vmem:[%s6809_s7 + $0xa0] sm:$0xf] }
  0x76   : > { %v507_v1 = vrot.slane %v505_v47, 4  ;;  %v490_v6 = vsel %vm6828_vm2, %v485_v62, %v489_v33  ;;  %6070 = vmatprep.mubr.msk.bf16.mxu0 %vm668_vm3, %v5487_v52  ;;  %v5470_v59 = vrot.slane %v5454_v40, 9  ;;  %v2814_v21 = vrot.slane %v6904_v22, 5  ;;  %v7162_v40 = vld [vmem:[%s6809_s7 + $0x9c] sm:$0xf] }
  0x77   : > { %v498_v11 = vor.u32 %v497_v53, %v494_v49  ;;  %v5194_v54 = vcombine.low %v480_v61, %v490_v6  ;;  %v513_v26 = vrot.slane %v511_v4, 5  ;;  %v2817_v3 = vrot.slane %v6911_v30, 5  ;;  %v221_v52 = vld [vmem:[%s6809_s7 + $0xa4] sm:$0x1] }
  0x78   : > { %v508_v18 = vor.u32 %v507_v1, %v503_v63  ;;  %v2815_v31 = vsel %vm7050_vm6, %v5470_v59, %v2814_v21  ;;  %v2816_v32 = vrot.slane %v2814_v21, 4  ;;  %v516_v33 = vshrl.u32 %v7134_v50, 16  ;;  %v5456_v59 = vld [vmem:[%s6809_s7 + $0x48] sm:$0xe] }
  0x79   : > { %v499_v29 = vrot.slane %v498_v11, 4  ;;  %5916 = vmatprep.mubr.msk.bf16.mxu1 %vm668_vm3, %v5194_v54  ;;  %v519_v22 = vshll.u32 %v7134_v50, 16  ;;  %v525_v35 = vshll.u32 %v7139_v58, 16  ;;  %v529_v36 = vshrl.u32 %v7139_v58, 16 }
  0x7a   : > { %v509_v34 = vrot.slane %v508_v18, 4  ;;  %v2818_v13 = vsel %vm7050_vm6, %v2816_v32, %v2817_v3  ;;  %v518_v56 = vrot.slane %v516_v33, 4  ;;  %v535_v39 = vshll.u32 %v220_v23, 16  ;;  %v7186_v33 = vld [vmem:[%s6809_s7 + $0xa8] sm:$0xf] }
  0x7b   : > { %v504_v30 = vsel %vm6828_vm2, %v499_v29, %v503_v63  ;;  %v5488_v37 = vcombine.low %v2815_v31, %v2818_v13  ;;  %v521_v45 = vrot.slane %v519_v22, 5  ;;  %v527_v57 = vrot.slane %v525_v35, 5 }
  0x7c   : > { %v514_v41 = vsel %vm6828_vm2, %v509_v34, %v513_v26  ;;  %v531_v44 = vrot.slane %v529_v36, 4  ;;  %v537_v47 = vrot.slane %v535_v39, 5  ;;  %v5471_v62 = vrot.slane %v5455_v27, 9 }
  0x7d   : > { %v5195_v43 = vcombine.low %v504_v30, %v514_v41  ;;  %6071 = vmatmul.mubr.msk.bf16.gmra.mrb[4].mxu0 %vm668_vm3, %v5488_v37  ;;  %v522_v49 = vor.u32 %v521_v45, %v518_v56  ;;  %v2821_v53 = vrot.slane %v6928_v9, 5  ;;  %v2824_v61 = vrot.slane %v6933_v20, 5  ;;  %v7191_v30 = vld [vmem:[%s6809_s7 + $0xac] sm:$0xf]  ;;  %v222_v37 = vld [vmem:[%s6809_s7 + $0xb0] sm:$0x1] }
  0x7e   : > { %v540_v63 = vshrl.u32 %v7162_v40, 16  ;;  %v532_v1 = vor.u32 %v531_v44, %v527_v57  ;;  %v543_v4 = vshll.u32 %v7162_v40, 16  ;;  %v549_v6 = vshll.u32 %v7167_v42, 16  ;;  %v5457_v45 = vld [vmem:[%s6809_s7 + $0x54] sm:$0xe] }
  0x7f   : > { %5917 = vmatmul.mubr.msk.bf16.gmra.mrb[20].mxu1 %vm668_vm3, %v5195_v43  ;;  %v553_v11 = vshrl.u32 %v7167_v42, 16  ;;  %v523_v21 = vrot.slane %v522_v49, 4  ;;  %v2822_v23 = vsel %vm7050_vm6, %v5471_v62, %v2821_v53  ;;  %v2823_v9 = vrot.slane %v2821_v53, 4  ;;  %v7201_v62 = vld [vmem:[%s6809_s7 + $0xb4] sm:$0xf] }
  0x80   : > { %v542_v20 = vrot.slane %v540_v63, 4  ;;  %v533_v54 = vrot.slane %v532_v1, 4  ;;  %v545_v18 = vrot.slane %v543_v4, 5  ;;  %v551_v26 = vrot.slane %v549_v6, 5  ;;  %v7213_v4 = vld [vmem:[%s6809_s7 + $0xb8] sm:$0xf] }
  0x81   : > { %v555_v3 = vrot.slane %v553_v11, 4  ;;  %v528_v27 = vsel %vm6828_vm2, %v523_v21, %v527_v57  ;;  %v2825_v29 = vsel %vm7050_vm6, %v2823_v9, %v2824_v61  ;;  %v559_v31 = vshll.u32 %v221_v52, 16 }
  0x82   : > { %v5472_v32 = vrot.slane %v5456_v59, 9  ;;  %v538_v34 = vsel %vm6828_vm2, %v533_v54, %v537_v47  ;;  %v5489_v22 = vcombine.low %v2822_v23, %v2825_v29  ;;  %v546_v35 = vor.u32 %v545_v18, %v542_v20  ;;  %v223_v18 = vld [vmem:[%s6809_s7 + $0xbc] sm:$0x1] }
  0x83   : > { %v556_v36 = vor.u32 %v555_v3, %v551_v26  ;;  %v5196_v13 = vcombine.low %v528_v27, %v538_v34  ;;  %v561_v56 = vrot.slane %v559_v31, 5  ;;  %v2828_v39 = vrot.slane %v6951_v60, 5  ;;  %v5458_v31 = vld [vmem:[%s6809_s7 + $0x60] sm:$0xe] }
  0x84   : > { %v2831_v41 = vrot.slane %v6959_v10, 5  ;;  %6074 = vmatprep.mubr.msk.bf16.mxu0 %vm668_vm3, %v5489_v22  ;;  %v547_v57 = vrot.slane %v546_v35, 4  ;;  %v564_v44 = vshrl.u32 %v7186_v33, 16  ;;  %v567_v47 = vshll.u32 %v7186_v33, 16 }
  0x85   : > { %v557_v43 = vrot.slane %v556_v36, 4  ;;  %5920 = vmatprep.mubr.msk.bf16.mxu1 %vm668_vm3, %v5196_v13  ;;  %v2829_v60 = vsel %vm7050_vm6, %v5472_v32, %v2828_v39  ;;  %v2830_v52 = vrot.slane %v2828_v39, 4  ;;  %v573_v10 = vshll.u32 %v7191_v30, 16  ;;  %v5459_v36 = vld [vmem:[%s6809_s7 + $0x6c] sm:$0xe] }
  0x86   : > { %v577_v49 = vshrl.u32 %v7191_v30, 16  ;;  %v552_v53 = vsel %vm6828_vm2, %v547_v57, %v551_v26  ;;  %v566_v63 = vrot.slane %v564_v44, 4  ;;  %v569_v1 = vrot.slane %v567_v47, 5 }
  0x87   : > { %v562_v61 = vsel %vm6828_vm2, %v557_v43, %v561_v56  ;;  %v2832_v11 = vsel %vm7050_vm6, %v2830_v52, %v2831_v41  ;;  %v575_v59 = vrot.slane %v573_v10, 5  ;;  %v583_v20 = vshll.u32 %v222_v37, 16  ;;  %v5394_v52 = vld [vmem:[%s6809_s7 + $0x74] sm:$0x1] }
  0x88   : > { %v5197_v6 = vcombine.low %v552_v53, %v562_v61  ;;  %v579_v21 = vrot.slane %v577_v49, 4  ;;  %v5490_v23 = vcombine.low %v2829_v60, %v2832_v11  ;;  %v570_v9 = vor.u32 %v569_v1, %v566_v63  ;;  %v5393_v60 = vld [vmem:[%s6809_s7 + $0x70] sm:$0xf] }
  0x89   : > { %v5473_v54 = vrot.slane %v5457_v45, 9  ;;  %v2835_v3 = vrot.slane %v6982_v51, 5  ;;  %v2838_v27 = vrot.slane %v6988_v0, 5  ;;  %v588_v29 = vshrl.u32 %v7201_v62, 16 }
  0x8a   : > { %5921 = vmatmul.mubr.msk.bf16.gmra.mrb[24].mxu1 %vm668_vm3, %v5197_v6  ;;  %v580_v26 = vor.u32 %v579_v21, %v575_v59  ;;  %6075 = vmatmul.mubr.msk.bf16.gmra.mrb[8].mxu0 %vm668_vm3, %v5490_v23  ;;  %v571_v32 = vrot.slane %v570_v9, 4  ;;  %v585_v34 = vrot.slane %v583_v20, 5  ;;  %v591_v22 = vshll.u32 %v7201_v62, 16 }
  0x8b   : > { %v597_v35 = vshll.u32 %v7213_v4, 16  ;;  %v2836_v51 = vsel %vm7050_vm6, %v5473_v54, %v2835_v3  ;;  %v2837_v56 = vrot.slane %v2835_v3, 4  ;;  %v590_v0 = vrot.slane %v588_v29, 4  ;;  %v5460_v54 = vld [vmem:[%s6809_s7 + $0x78] sm:$0xe] }
  0x8c   : > { %v581_v13 = vrot.slane %v580_v26, 4  ;;  %v576_v39 = vsel %vm6828_vm2, %v571_v32, %v575_v59  ;;  %v593_v41 = vrot.slane %v591_v22, 5  ;;  %v601_v45 = vshrl.u32 %v7213_v4, 16  ;;  %v6575_v29 = vld [vmem:[%s6809_s7] sm:$0xf] }
  0x8d   : > { %v599_v37 = vrot.slane %v597_v35, 5  ;;  %v2839_v43 = vsel %vm7050_vm6, %v2837_v56, %v2838_v27  ;;  %v607_v44 = vshll.u32 %v223_v18, 16  ;;  %v5474_v47 = vrot.slane %v5458_v31, 9  ;;  %v7253_v31 = vld [vmem:[%s6809_s7 + $0x4] sm:$0xf] }
  0x8e   : > { %v586_v57 = vsel %vm6828_vm2, %v581_v13, %v585_v34  ;;  %v5491_v49 = vcombine.low %v2836_v51, %v2839_v43  ;;  %v594_v53 = vor.u32 %v593_v41, %v590_v0  ;;  %v603_v61 = vrot.slane %v601_v45, 4  ;;  %v7257_v34 = vld [vmem:[%s6809_s7 + $0x7c] sm:$0xf]  ;;  %v7260_v22 = vld [vmem:[%s6809_s7 + $0x80] sm:$0x1] }
  0x8f   : > { %v5198_v10 = vcombine.low %v576_v39, %v586_v57  ;;  %v609_v63 = vrot.slane %v607_v44, 5  ;;  %v2842_v1 = vrot.slane %v7012_v46, 5  ;;  %v2845_v6 = vrot.slane %v7019_v55, 5  ;;  %v5461_v35 = vld [vmem:[%s6809_s7 + $0x84] sm:$0xe] }
  0x90   : > { %v5475_v11 = vrot.slane %v5459_v36, 9  ;;  %6078 = vmatprep.mubr.msk.bf16.mxu0 %vm668_vm3, %v5491_v49  ;;  %v595_v59 = vrot.slane %v594_v53, 4  ;;  %v604_v21 = vor.u32 %v603_v61, %v599_v37  ;;  %v2849_v23 = vrot.slane %v5393_v60, 5  ;;  %v5399_v0 = vld [vmem:[%s6809_s7 + $0x88] sm:$0xf] }
  0x91   : > { %5924 = vmatprep.mubr.msk.bf16.mxu1 %vm668_vm3, %v5198_v10  ;;  %v2852_v9 = vrot.slane %v5394_v52, 5  ;;  %v2843_v20 = vsel %vm7050_vm6, %v5474_v47, %v2842_v1  ;;  %v2844_v46 = vrot.slane %v2842_v1, 4  ;;  %v5217_v32 = vcombine.low %v6575_v29, %v7253_v31  ;;  %v5400_v39 = vld [vmem:[%s6809_s7 + $0x8c] sm:$0x1]  ;;  %v5402_v45 = vld [vmem:[%s6809_s7 + $0x94] sm:$0xf] }
  0x92   : > { %v600_v55 = vsel %vm6828_vm2, %v595_v59, %v599_v37  ;;  %v605_v18 = vrot.slane %v604_v21, 4  ;;  %v2850_v26 = vsel %vm7050_vm6, %v5475_v11, %v2849_v23  ;;  %v2851_v3 = vrot.slane %v2849_v23, 4  ;;  %v5403_v52 = vld [vmem:[%s6809_s7 + $0x98] sm:$0x1]  ;;  %v5462_v10 = vld [vmem:[%s6809_s7 + $0x90] sm:$0xe] }
  0x93   : > { %v2846_v27 = vsel %vm7050_vm6, %v2844_v46, %v2845_v6  ;;  %v5476_v56 = vrot.slane %v5460_v54, 9  ;;  %v2856_v57 = vrot.slane %v7257_v34, 5  ;;  %v2859_v43 = vrot.slane %v7260_v22, 5  ;;  %v5406_v11 = vld [vmem:[%s6809_s7 + $0xa4] sm:$0x1] }
  0x94   : > { %v610_v36 = vsel %vm6828_vm2, %v605_v18, %v609_v63  ;;  %v5492_v13 = vcombine.low %v2843_v20, %v2846_v27  ;;  %v2853_v51 = vsel %vm7050_vm6, %v2851_v3, %v2852_v9  ;;  %v5477_v44 = vrot.slane %v5461_v35, 9  ;;  %v5405_v63 = vld [vmem:[%s6809_s7 + $0xa0] sm:$0xf]  ;;  %v5463_v59 = vld [vmem:[%s6809_s7 + $0x9c] sm:$0xe] }
  0x95   : > { %v5199_v41 = vcombine.low %v600_v55, %v610_v36  ;;  %v5493_v37 = vcombine.low %v2850_v26, %v2853_v51  ;;  %v2863_v47 = vrot.slane %v5399_v0, 5  ;;  %v2866_v60 = vrot.slane %v5400_v39, 5  ;;  %v6577_v21 = vld [vmem:[%s6809_s7 + $0xc] sm:$0xf]  ;;  %v7287_v23 = vld [vmem:[%s6809_s7 + $0x10] sm:$0xf] }
  0x96   : > { %6079 = vmatmul.mubr.msk.bf16.gmra.mrb[12].mxu0 %vm668_vm3, %v5492_v13  ;;  %v2857_v49 = vsel %vm7050_vm6, %v5476_v56, %v2856_v57  ;;  %v2858_v53 = vrot.slane %v2856_v57, 4  ;;  %v2870_v61 = vrot.slane %v5402_v45, 5  ;;  %v5218_v9 = vcombine.low %v6577_v21, %v7287_v23  ;;  %v6579_v27 = vld [vmem:[%s6809_s7 + $0x18] sm:$0xf]  ;;  %v7296_v29 = vld [vmem:[%s6809_s7 + $0x1c] sm:$0xf] }
  0x97   : > { %5925 = vmatmul.mubr.msk.bf16.gmra.mrb[28].mxu1 %vm668_vm3, %v5199_v41  ;;  %6082 = vmatprep.mubr.msk.bf16.mxu0 %vm668_vm3, %v5493_v37  ;;  %v2864_v1 = vsel %vm7050_vm6, %v5477_v44, %v2863_v47  ;;  %v2865_v6 = vrot.slane %v2863_v47, 4  ;;  %v5478_v46 = vrot.slane %v5462_v10, 9  ;;  %v2873_v54 = vrot.slane %v5403_v52, 5  ;;  %v5408_v51 = vld [vmem:[%s6809_s7 + $0xac] sm:$0xf]  ;;  %v7304_v39 = vld [vmem:[%s8951_s1 + $0x18] sm:$0xff]  }
  0x98   : > { %5930 = vmatprep.mubr.msk.bf16.mxu1 %vm668_vm3, %v5217_v32  ;;  %v2860_v20 = vsel %vm7050_vm6, %v2858_v53, %v2859_v43  ;;  %v2872_v26 = vrot.slane %v2870_v61, 4  ;;  %v2877_v3 = vrot.slane %v5405_v63, 5  ;;  %v5219_v32 = vcombine.low %v6579_v27, %v7296_v29  ;;  %v5411_v0 = vld [vmem:[%s6809_s7 + $0xb8] sm:$0xf]  ;;  %v6581_v57 = vld [vmem:[%s8951_s1 + $0x10] sm:$0xff]  }
  0x99   : > { %v5494_v55 = vcombine.low %v2857_v49, %v2860_v20  ;;  %v2867_v18 = vsel %vm7050_vm6, %v2865_v6, %v2866_v60  ;;  %v5479_v36 = vrot.slane %v5463_v59, 9  ;;  %v2880_v13 = vrot.slane %v5406_v11, 5  ;;  %v5409_v47 = vld [vmem:[%s6809_s7 + $0xb0] sm:$0x1]  ;;  %v5464_v60 = vld [vmem:[%s6809_s7 + $0xa8] sm:$0xe] }
  0x9a   : > { %v5495_v35 = vcombine.low %v2864_v1, %v2867_v18  ;;  %v2879_v56 = vrot.slane %v2877_v3, 4  ;;  %v2871_v41 = vsel %vm7050_vm6, %v5478_v46, %v2870_v61  ;;  %v2874_v37 = vsel %vm7050_vm6, %v2872_v26, %v2873_v54  ;;  %v5412_v10 = vld [vmem:[%s6809_s7 + $0xbc] sm:$0x1]  ;;  %v5465_v49 = vld [vmem:[%s6809_s7 + $0xb4] sm:$0xe] }
  0x9b   : > { %v2884_v45 = vrot.slane %v5408_v51, 5  ;;  %v2878_v43 = vsel %vm7050_vm6, %v5479_v36, %v2877_v3  ;;  %v2891_v52 = vrot.slane %v5411_v0, 5  ;;  %v6582_v53 = vld [vmem:[%s6809_s7 + $0x24] sm:$0xf]  ;;  %v7328_v61 = vld [vmem:[%s6809_s7 + $0x28] sm:$0xf]  ;;  %v5496_v1 = vcombine.low %v2871_v41, %v2874_v37 }
  0x9c   : > { %v2881_v44 = vsel %vm7050_vm6, %v2879_v56, %v2880_v13  ;;  %v5220_v63 = vcombine.low %v6582_v53, %v7328_v61  ;;  %v5414_v6 = vld [vmem:[%s6809_s7 + $0xc4] sm:$0xf]  ;;  %v5480_v59 = vrot.slane %v5464_v60, 9  ;;  %v6584_v20 = vld [vmem:[%s6809_s7 + $0x30] sm:$0xf]  ;;  %v2894_v26 = vrot.slane %v5412_v10, 5 }
  0x9d   : > { %v5497_v11 = vcombine.low %v2878_v43, %v2881_v44  ;;  %v2886_v21 = vrot.slane %v2884_v45, 4  ;;  %v7334_v46 = vld [vmem:[%s6809_s7 + $0x34] sm:$0xf]  ;;  %v2893_v18 = vrot.slane %v2891_v52, 4  ;;  %v5415_v13 = vld [vmem:[%s6809_s7 + $0xc8] sm:$0x1] }
  0x9e   : > { %6083 = vmatmul.mubr.msk.bf16.gmra.mrb[16].mxu0 %vm668_vm3, %v5494_v55  ;;  %v5221_v54 = vcombine.low %v6584_v20, %v7334_v46  ;;  %v5481_v55 = vrot.slane %v5465_v49, 9  ;;  %v2885_v3 = vsel %vm7050_vm6, %v5480_v59, %v2884_v45  ;;  %v5466_v51 = vld [vmem:[%s6809_s7 + $0xc0] sm:$0xe]  ;;  %v6586_v56 = vld [vmem:[%s6809_s7 + $0x3c] sm:$0xf]  ;;  %v2901_v44 = vrot.slane %v5415_v13, 5 }
  0x9f   : > { %5931 = vmatmul.mubr.msk.bf16.vlgmr.msra.gmra.mrb[0].mxu1 %vm668_vm3, %v5218_v9  ;;  %6086 = vmatprep.mubr.msk.bf16.mxu0 %vm668_vm3, %v5495_v35  ;;  %v2887_v9 = vrot.slane %v5409_v47, 5  ;;  %v2895_v36 = vsel %vm7050_vm6, %v2893_v18, %v2894_v26  ;;  %v7353_v0 = vld [vmem:[%s6809_s7 + $0x40] sm:$0xf]  ;;  %v5223_v47 = vcombine.low %v6963_v15, %v6966_v25  ;;  %v2271_v10 = vshll.u32 %v7257_v34, 16  ;;  %v6531_v53 = vld [vmem:[%s6809_s7 + $0x18] sm:$0xff]  }
  0xa0   : > { %5963 = vmatpush3.bf16.msra.mxu1 %v6581_v57  ;;  %5934 = vmatprep.mubr.msk.bf16.mxu1 %vm668_vm3, %v5219_v32  ;;  %v2898_v32 = vrot.slane %v5414_v6, 5  ;;  %v2892_v35 = vsel %vm7050_vm6, %v5481_v55, %v2891_v52  ;;  %v5222_v41 = vcombine.low %v6586_v56, %v7353_v0  ;;  %v5482_v57 = vrot.slane %v5466_v51, 9 }
  0xa1   : > { %5996 = vmatprep.subr.bf16.mxu1 %v7304_v39  ;;  %v2888_v27 = vsel %vm7050_vm6, %v2886_v21, %v2887_v9  ;;  %v5499_v45 = vcombine.low %v2892_v35, %v2895_v36  ;;  %v2275_v15 = vshrl.u32 %v7257_v34, 16  ;;  %v5224_v49 = vcombine.low %v6992_v8, %v6998_v19  ;;  %v1173_v8 = vld [vmem:[%s6809_s7] sm:$0xe]  ;;  %v1174_v19 = vld [vmem:[%s6809_s7 + $0xc] sm:$0xe] }
  0xa2   : > { %v5498_v37 = vcombine.low %v2885_v3, %v2888_v27  ;;  %v2900_v43 = vrot.slane %v2898_v32, 4  ;;  %v2899_v60 = vsel %vm7050_vm6, %v5482_v57, %v2898_v32  ;;  %v1233_v21 = vrot.slane %v7287_v23, 5  ;;  %v1175_v34 = vld [vmem:[%s6809_s7 + $0x18] sm:$0xe]  ;;  %v6534_v27 = vld [vmem:[%s6809_s7 + $0x24] sm:$0xff]   ;;  %v6536_v32 = vld [vmem:[%s6809_s7 + $0x30] sm:$0xff]  }
  0xa3   : > { %v2277_v6 = vrot.slane %v2275_v15, 4  ;;  %v2281_v9 = vshll.u32 %v7260_v22, 16  ;;  %v1226_v23 = vrot.slane %v7253_v31, 5  ;;  %v1240_v20 = vrot.slane %v7296_v29, 5  ;;  %v1177_v36 = vld [vmem:[%s6809_s7 + $0x30] sm:$0xe] }
  0xa4   : > { %v2902_v52 = vsel %vm7050_vm6, %v2900_v43, %v2901_v44  ;;  %v5226_v18 = vcombine.low %v7044_v48, %v7057_v7  ;;  %v1247_v26 = vrot.slane %v7328_v61, 5  ;;  %v1254_v3 = vrot.slane %v7334_v46, 5  ;;  %v6590_v48 = vld [vmem:[%s6809_s7 + $0x20] sm:$0x1]  ;;  %v6591_v57 = vld [vmem:[%s6809_s7 + $0x2c] sm:$0x1] }
  0xa5   : > { %v5500_v25 = vcombine.low %v2899_v60, %v2902_v52  ;;  %v5227_v22 = vcombine.low %v7076_v38, %v7083_v14  ;;  %v5228_v31 = vcombine.low %v7102_v12, %v7110_v24  ;;  %v5250_v29 = vrot.slane %v1173_v8, 9  ;;  %v7405_v46 = vld [vmem:[%s8951_s1 + $0x40] sm:$0xff]  }
  0xa6   : > { %6087 = vmatmul.mubr.msk.bf16.gmra.mrb[20].mxu0 %vm668_vm3, %v5496_v1  ;;  %v7373_v1 = vrot.slane %v2271_v10, 5  ;;  %v5251_v35 = vrot.slane %v1174_v19, 9  ;;  %v1235_v13 = vrot.slane %v1233_v21, 4  ;;  %v5252_v51 = vrot.slane %v1175_v34, 9  ;;  %v6592_v10 = vld [vmem:[%s6809_s7 + $0x38] sm:$0x1] }
  0xa7   : > { %5935 = vmatmul.mubr.msk.bf16.gmra.mrb[4].mxu1 %vm668_vm3, %v5220_v63  ;;  %6090 = vmatprep.mubr.msk.bf16.mxu0 %vm668_vm3, %v5497_v11  ;;  %v5225_v63 = vcombine.low %v7023_v5, %v7029_v17  ;;  %v6588_v11 = vld [vmem:[%s6809_s7 + $0x8] sm:$0x1]  ;;  %v6589_v5 = vld [vmem:[%s6809_s7 + $0x14] sm:$0x1]  ;;  %v1243_v7 = vrot.slane %v6590_v48, 5  ;;  %v5229_v38 = vcombine.low %v7134_v50, %v7139_v58  ;;  %v5230_v14 = vcombine.low %v7162_v40, %v7167_v42 }
  0xa8   : > { %5938 = vmatprep.mubr.msk.bf16.mxu1 %vm668_vm3, %v5221_v54  ;;  %8971 = vst [vmem:[#allocation5_spill] sm:$0xff] %v7373_v1  ;;  %v1229_v59 = vrot.slane %v6588_v11, 5  ;;  %v1236_v17 = vrot.slane %v6589_v5, 5  ;;  %v1176_v54 = vld [vmem:[%s6809_s7 + $0x24] sm:$0xe]  ;;  %v2278_v55 = vor.u32 %v2277_v6, %v7373_v1  ;;  %v1228_v56 = vrot.slane %v1226_v23, 4 }
  0xa9   : > { %v5253_v61 = vrot.slane %v1176_v54, 9  ;;  %v1250_v43 = vrot.slane %v6591_v57, 5  ;;  %v5254_v44 = vrot.slane %v1177_v36, 9  ;;  %v5231_v60 = vcombine.low %v7186_v33, %v7191_v30  ;;  %v1179_v6 = vld [vmem:[%s6809_s7 + $0x48] sm:$0xe]  ;;  %v6542_v58 = vld [vmem:[%s6809_s7 + $0x54] sm:$0xff]  }
  0xaa   : > { %v7418_v52 = vsel %vm7050_vm6, %v5250_v29, %v1226_v23  ;;  %v1257_v15 = vrot.slane %v6592_v10, 5  ;;  %v7439_v11 = vrot.slane %v2278_v55, 4  ;;  %v5585_v34 = vld [vmem:[%s6809_s7 + $0x18] sm:$0xf]  ;;  %v6540_v5 = vld [vmem:[%s6809_s7 + $0x48] sm:$0xff]  }
  0xab   : > { %v7454_v19 = vsel %vm7050_vm6, %v5253_v61, %v1247_v26  ;;  %v6593_v23 = vld [vmem:[%s6809_s7 + $0x44] sm:$0x1]  ;;  %v1180_v55 = vld [vmem:[%s6809_s7 + $0x54] sm:$0xe]  ;;  %v3616_v48 = vshll.u32 %v5585_v34, 16 }
  0xac   : > { %8973 = vst [vmem:[#allocation7_spill] sm:$0xff] %v7439_v11  ;;  %v5257_v10 = vrot.slane %v1180_v55, 9  ;;  %v5591_v55 = vld [vmem:[%s6809_s7 + $0x30] sm:$0xf]  ;;  %v5592_v50 = vld [vmem:[%s6809_s7 + $0x34] sm:$0xf] }
  0xad   : > { %v3618_v24 = vrot.slane %v3616_v48, 5 }
  0xae   : > { %6091 = vmatmul.mubr.msk.bf16.gmra.mrb[24].mxu0 %vm668_vm3, %v5498_v37  ;;  %v1178_v37 = vld [vmem:[%s6809_s7 + $0x3c] sm:$0xe] }
  0xaf   : > { %5939 = vmatmul.mubr.msk.bf16.gmra.mrb[8].mxu1 %vm668_vm3, %v5222_v41  ;;  %6094 = vmatprep.mubr.msk.bf16.mxu0 %vm668_vm3, %v5499_v45  ;;  %v1242_v41 = vrot.slane %v1240_v20, 4  ;;  %v1249_v45 = vrot.slane %v1247_v26, 4 }
  0xb0   : > { %5942 = vmatprep.mubr.msk.bf16.mxu1 %vm668_vm3, %v5223_v47  ;;  %v1256_v47 = vrot.slane %v1254_v3, 4 }
  0xb1   : > { %v7450_v8 = vsel %vm7050_vm6, %v1242_v41, %v1243_v7  ;;  %v7469_v26 = vsel %vm7050_vm6, %v1249_v45, %v1250_v43  ;;  %v6595_v45 = vld [vmem:[%s6809_s7 + $0x50] sm:$0x1]  ;;  %v3670_v41 = vshll.u32 %v5592_v50, 16 }
  0xb2   : > { %v1271_v57 = vrot.slane %v6595_v45, 5  ;;  %v8981_v11 = vcombine.low %v7454_v19, %v7469_v26 }
  0xb6   : > { %6095 = vmatmul.mubr.msk.bf16.gmra.mrb[28].mxu0 %vm668_vm3, %v5500_v25  ;;  %v1261_v25 = vrot.slane %v7353_v0, 5  ;;  %v7436_v0 = vsel %vm7050_vm6, %v5252_v51, %v1240_v20  ;;  %v1264_v20 = vrot.slane %v6593_v23, 5  ;;  %v3613_v51 = vshrl.u32 %v5585_v34, 16  ;;  %v7513_v34 = vld [vmem:[%s6809_s7 + $0x5c] sm:$0x1] }
  0xb7   : > { %5943 = vmatmul.mubr.msk.bf16.gmra.mrb[12].mxu1 %vm668_vm3, %v5224_v49  ;;  %6100 = vmatprep.mubr.msk.bf16.mxu0 %vm668_vm3, %v6531_v53  ;;  %v7422_v49 = vrot.slane %v2281_v9, 5  ;;  %v7428_v53 = vsel %vm7050_vm6, %v5251_v35, %v1233_v21  ;;  %v7446_v21 = vsel %vm7050_vm6, %v1228_v56, %v1229_v59  ;;  %v5255_v9 = vrot.slane %v1178_v37, 9  ;;  %v6594_v59 = vld [vmem:[%s6809_s7 + $0x4c] sm:$0xf] }
  0xb8   : > { %5946 = vmatprep.mubr.msk.bf16.mxu1 %vm668_vm3, %v5225_v63  ;;  %v7432_v63 = vsel %vm7050_vm6, %v1235_v13, %v1236_v17  ;;  %v7460_v17 = vsel %vm7050_vm6, %v5254_v44, %v1254_v3  ;;  %v1268_v54 = vrot.slane %v6594_v59, 5  ;;  %v1263_v3 = vrot.slane %v1261_v25, 4  ;;  %v7484_v13 = vld [vmem:[%s6809_s7 + $0x60] sm:$0xe] }
  0xb9   : > { %8972 = vst [vmem:[#allocation6_spill] sm:$0xff] %v7422_v49  ;;  %v7494_v43 = vsel %vm7050_vm6, %v5255_v9, %v1261_v25  ;;  %v6596_v25 = vld [vmem:[%s6809_s7 + $0x58] sm:$0xf]  ;;  %v1278_v9 = vrot.slane %v7513_v34, 5  ;;  %v5258_v23 = vrot.slane %v7484_v13, 9  ;;  %v3615_v12 = vrot.slane %v3613_v51, 4 }
  0xba   : > { %v1270_v37 = vrot.slane %v1268_v54, 4  ;;  %v7498_v44 = vsel %vm7050_vm6, %v1263_v3, %v1264_v20  ;;  %v6598_v20 = vld [vmem:[%s6809_s7 + $0x64] sm:$0xf]  ;;  %v6599_v34 = vld [vmem:[%s6809_s7 + $0x70] sm:$0xf]  ;;  %v3674_v56 = vshrl.u32 %v5592_v50, 16 }
  0xbb   : > { %v1282_v59 = vrot.slane %v6598_v20, 5  ;;  %v1289_v20 = vrot.slane %v6599_v34, 5  ;;  %v5590_v34 = vld [vmem:[%s6809_s7 + $0x2c] sm:$0x1] }
  0xbc   : > { %v7530_v3 = vsel %vm7050_vm6, %v1270_v37, %v1271_v57  ;;  %v3661_v37 = vshrl.u32 %v5591_v55, 16  ;;  %v3664_v57 = vshll.u32 %v5591_v55, 16 }
  0xbd   : > { %v1284_v36 = vrot.slane %v1282_v59, 4 }
  0xbe   : > { %6101 = vmatmul.mubr.msk.bf16.vlgmr.msra.gmra.mrb[0].mxu0 %vm668_vm3, %v6534_v27  ;;  %v7473_v27 = vsel %vm7050_vm6, %v1256_v47, %v1257_v15  ;;  %v5587_v15 = vld [vmem:[%s6809_s7 + $0x20] sm:$0x1]  ;;  %v3666_v50 = vrot.slane %v3664_v57, 5  ;;  %v6548_v57 = vld [vmem:[%s6809_s7 + $0x78] sm:$0xff]  }
  0xbf   : > { %5947 = vmatmul.mubr.msk.bf16.gmra.mrb[16].mxu1 %vm668_vm3, %v5226_v18  ;;  %6133 = vmatpush3.bf16.msra.mxu0 %v7115_v16  ;;  %v6538_v16 = vld [vmem:[%s6809_s7 + $0x3c] sm:$0xff]   ;;  %v3632_v48 = vshll.u32 %v5587_v15, 16 }
  0xc0   : > { %5950 = vmatprep.mubr.msk.bf16.mxu1 %vm668_vm3, %v5227_v22  ;;  %6104 = vmatprep.mubr.msk.bf16.mxu0 %vm668_vm3, %v6536_v32  ;;  %v5586_v18 = vld [vmem:[%s6809_s7 + $0x1c] sm:$0xf]  ;;  %v5256_v22 = vrot.slane %v1179_v6, 9  ;;  %v5588_v6 = vld [vmem:[%s6809_s7 + $0x24] sm:$0xf] }
  0xc1   : > { %6166 = vmatprep.subr.bf16.mxu0 %v7405_v46  ;;  %v3622_v7 = vshll.u32 %v5586_v18, 16  ;;  %v3626_v61 = vshrl.u32 %v5586_v18, 16  ;;  %v3640_v13 = vshll.u32 %v5588_v6, 16  ;;  %v3619_v18 = vor.u32 %v3618_v24, %v3615_v12 }
  0xc2   : > { %v7502_v47 = vsel %vm7050_vm6, %v5256_v22, %v1268_v54  ;;  %v5589_v54 = vld [vmem:[%s6809_s7 + $0x28] sm:$0xf]  ;;  %v3637_v22 = vshrl.u32 %v5588_v6, 16  ;;  %v1291_v24 = vrot.slane %v1289_v20, 4 }
  0xc3   : > { %v3642_v29 = vrot.slane %v3640_v13, 5  ;;  %v3663_v13 = vrot.slane %v3661_v37, 4  ;;  %v3620_v40 = vrot.slane %v3619_v18, 4 }
  0xc4   : > { %v3639_v15 = vrot.slane %v3637_v22, 4  ;;  %v5593_v22 = vld [vmem:[%s6809_s7 + $0x38] sm:$0x1] }
  0xc5   : > { %v3680_v37 = vshll.u32 %v5593_v22, 16 }
  0xc6   : > { %6105 = vmatmul.mubr.msk.bf16.gmra.mrb[4].mxu0 %vm668_vm3, %v6538_v16  ;;  %v1275_v16 = vrot.slane %v6596_v25, 5  ;;  %v1182_v25 = vld [vmem:[%s6809_s7 + $0x6c] sm:$0xe] }
  0xc7   : > { %5951 = vmatmul.mubr.msk.bf16.gmra.mrb[20].mxu1 %vm668_vm3, %v5228_v31  ;;  %6108 = vmatprep.mubr.msk.bf16.mxu0 %vm668_vm3, %v6540_v5  ;;  %v7523_v31 = vrot.slane %v3622_v7, 5  ;;  %v3628_v5 = vrot.slane %v3626_v61, 4  ;;  %v3646_v7 = vshll.u32 %v5589_v54, 16  ;;  %v3650_v61 = vshrl.u32 %v5589_v54, 16 }
  0xc8   : > { %5954 = vmatprep.mubr.msk.bf16.mxu1 %vm668_vm3, %v5229_v38  ;;  %v6544_v38 = vld [vmem:[%s6809_s7 + $0x60] sm:$0xff]   ;;  %v7537_v51 = vsel %vm7050_vm6, %v5257_v10, %v1275_v16  ;;  %v1277_v45 = vrot.slane %v1275_v16, 4  ;;  %v6600_v10 = vld [vmem:[%s6809_s7 + $0x68] sm:$0x1]  ;;  %v7544_v16 = vrot.slane %v3632_v48, 5  ;;  %v5259_v54 = vrot.slane %v1182_v25, 9 }
  0xc9   : > { %v3629_v6 = vor.u32 %v3628_v5, %v7523_v31  ;;  %v1285_v35 = vrot.slane %v6600_v10, 5  ;;  %v7547_v32 = vrot.slane %v3646_v7, 5  ;;  %v3652_v12 = vrot.slane %v3650_v61, 4  ;;  %v6601_v5 = vld [vmem:[%s6809_s7 + $0x74] sm:$0x1]  ;;  %v6546_v25 = vld [vmem:[%s6809_s7 + $0x6c] sm:$0xff]  }
  0xca   : > { %v1292_v55 = vrot.slane %v6601_v5, 5  ;;  %v7566_v48 = vsel %vm7050_vm6, %v5258_v23, %v1282_v59  ;;  %v3643_v7 = vor.u32 %v3642_v29, %v3639_v15  ;;  %v3656_v61 = vshll.u32 %v5590_v34, 16  ;;  %v6603_v10 = vld [vmem:[%s6809_s7 + $0x88] sm:$0xf] }
  0xcb   : > { %v3630_v42 = vrot.slane %v3629_v6, 4  ;;  %v7571_v33 = vsel %vm7050_vm6, %v1277_v45, %v1278_v9  ;;  %v7579_v23 = vsel %vm7050_vm6, %v1284_v36, %v1285_v35  ;;  %v7583_v29 = vsel %vm7050_vm6, %v5259_v54, %v1289_v20  ;;  %v1184_v45 = vld [vmem:[%s6809_s7 + $0x84] sm:$0xe]  ;;  %v5594_v20 = vld [vmem:[%s6809_s7 + $0x3c] sm:$0xf] }
  0xcc   : > { %v7587_v9 = vsel %vm7050_vm6, %v1291_v24, %v1292_v55  ;;  %v3667_v59 = vor.u32 %v3666_v50, %v3663_v13  ;;  %v3625_v6 = vsel %vm6828_vm2, %v3620_v40, %v7523_v31  ;;  %v1303_v15 = vrot.slane %v6603_v10, 5  ;;  %v6604_v24 = vld [vmem:[%s6809_s7 + $0x80] sm:$0x1] }
  0xcd   : > { %v3635_v35 = vsel %vm6828_vm2, %v3630_v42, %v7544_v16  ;;  %v3644_v54 = vrot.slane %v3643_v7, 4  ;;  %v3658_v34 = vrot.slane %v3656_v61, 5  ;;  %v1299_v5 = vrot.slane %v6604_v24, 5  ;;  %v7601_v55 = vld [vmem:[%s6809_s7 + $0x40] sm:$0xf] }
  0xce   : > { %6109 = vmatmul.mubr.msk.bf16.gmra.mrb[8].mxu0 %vm668_vm3, %v6542_v58  ;;  %v3676_v58 = vrot.slane %v3674_v56, 4  ;;  %v1183_v56 = vld [vmem:[%s6809_s7 + $0x78] sm:$0xe]  ;;  %8974 = vst [vmem:[#allocation8_spill] sm:$0xff] %v7601_v55  ;;  %v3682_v13 = vrot.slane %v3680_v37, 5  ;;  %v5261_v16 = vrot.slane %v1184_v45, 9  ;;  %v8975_v50 = vcombine.low %v7201_v62, %v7213_v4 }
  0xcf   : > { %5955 = vmatmul.mubr.msk.bf16.gmra.mrb[24].mxu1 %vm668_vm3, %v5230_v14  ;;  %6112 = vmatprep.mubr.msk.bf16.mxu0 %vm668_vm3, %v6544_v38  ;;  %v7560_v14 = vrot.slane %v3670_v41, 5  ;;  %v6602_v41 = vld [vmem:[%s6809_s7 + $0x7c] sm:$0xf]  ;;  %v3668_v40 = vrot.slane %v3667_v59, 4  ;;  %v6605_v42 = vld [vmem:[%s6809_s7 + $0x8c] sm:$0x1]  ;;  %v3649_v45 = vsel %vm6828_vm2, %v3644_v54, %v7547_v32 }
  0xd0   : > { %5958 = vmatprep.mubr.msk.bf16.mxu1 %vm668_vm3, %v5231_v60  ;;  %v3653_v60 = vor.u32 %v3652_v12, %v7547_v32  ;;  %v1296_v18 = vrot.slane %v6602_v41, 5  ;;  %v5260_v12 = vrot.slane %v1183_v56, 9  ;;  %v3685_v7 = vshrl.u32 %v5594_v20, 16  ;;  %v6549_v41 = vld [vmem:[%s6809_s7 + $0x84] sm:$0xff]   ;;  %v6550_v59 = vld [vmem:[%s6809_s7 + $0x90] sm:$0xff]  }
  0xd1   : > { %v3677_v36 = vor.u32 %v3676_v58, %v7560_v14  ;;  %v1306_v58 = vrot.slane %v6605_v42, 5  ;;  %v3688_v61 = vshll.u32 %v5594_v20, 16  ;;  %v1305_v56 = vrot.slane %v1303_v15, 4  ;;  %v7641_v20 = vld [vmem:[%s6809_s7 + $0x4c] sm:$0xf] }
  0xd2   : > { %v3654_v31 = vrot.slane %v3653_v60, 4  ;;  %v1298_v22 = vrot.slane %v1296_v18, 4  ;;  %v3694_v62 = vshll.u32 %v7601_v55, 16  ;;  %v3698_v4 = vshrl.u32 %v7601_v55, 16  ;;  %v7719_v37 = vld [vmem:[%s6809_s7 + $0x5c] sm:$0x1] }
  0xd3   : > { %v3678_v60 = vrot.slane %v3677_v36, 4  ;;  %v7633_v10 = vsel %vm7050_vm6, %v5260_v12, %v1296_v18  ;;  %v3673_v24 = vsel %vm6828_vm2, %v3668_v40, %v7560_v14  ;;  %v7648_v32 = vsel %vm7050_vm6, %v5261_v16, %v1303_v15  ;;  %v7652_v18 = vld [vmem:[%s6809_s7 + $0x58] sm:$0xf]  ;;  %v7666_v40 = vld [vmem:[%s6809_s7 + $0x90] sm:$0xe] }
  0xd4   : > { %v3659_v36 = vsel %vm6828_vm2, %v3654_v31, %v3658_v34  ;;  %v3687_v54 = vrot.slane %v3685_v7, 4  ;;  %v3690_v34 = vrot.slane %v3688_v61, 5  ;;  %v5600_v31 = vld [vmem:[%s6809_s7 + $0x54] sm:$0xf]  ;;  %v3700_v14 = vrot.slane %v3698_v4, 4 }
  0xd5   : > { %v3683_v12 = vsel %vm6828_vm2, %v3678_v60, %v3682_v13  ;;  %v3718_v42 = vshll.u32 %v7641_v20, 16  ;;  %v3722_v7 = vshrl.u32 %v7641_v20, 16  ;;  %v3733_v13 = vshrl.u32 %v5600_v31, 16  ;;  %v1186_v38 = vld [vmem:[%s6809_s7 + $0x9c] sm:$0xe] }
  0xd6   : > { %6113 = vmatmul.mubr.msk.bf16.gmra.mrb[12].mxu0 %vm668_vm3, %v6546_v25  ;;  %v8976_v25 = vcombine.low %v7418_v52, %v7446_v21  ;;  %v7621_v52 = vcombine.low %v3625_v6, %v3635_v35  ;;  %v7637_v6 = vsel %vm7050_vm6, %v1298_v22, %v1299_v5  ;;  %v5597_v35 = vld [vmem:[%s6809_s7 + $0x48] sm:$0xf]  ;;  %v7658_v5 = vsel %vm7050_vm6, %v1305_v56, %v1306_v58  ;;  %v7661_v22 = vld [vmem:[%s6809_s7 + $0x44] sm:$0x1] }
  0xd7   : > { %5959 = vmatmul.mubr.msk.bf16.gmra.mrb[28].mxu1 %vm668_vm3, %v8975_v50  ;;  %6116 = vmatprep.mubr.msk.bf16.mxu0 %vm668_vm3, %v6548_v57  ;;  %8977 = vst [vmem:[#allocation9_spill] sm:$0xff] %v7661_v22  ;;  %v7663_v50 = vrot.slane %v3694_v62, 5  ;;  %v3709_v15 = vshrl.u32 %v5597_v35, 16  ;;  %v3712_v16 = vshll.u32 %v5597_v35, 16  ;;  %v3736_v61 = vshll.u32 %v5600_v31, 16 }
  0xd8   : > { %5964 = vmatprep.mubr.msk.bf16.mxu1 %vm668_vm3, %v8976_v25  ;;  %v3742_v58 = vshll.u32 %v7652_v18, 16  ;;  %v3746_v25 = vshrl.u32 %v7652_v18, 16  ;;  %v8978_v60 = vcombine.low %v7428_v53, %v7432_v63  ;;  %v7678_v56 = vcombine.low %v3649_v45, %v3659_v36  ;;  %v7695_v35 = vld [vmem:[%s6809_s7 + $0x50] sm:$0x1]  ;;  %v6608_v62 = vld [vmem:[%s6809_s7 + $0x98] sm:$0x1] }
  0xd9   : > { %v7682_v4 = vcombine.low %v3673_v24, %v3683_v12  ;;  %v8979_v53 = vcombine.low %v7436_v0, %v7450_v8  ;;  %v3701_v45 = vor.u32 %v3700_v14, %v7663_v50  ;;  %v5603_v24 = vld [vmem:[%s6809_s7 + $0x60] sm:$0xf]  ;;  %v3711_v31 = vrot.slane %v3709_v15, 4  ;;  %v7701_v8 = vld [vmem:[%s6809_s7 + $0x64] sm:$0xf]  ;;  %v6552_v14 = vld [vmem:[%s6809_s7 + $0xa8] sm:$0xff]  }
  0xda   : > { %v7698_v12 = vrot.slane %v3718_v42, 5  ;;  %v3724_v0 = vrot.slane %v3722_v7, 4  ;;  %v3738_v15 = vrot.slane %v3736_v61, 5  ;;  %v6607_v7 = vld [vmem:[%s6809_s7 + $0x94] sm:$0xf]  ;;  %v1313_v21 = vrot.slane %v6608_v62, 5 }
  0xdb   : > { %v1310_v63 = vrot.slane %v6607_v7, 5  ;;  %v3728_v57 = vshll.u32 %v7695_v35, 16  ;;  %v3757_v36 = vshrl.u32 %v5603_v24, 16  ;;  %v3770_v61 = vshrl.u32 %v7701_v8, 16  ;;  %v6609_v7 = vld [vmem:[%s6809_s7 + $0xa0] sm:$0xf] }
  0xdc   : > { %v1317_v55 = vrot.slane %v6609_v7, 5  ;;  %v3702_v62 = vrot.slane %v3701_v45, 4  ;;  %v1324_v45 = vrot.slane %v7191_v30, 5  ;;  %v7746_v7 = vld [vmem:[%s6809_s7 + $0x68] sm:$0x1]  ;;  %v6553_v30 = vld [vmem:[%s6809_s7 + $0xb4] sm:$0xff]  }
  0xdd   : > { %v3759_v19 = vrot.slane %v3757_v36, 4  ;;  %8983 = vst [vmem:[#allocation11_spill] sm:$0xff] %v7746_v7  ;;  %v6554_v36 = vld [vmem:[%s6809_s7 + $0xc0] sm:$0xff]  }
  0xde   : > { %6117 = vmatmul.mubr.msk.bf16.gmra.mrb[16].mxu0 %vm668_vm3, %v6549_v41  ;;  %v3704_v41 = vshll.u32 %v7661_v22, 16  ;;  %v3760_v22 = vshll.u32 %v5603_v24, 16  ;;  %v3752_v24 = vshll.u32 %v7719_v37, 16 }
  0xdf   : > { %5965 = vmatmul.mubr.msk.bf16.vlgmr.msra.gmra.mrb[0].mxu1 %vm668_vm3, %v8978_v60  ;;  %6120 = vmatprep.mubr.msk.bf16.mxu0 %vm668_vm3, %v6550_v59  ;;  %v3691_v59 = vor.u32 %v3690_v34, %v3687_v54  ;;  %v7706_v54 = vld [vmem:[%s8951_s1 + $0x20] sm:$0xff]   ;;  %v3735_v60 = vrot.slane %v3733_v13, 4  ;;  %v3766_v13 = vshll.u32 %v7701_v8, 16 }
  0xe0   : > { %5997 = vmatpush3.bf16.msra.mxu1 %v7304_v39  ;;  %5968 = vmatprep.mubr.msk.bf16.mxu1 %vm668_vm3, %v8979_v53  ;;  %v3714_v39 = vrot.slane %v3712_v16, 5  ;;  %8980 = vst [vmem:[#allocation10_spill] sm:$0xff] %v7706_v54  ;;  %v6551_v34 = vld [vmem:[%s6809_s7 + $0x9c] sm:$0xff]   ;;  %v7711_v53 = vrot.slane %v3742_v58, 5  ;;  %v3748_v16 = vrot.slane %v3746_v25, 4  ;;  %v7713_v42 = vrot.slane %v3704_v41, 5 }
  0xe1   : > { %6200 = vmatprep.subr.bf16.mxu1 %v7706_v54  ;;  %v7724_v58 = vrot.slane %v3691_v59, 4  ;;  %v3725_v41 = vor.u32 %v3724_v0, %v7698_v12  ;;  %v3739_v54 = vor.u32 %v3738_v15, %v3735_v60  ;;  %v1312_v59 = vrot.slane %v1310_v63, 4  ;;  %v1187_v0 = vld [vmem:[%s6809_s7 + $0xa8] sm:$0xe] }
  0xe2   : > { %v3715_v25 = vor.u32 %v3714_v39, %v3711_v31  ;;  %v3749_v1 = vor.u32 %v3748_v16, %v7711_v53  ;;  %v3730_v31 = vrot.slane %v3728_v57, 5  ;;  %v5263_v39 = vrot.slane %v1186_v38, 9  ;;  %v6610_v57 = vld [vmem:[%s6809_s7 + $0xa4] sm:$0x1] }
  0xe3   : > { %v3762_v26 = vrot.slane %v3760_v22, 5  ;;  %v7742_v60 = vrot.slane %v3766_v13, 5  ;;  %v3726_v15 = vrot.slane %v3725_v41, 4  ;;  %v1319_v16 = vrot.slane %v1317_v55, 4  ;;  %v6611_v41 = vld [vmem:[%s6809_s7 + $0xb0] sm:$0x1] }
  0xe4   : > { %v1320_v38 = vrot.slane %v6610_v57, 5  ;;  %v5264_v49 = vrot.slane %v1187_v0, 9  ;;  %v3697_v22 = vsel %vm6828_vm2, %v7724_v58, %v7663_v50  ;;  %v8984_v13 = vrot.slane %v7666_v40, 9  ;;  %v1188_v50 = vld [vmem:[%s6809_s7 + $0xb4] sm:$0xe] }
  0xe5   : > { %v1327_v57 = vrot.slane %v6611_v41, 5  ;;  %v3776_v0 = vshll.u32 %v7746_v7, 16  ;;  %v5606_v58 = vld [vmem:[%s6809_s7 + $0x6c] sm:$0xf]  ;;  %v7770_v40 = vsel %vm7050_vm6, %v1312_v59, %v1313_v21  ;;  %v8986_v59 = vcombine.low %v7494_v43, %v7498_v44 }
  0xe6   : > { %6121 = vmatmul.mubr.msk.bf16.gmra.mrb[20].mxu0 %vm668_vm3, %v6551_v34  ;;  %v8982_v34 = vcombine.low %v7460_v17, %v7473_v27  ;;  %v3740_v17 = vrot.slane %v3739_v54, 4  ;;  %v3750_v27 = vrot.slane %v3749_v1, 4  ;;  %v3707_v1 = vsel %vm6828_vm2, %v3702_v62, %v7713_v42 }
  0xe7   : > { %5969 = vmatmul.mubr.msk.bf16.gmra.mrb[4].mxu1 %vm668_vm3, %v8981_v11  ;;  %6124 = vmatprep.mubr.msk.bf16.mxu0 %vm668_vm3, %v6552_v14  ;;  %v3772_v11 = vrot.slane %v3770_v61, 4  ;;  %v3716_v14 = vrot.slane %v3715_v25, 4  ;;  %v7758_v61 = vsel %vm7050_vm6, %v8984_v13, %v1310_v63  ;;  %v1326_v25 = vrot.slane %v1324_v45, 4 }
  0xe8   : > { %5972 = vmatprep.mubr.msk.bf16.mxu1 %vm668_vm3, %v8982_v34  ;;  %v3754_v34 = vrot.slane %v3752_v24, 5  ;;  %v3763_v54 = vor.u32 %v3762_v26, %v3759_v19  ;;  %v7777_v42 = vsel %vm7050_vm6, %v5263_v39, %v1317_v55  ;;  %v7781_v62 = vsel %vm7050_vm6, %v1319_v16, %v1320_v38  ;;  %v6612_v39 = vld [vmem:[%s6809_s7 + $0xb8] sm:$0xf] }
  0xe9   : > { %v3773_v24 = vor.u32 %v3772_v11, %v7742_v60  ;;  %v3721_v63 = vsel %vm6828_vm2, %v3716_v14, %v7698_v12  ;;  %v3731_v19 = vsel %vm6828_vm2, %v3726_v15, %v3730_v31  ;;  %v3745_v21 = vsel %vm6828_vm2, %v3740_v17, %v7711_v53  ;;  %v7830_v17 = vld [vmem:[%s6809_s7 + $0x7c] sm:$0xf] }
  0xea   : > { %v3755_v12 = vsel %vm6828_vm2, %v3750_v27, %v3754_v34  ;;  %v7793_v55 = vsel %vm7050_vm6, %v5264_v49, %v1324_v45  ;;  %v7802_v31 = vsel %vm7050_vm6, %v1326_v25, %v1327_v57  ;;  %v5265_v53 = vrot.slane %v1188_v50, 9  ;;  %v7806_v49 = vld [vmem:[%s6809_s7 + $0x70] sm:$0xf]  ;;  %8990 = vst [vmem:[#allocation15_spill] sm:$0xff] %v7830_v17  ;;  %v5612_v27 = vld [vmem:[%s6809_s7 + $0x84] sm:$0xf] }
  0xeb   : > { %8985 = vst [vmem:[#allocation12_spill] sm:$0xff] %v7793_v55  ;;  %8987 = vst [vmem:[#allocation13_spill] sm:$0xff] %v7802_v31  ;;  %v1331_v26 = vrot.slane %v6612_v39, 5  ;;  %v3781_v45 = vshrl.u32 %v5606_v58, 16  ;;  %v8989_v43 = vcombine.low %v7502_v47, %v7530_v3  ;;  %v7812_v44 = vcombine.low %v3697_v22, %v3707_v1  ;;  %v5609_v3 = vld [vmem:[%s6809_s7 + $0x78] sm:$0xf] }
  0xec   : > { %8988 = vst [vmem:[#allocation14_spill] sm:$0xff] %v7806_v49  ;;  %v7814_v11 = vrot.slane %v3763_v54, 4  ;;  %v7816_v14 = vrot.slane %v3773_v24, 4  ;;  %v7818_v15 = vrot.slane %v3776_v0, 5  ;;  %v7822_v38 = vcombine.low %v3721_v63, %v3731_v19  ;;  %v6555_v34 = vld [vmem:[%s6809_s7 + $0xcc] sm:$0xff]  }
  0xed   : > { %v7826_v47 = vcombine.low %v3745_v21, %v3755_v12  ;;  %v7837_v22 = vld [vmem:[%s6809_s7 + $0xbc] sm:$0x1]  ;;  %v3784_v25 = vshll.u32 %v5606_v58, 16  ;;  %v3790_v41 = vshll.u32 %v7806_v49, 16  ;;  %v7842_v57 = vld [vmem:[%s6809_s7 + $0x88] sm:$0xf]  ;;  %v7846_v1 = vsel %vm7050_vm6, %v5265_v53, %v1331_v26 }
  0xee   : > { %6125 = vmatmul.mubr.msk.bf16.gmra.mrb[24].mxu0 %vm668_vm3, %v6553_v30  ;;  %8991 = vst [vmem:[#allocation16_spill] sm:$0xff] %v7842_v57  ;;  %v7848_v54 = vrot.slane %v1331_v26, 4  ;;  %v7850_v24 = vrot.slane %v3781_v45, 4  ;;  %v3794_v0 = vshrl.u32 %v7806_v49, 16  ;;  %v5615_v50 = vld [vmem:[%s6809_s7 + $0x90] sm:$0xf]  ;;  %v8994_v58 = vcombine.low %v7537_v51, %v7571_v33 }
  0xef   : > { %5973 = vmatmul.mubr.msk.bf16.gmra.mrb[8].mxu1 %vm668_vm3, %v8986_v59  ;;  %6128 = vmatprep.mubr.msk.bf16.mxu0 %vm668_vm3, %v6554_v36  ;;  %v3805_v19 = vshrl.u32 %v5609_v3, 16  ;;  %v3808_v21 = vshll.u32 %v5609_v3, 16  ;;  %v7863_v12 = vld [vmem:[%s6809_s7 + $0x94] sm:$0xf]  ;;  %v3814_v53 = vshll.u32 %v7830_v17, 16  ;;  %v3818_v39 = vshrl.u32 %v7830_v17, 16 }
  0xf0   : > { %5976 = vmatprep.mubr.msk.bf16.mxu1 %vm668_vm3, %v8989_v43  ;;  %8992 = vst [vmem:[#allocation17_spill] sm:$0xff] %v7863_v12  ;;  %v7866_v59 = vld [vmem:[%s6809_s7 + $0x74] sm:$0x1]  ;;  %v3829_v26 = vshrl.u32 %v5612_v27, 16  ;;  %v3832_v45 = vshll.u32 %v5612_v27, 16  ;;  %v3838_v43 = vshll.u32 %v7842_v57, 16 }
  0xf1   : > { %8993 = vst [vmem:[#allocation18_spill] sm:$0xff] %v7866_v59  ;;  %v3842_v36 = vshrl.u32 %v7842_v57, 16  ;;  %v3853_v30 = vshrl.u32 %v5615_v50, 16  ;;  %v3856_v3 = vshll.u32 %v5615_v50, 16  ;;  %v3786_v63 = vrot.slane %v3784_v25, 5 }
  0xf2   : > { %v7879_v27 = vrot.slane %v3790_v41, 5  ;;  %v3862_v16 = vshll.u32 %v7863_v12, 16  ;;  %v3866_v13 = vshrl.u32 %v7863_v12, 16  ;;  %v8995_v50 = vcombine.low %v7566_v48, %v7579_v23  ;;  %v5618_v41 = vld [vmem:[%s6809_s7 + $0x9c] sm:$0xf] }
  0xf3   : > { %v3796_v51 = vrot.slane %v3794_v0, 4  ;;  %v3800_v33 = vshll.u32 %v7866_v59, 16  ;;  %v3810_v25 = vrot.slane %v3808_v21, 5  ;;  %v3820_v57 = vrot.slane %v3818_v39, 4  ;;  %v7895_v17 = vld [vmem:[%s6809_s7 + $0x8c] sm:$0x1] }
  0xf4   : > { %v3831_v49 = vrot.slane %v3829_v26, 4  ;;  %v3834_v12 = vrot.slane %v3832_v45, 5  ;;  %v7897_v31 = vrot.slane %v3838_v43, 5  ;;  %v3844_v48 = vrot.slane %v3842_v36, 4  ;;  %v7903_v0 = vld [vmem:[%s6809_s7 + $0x98] sm:$0x1] }
  0xf5   : > { %v3855_v23 = vrot.slane %v3853_v30, 4  ;;  %v3858_v55 = vrot.slane %v3856_v3, 5  ;;  %v7905_v59 = vrot.slane %v3862_v16, 5  ;;  %v3877_v21 = vshrl.u32 %v5618_v41, 16 }
  0xf6   : > { %6129 = vmatmul.mubr.msk.bf16.gmra.mrb[28].mxu0 %vm668_vm3, %v6555_v34  ;;  %v7882_v34 = vld [vmem:[%s6809_s7 + $0x80] sm:$0x1]  ;;  %v3787_v39 = vor.u32 %v3786_v63, %v7850_v24  ;;  %v3797_v7 = vor.u32 %v3796_v51, %v7879_v27  ;;  %v3835_v30 = vor.u32 %v3834_v12, %v3831_v49  ;;  %v3845_v16 = vor.u32 %v3844_v48, %v7897_v31 }
  0xf7   : > { %5977 = vmatmul.mubr.msk.bf16.gmra.mrb[12].mxu1 %vm668_vm3, %v8994_v58  ;;  %6134 = vmatprep.mubr.msk.bf16.mxu0 %vm668_vm3, %v7621_v52  ;;  %v3807_v52 = vrot.slane %v3805_v19, 4  ;;  %v7892_v58 = vrot.slane %v3814_v53, 5  ;;  %v3868_v19 = vrot.slane %v3866_v13, 4  ;;  %v3880_v53 = vshll.u32 %v5618_v41, 16 }
  0xf8   : > { %5980 = vmatprep.mubr.msk.bf16.mxu1 %vm668_vm3, %v8995_v50  ;;  %v7900_v50 = vld [vmem:[%s6809_s7 + $0xa0] sm:$0xf]  ;;  %v3824_v45 = vshll.u32 %v7882_v34, 16  ;;  %v3848_v13 = vshll.u32 %v7895_v17, 16  ;;  %v3859_v24 = vor.u32 %v3858_v55, %v3855_v23  ;;  %v3872_v63 = vshll.u32 %v7903_v0, 16 }
  0xf9   : > { %v3811_v26 = vor.u32 %v3810_v25, %v3807_v52  ;;  %v3821_v36 = vor.u32 %v3820_v57, %v7892_v58  ;;  %v3886_v43 = vshll.u32 %v7900_v50, 16  ;;  %v3890_v3 = vshrl.u32 %v7900_v50, 16 }
  0xfa   : > { %v8996_v51 = vcombine.low %v7583_v29, %v7587_v9  ;;  %v3802_v49 = vrot.slane %v3800_v33, 5  ;;  %v3869_v57 = vor.u32 %v3868_v19, %v7905_v59  ;;  %v3879_v12 = vrot.slane %v3877_v21, 4 }
  0xfb   : > { %v8997_v52 = vcombine.low %v7633_v10, %v7637_v6  ;;  %v3788_v55 = vrot.slane %v3787_v39, 4  ;;  %v3798_v29 = vrot.slane %v3797_v7, 4  ;;  %v3812_v9 = vrot.slane %v3811_v26, 4 }
  0xfc   : > { %v3826_v25 = vrot.slane %v3824_v45, 5  ;;  %v3822_v33 = vrot.slane %v3821_v36, 4  ;;  %v3836_v41 = vrot.slane %v3835_v30, 4  ;;  %v7931_v48 = vrot.slane %v3886_v43, 5 }
  0xfd   : > { %v3892_v23 = vrot.slane %v3890_v3, 4  ;;  %v3846_v19 = vrot.slane %v3845_v16, 4  ;;  %v3850_v21 = vrot.slane %v3848_v13, 5  ;;  %v3860_v10 = vrot.slane %v3859_v24, 4 }
  0xfe   : > { %6135 = vmatmul.mubr.msk.bf16.vlgmr.msra.gmra.mrb[0].mxu0 %vm668_vm3, %v7678_v56  ;;  %v3882_v56 = vrot.slane %v3880_v53, 5  ;;  %v3874_v6 = vrot.slane %v3872_v63, 5  ;;  %v7934_v53 = vld [vmem:[%s6809_s7 + $0xa4] sm:$0x1]  ;;  %v8998_v26 = vrot.slane %v7837_v22, 5  ;;  %v3793_v36 = vsel %vm6828_vm2, %v3788_v55, %v7879_v27 }
  0xff   : > { %5981 = vmatmul.mubr.msk.bf16.gmra.mrb[16].mxu1 %vm668_vm3, %v8996_v51  ;;  %6167 = vmatpush3.bf16.msra.mxu0 %v7405_v46  ;;  %v5621_v46 = vld [vmem:[%s6809_s7 + $0xa8] sm:$0xf]  ;;  %v3870_v51 = vrot.slane %v3869_v57, 4  ;;  %v3803_v30 = vsel %vm6828_vm2, %v3798_v29, %v3802_v49  ;;  %v3817_v43 = vsel %vm6828_vm2, %v3812_v9, %v7892_v58  ;;  %v3827_v22 = vsel %vm6828_vm2, %v3822_v33, %v3826_v25 }
 0x100   : > { %5984 = vmatprep.mubr.msk.bf16.mxu1 %vm668_vm3, %v8997_v52  ;;  %6138 = vmatprep.mubr.msk.bf16.mxu0 %vm668_vm3, %v7682_v4  ;;  %v3883_v52 = vor.u32 %v3882_v56, %v3879_v12  ;;  %v7937_v4 = vld [vmem:[%s6809_s7 + $0xac] sm:$0xf]  ;;  %v3901_v7 = vshrl.u32 %v5621_v46, 16  ;;  %v3904_v39 = vshll.u32 %v5621_v46, 16  ;;  %v7944_v45 = vsel %vm7050_vm6, %v7848_v54, %v8998_v26 }
 0x101   : > { %v3841_v54 = vsel %vm6828_vm2, %v3836_v41, %v7897_v31  ;;  %v3893_v3 = vor.u32 %v3892_v23, %v7931_v48  ;;  %v3896_v16 = vshll.u32 %v7934_v53, 16  ;;  %v3851_v27 = vsel %vm6828_vm2, %v3846_v19, %v3850_v21  ;;  %v5672_v31 = vld [vmem:[%s6809_s7 + $0x48] sm:$0xe]  ;;  %v5675_v26 = vld [vmem:[%s6809_s7 + $0x6c] sm:$0xe] }
 0x102   : > { %v3865_v58 = vsel %vm6828_vm2, %v3860_v10, %v7905_v59  ;;  %v3910_v13 = vshll.u32 %v7937_v4, 16  ;;  %v3914_v24 = vshrl.u32 %v7937_v4, 16  ;;  %v8999_v63 = vcombine.low %v7648_v32, %v7658_v5  ;;  %v7980_v59 = vld [vmem:[%s6809_s7 + $0xb0] sm:$0x1] }
 0x103   : > { %v3884_v49 = vrot.slane %v3883_v52, 4  ;;  %v3903_v57 = vrot.slane %v3901_v7, 4  ;;  %v3906_v12 = vrot.slane %v3904_v39, 5  ;;  %v9000_v56 = vcombine.low %v7758_v61, %v7770_v40  ;;  %v5624_v40 = vld [vmem:[%s6809_s7 + $0xb4] sm:$0xf] }
 0x104   : > { %v9001_v32 = vsel %vm6828_vm2, %v7816_v14, %v7818_v15  ;;  %v9002_v5 = vsel %vm6828_vm2, %v7814_v11, %v7742_v60  ;;  %v5283_v55 = vcombine.low %v7846_v1, %v7944_v45  ;;  %v7998_v29 = vcombine.low %v3793_v36, %v3803_v30  ;;  %v5673_v15 = vld [vmem:[%s6809_s7 + $0x54] sm:$0xe] }
 0x105   : > { %v8000_v61 = vcombine.low %v3817_v43, %v3827_v22  ;;  %v8003_v9 = vcombine.low %v3841_v54, %v3851_v27  ;;  %v3894_v25 = vrot.slane %v3893_v3, 4  ;;  %v3898_v46 = vrot.slane %v3896_v16, 5  ;;  %v9004_v16 = vld [vmem:[#allocation11_spill] sm:$0xff] }
 0x106   : > { %6139 = vmatmul.mubr.msk.bf16.gmra.mrb[4].mxu0 %vm668_vm3, %v7812_v44  ;;  %v3875_v44 = vsel %vm6828_vm2, %v3870_v51, %v3874_v6  ;;  %v5688_v14 = vrot.slane %v5672_v31, 9  ;;  %v8008_v60 = vrot.slane %v3910_v13, 5  ;;  %v3916_v11 = vrot.slane %v3914_v24, 4  ;;  %v5674_v6 = vld [vmem:[%s6809_s7 + $0x60] sm:$0xe]  ;;  %v9005_v13 = vld [vmem:[#allocation12_spill] sm:$0xff] }
 0x107   : > { %5985 = vmatmul.mubr.msk.bf16.gmra.mrb[20].mxu1 %vm668_vm3, %v8999_v63  ;;  %6142 = vmatprep.mubr.msk.bf16.mxu0 %vm668_vm3, %v7822_v38  ;;  %v5641_v38 = vcombine.low %v9002_v5, %v9001_v32  ;;  %v8006_v33 = vcombine.low %v3865_v58, %v3875_v44  ;;  %v3920_v41 = vshll.u32 %v7980_v59, 16  ;;  %v3889_v23 = vsel %vm6828_vm2, %v3884_v49, %v7931_v48  ;;  %v9006_v24 = vld [vmem:[#allocation13_spill] sm:$0xff]  ;;  %v9008_v63 = vld [vmem:[#allocation14_spill] sm:$0xff] }
 0x108   : > { %5988 = vmatprep.mubr.msk.bf16.mxu1 %vm668_vm3, %v9000_v56  ;;  %v3907_v19 = vor.u32 %v3906_v12, %v3903_v57  ;;  %v4388_v21 = vrot.slane %v7641_v20, 5  ;;  %v4391_v10 = vrot.slane %v7695_v35, 5  ;;  %v3925_v51 = vshrl.u32 %v5624_v40, 16  ;;  %v8030_v35 = vld [vmem:[%s6809_s7 + $0xb8] sm:$0xf]  ;;  %v9009_v49 = vld [vmem:[#allocation18_spill] sm:$0xff] }
 0x109   : > { %v5689_v52 = vrot.slane %v5673_v15, 9  ;;  %v4395_v7 = vrot.slane %v7652_v18, 5  ;;  %v4398_v39 = vrot.slane %v7719_v37, 5  ;;  %v3899_v36 = vsel %vm6828_vm2, %v3894_v25, %v3898_v46  ;;  %v5627_v12 = vld [vmem:[%s6809_s7 + $0xc0] sm:$0xf] }
 0x10a   : > { %v3928_v30 = vshll.u32 %v5624_v40, 16  ;;  %v8024_v48 = vsel %vm7050_vm6, %v5688_v14, %v4388_v21  ;;  %v4390_v43 = vrot.slane %v4388_v21, 4  ;;  %v3917_v20 = vor.u32 %v3916_v11, %v8008_v60  ;;  %v5676_v14 = vld [vmem:[%s6809_s7 + $0x78] sm:$0xe] }
 0x10b   : > { %v8034_v37 = vsel %vm7050_vm6, %v5689_v52, %v4395_v7  ;;  %v4397_v18 = vrot.slane %v4395_v7, 4  ;;  %v5690_v22 = vrot.slane %v5674_v6, 9  ;;  %v9003_v54 = vcombine.low %v7777_v42, %v7781_v62  ;;  %v6557_v6 = vld [vmem:[%s6809_s7 + $0xc] sm:$0xff]  }
 0x10c   : > { %v4402_v3 = vrot.slane %v7701_v8, 5  ;;  %v4405_v27 = vrot.slane %v9004_v16, 5  ;;  %v5691_v58 = vrot.slane %v5675_v26, 9  ;;  %v9007_v31 = vcombine.low %v9005_v13, %v9006_v24  ;;  %v9011_v13 = vld [vmem:[#allocation6_spill] sm:$0xff]  ;;  %v9012_v24 = vld [vmem:[#allocation7_spill] sm:$0xff] }
 0x10d   : > { %v8055_v62 = vsel %vm7050_vm6, %v4397_v18, %v4398_v39  ;;  %v4409_v44 = vrot.slane %v9008_v63, 5  ;;  %v4412_v8 = vrot.slane %v9009_v49, 5  ;;  %v3934_v57 = vshll.u32 %v8030_v35, 16  ;;  %v8092_v39 = vld [vmem:[%s6809_s7 + $0xc4] sm:$0xf]  ;;  %v9013_v49 = vld [vmem:[#allocation16_spill] sm:$0xff] }
 0x10e   : > { %6143 = vmatmul.mubr.msk.bf16.gmra.mrb[8].mxu0 %vm668_vm3, %v7826_v47  ;;  %v8043_v47 = vsel %vm7050_vm6, %v4390_v43, %v4391_v10  ;;  %v5707_v56 = vcombine.low %v8034_v37, %v8055_v62  ;;  %v8065_v32 = vsel %vm7050_vm6, %v5690_v22, %v4402_v3  ;;  %v4404_v5 = vrot.slane %v4402_v3, 4  ;;  %v5395_v10 = vld [vmem:[%s6809_s7 + $0x78] sm:$0xf]  ;;  %v9010_v22 = vld [vmem:[#allocation15_spill] sm:$0xff]  ;;  %v6624_v62 = vld [vmem:[%s6809_s7 + $0xa0] sm:$0xf] }
 0x10f   : > { %5989 = vmatmul.mubr.msk.bf16.gmra.mrb[24].mxu1 %vm668_vm3, %v9003_v54  ;;  %6146 = vmatprep.mubr.msk.bf16.mxu0 %vm668_vm3, %v5641_v38  ;;  %v5706_v42 = vcombine.low %v8024_v48, %v8043_v47  ;;  %v8067_v38 = vrot.slane %v3920_v41, 5  ;;  %v3938_v40 = vshrl.u32 %v8030_v35, 16  ;;  %v8072_v25 = vsel %vm7050_vm6, %v5691_v58, %v4409_v44 }
 0x110   : > { %5992 = vmatprep.mubr.msk.bf16.mxu1 %vm668_vm3, %v9007_v31  ;;  %v4411_v46 = vrot.slane %v4409_v44, 4  ;;  %v8075_v15 = vcombine.low %v3889_v23, %v3899_v36  ;;  %v8077_v11 = vrot.slane %v3907_v19, 4  ;;  %v8079_v21 = vrot.slane %v3925_v51, 4 }
 0x111   : > { %v8083_v41 = vsel %vm7050_vm6, %v4404_v5, %v4405_v27  ;;  %v8087_v52 = vrot.slane %v3917_v20, 4  ;;  %v8089_v7 = vrot.slane %v3928_v30, 5  ;;  %v8100_v51 = vrot.slane %v3934_v57, 5  ;;  %v5677_v20 = vld [vmem:[%s6809_s7 + $0x84] sm:$0xe] }
 0x112   : > { %v5708_v23 = vcombine.low %v8065_v32, %v8083_v41  ;;  %v8098_v19 = vsel %vm7050_vm6, %v4411_v46, %v4412_v8  ;;  %v3949_v26 = vshrl.u32 %v5627_v12, 16  ;;  %v5692_v43 = vrot.slane %v5676_v14, 9  ;;  %v8108_v30 = vld [vmem:[%s6809_s7 + $0xbc] sm:$0x1]  ;;  %v5630_v5 = vld [vmem:[%s6809_s7 + $0xcc] sm:$0xf] }
 0x113   : > { %v5709_v36 = vcombine.low %v8072_v25, %v8098_v19  ;;  %v3952_v18 = vshll.u32 %v5627_v12, 16  ;;  %v4416_v54 = vrot.slane %v9010_v22, 5  ;;  %v4419_v3 = vrot.slane %v7882_v34, 5  ;;  %v6558_v14 = vld [vmem:[%s6809_s7 + $0x18] sm:$0xff]   ;;  %v5678_v22 = vld [vmem:[%s6809_s7 + $0x90] sm:$0xe] }
 0x114   : > { %v2262_v16 = vshrl.u32 %v5395_v10, 16  ;;  %v3958_v27 = vshll.u32 %v8092_v39, 16  ;;  %v2265_v58 = vshll.u32 %v5395_v10, 16  ;;  %v2284_v34 = vsel %vm6828_vm2, %v9012_v24, %v9011_v13  ;;  %v9014_v24 = vld [vmem:[#allocation17_spill] sm:$0xff]  ;;  %v6628_v19 = vld [vmem:[%s6809_s7 + $0xac] sm:$0xf] }
 0x115   : > { %v8127_v1 = vsel %vm7050_vm6, %v5692_v43, %v4416_v54  ;;  %v4418_v45 = vrot.slane %v4416_v54, 4  ;;  %v3940_v31 = vrot.slane %v3938_v40, 4  ;;  %v3944_v63 = vshll.u32 %v8108_v30, 16 }
 0x116   : > { %6147 = vmatmul.mubr.msk.bf16.gmra.mrb[12].mxu0 %vm668_vm3, %v7998_v29  ;;  %v3962_v29 = vshrl.u32 %v8092_v39, 16  ;;  %v2267_v44 = vrot.slane %v2265_v58, 5  ;;  %v4423_v8 = vrot.slane %v9013_v49, 5  ;;  %v3913_v57 = vsel %vm6828_vm2, %v8077_v11, %v8008_v60  ;;  %v6559_v60 = vld [vmem:[%s6809_s7 + $0x24] sm:$0xff]  }
 0x117   : > { %5993 = vmatmul.mubr.msk.bf16.gmra.mrb[28].mxu1 %vm668_vm3, %v5283_v55  ;;  %6150 = vmatprep.mubr.msk.bf16.mxu0 %vm668_vm3, %v8000_v61  ;;  %v2264_v55 = vrot.slane %v2262_v16, 4  ;;  %v5693_v61 = vrot.slane %v5677_v20, 9  ;;  %v3931_v12 = vor.u32 %v8089_v7, %v8079_v21  ;;  %v8140_v46 = vsel %vm7050_vm6, %v4418_v45, %v4419_v3  ;;  %v8151_v7 = vld [vmem:[%s6809_s7 + $0xd0] sm:$0xf] }
 0x118   : > { %5998 = vmatprep.mubr.msk.bf16.mxu1 %vm668_vm3, %v6557_v6  ;;  %v4426_v40 = vrot.slane %v7895_v17, 5  ;;  %v3951_v10 = vrot.slane %v3949_v26, 4  ;;  %v3954_v6 = vrot.slane %v3952_v18, 5  ;;  %v5710_v43 = vcombine.low %v8127_v1, %v8140_v46  ;;  %v8163_v18 = vld [vmem:[%s6809_s7 + $0xc8] sm:$0x1] }
 0x119   : > { %v2268_v20 = vor.u32 %v2267_v44, %v2264_v55  ;;  %v8148_v11 = vrot.slane %v3958_v27, 5  ;;  %v3964_v21 = vrot.slane %v3962_v29, 4  ;;  %v8155_v54 = vsel %vm7050_vm6, %v5693_v61, %v4423_v8  ;;  %v9015_v55 = vld [vmem:[#allocation5_spill] sm:$0xff] }
 0x11a   : > { %v4425_v3 = vrot.slane %v4423_v8, 4  ;;  %v3923_v17 = vsel %vm6828_vm2, %v8087_v52, %v8067_v38  ;;  %v3941_v26 = vor.u32 %v3940_v31, %v8100_v51  ;;  %v3973_v16 = vshrl.u32 %v5630_v5, 16  ;;  %v9016_v31 = vld [vmem:[#allocation10_spill] sm:$0xff] }
 0x11b   : > { %v2269_v27 = vrot.slane %v2268_v20, 4  ;;  %v3976_v29 = vshll.u32 %v5630_v5, 16  ;;  %v5694_v13 = vrot.slane %v5678_v22, 9  ;;  %v4430_v45 = vrot.slane %v9014_v24, 5 }
 0x11c   : > { %v8169_v58 = vsel %vm7050_vm6, %v4425_v3, %v4426_v40  ;;  %v3982_v38 = vshll.u32 %v8151_v7, 16  ;;  %v3986_v52 = vshrl.u32 %v8151_v7, 16  ;;  %v3955_v44 = vor.u32 %v3954_v6, %v3951_v10  ;;  %v5679_v10 = vld [vmem:[%s6809_s7 + $0x9c] sm:$0xe]  ;;  %v6560_v6 = vld [vmem:[%s6809_s7 + $0x30] sm:$0xff]  }
 0x11d   : > { %v5711_v61 = vcombine.low %v8155_v54, %v8169_v58  ;;  %v3968_v49 = vshll.u32 %v8163_v18, 16  ;;  %v3946_v5 = vrot.slane %v3944_v63, 5  ;;  %v8190_v40 = vsel %vm7050_vm6, %v5694_v13, %v4430_v45  ;;  %v6561_v13 = vld [vmem:[%s6809_s7 + $0x3c] sm:$0xff]  }
 0x11e   : > { %6151 = vmatmul.mubr.msk.bf16.gmra.mrb[16].mxu0 %vm668_vm3, %v8003_v9  ;;  %v2274_v9 = vsel %vm6828_vm2, %v2269_v27, %v9015_v55  ;;  %v4433_v20 = vrot.slane %v7903_v0, 5  ;;  %v5647_v22 = vcombine.low %v3913_v57, %v3923_v17  ;;  %v3932_v3 = vrot.slane %v3931_v12, 4 }
 0x11f   : > { %5999 = vmatmul.mubr.msk.bf16.vlgmr.msra.gmra.mrb[0].mxu1 %vm668_vm3, %v6558_v14  ;;  %6154 = vmatprep.mubr.msk.bf16.mxu0 %vm668_vm3, %v8006_v33  ;;  %v3965_v33 = vor.u32 %v3964_v21, %v8148_v11  ;;  %v8186_v8 = vcombine.low %v2274_v9, %v2284_v34  ;;  %v4432_v14 = vrot.slane %v4430_v45, 4  ;;  %v3942_v27 = vrot.slane %v3941_v26, 4  ;;  %v8196_v21 = vld [vmem:[%s6809_s7 + $0xd4] sm:$0x1]  ;;  %v5668_v9 = vld [vmem:[%s6809_s7 + $0x18] sm:$0xe] }
 0x120   : > { %6201 = vmatpush3.bf16.msra.mxu1 %v9016_v31  ;;  %6002 = vmatprep.mubr.msk.bf16.mxu1 %vm668_vm3, %v6559_v60  ;;  %v3975_v60 = vrot.slane %v3973_v16, 4  ;;  %v3978_v24 = vrot.slane %v3976_v29, 5  ;;  %v8198_v34 = vrot.slane %v3982_v38, 5  ;;  %v3988_v55 = vrot.slane %v3986_v52, 4 }
 0x121   : > { %v8202_v63 = vsel %vm7050_vm6, %v4432_v14, %v4433_v20  ;;  %v3956_v45 = vrot.slane %v3955_v44, 4  ;;  %v3966_v0 = vrot.slane %v3965_v33, 4  ;;  %v3970_v57 = vrot.slane %v3968_v49, 5  ;;  %v6614_v33 = vld [vmem:[%s6809_s7 + $0x1c] sm:$0xf] }
 0x122   : > { %v5712_v12 = vcombine.low %v8190_v40, %v8202_v63  ;;  %v5695_v17 = vrot.slane %v5679_v10, 9  ;;  %v4437_v26 = vrot.slane %v7900_v50, 5  ;;  %v3937_v16 = vsel %vm6828_vm2, %v3932_v3, %v8100_v51  ;;  %v5680_v14 = vld [vmem:[%s6809_s7 + $0xa8] sm:$0xe] }
 0x123   : > { %v3947_v29 = vsel %vm6828_vm2, %v3942_v27, %v3946_v5  ;;  %v3992_v38 = vshll.u32 %v8196_v21, 16  ;;  %v4440_v52 = vrot.slane %v7934_v53, 5  ;;  %v3979_v50 = vor.u32 %v3978_v24, %v3975_v60  ;;  %v6562_v60 = vld [vmem:[%s6809_s7 + $0x48] sm:$0xff]   ;;  %v6615_v24 = vld [vmem:[%s6809_s7 + $0x20] sm:$0x1] }
 0x124   : > { %v8223_v51 = vsel %vm7050_vm6, %v5695_v17, %v4437_v26  ;;  %v4439_v31 = vrot.slane %v4437_v26, 4  ;;  %v3961_v53 = vsel %vm6828_vm2, %v3956_v45, %v8148_v11  ;;  %v3971_v44 = vsel %vm6828_vm2, %v3966_v0, %v3970_v57  ;;  %v5681_v26 = vld [vmem:[%s6809_s7 + $0xb4] sm:$0xe] }
 0x125   : > { %v4360_v49 = vrot.slane %v6614_v33, 5  ;;  %v5648_v20 = vcombine.low %v3937_v16, %v3947_v29  ;;  %v5684_v3 = vrot.slane %v5668_v9, 9  ;;  %v5649_v11 = vcombine.low %v3961_v53, %v3971_v44  ;;  %v5670_v33 = vld [vmem:[%s6809_s7 + $0x30] sm:$0xe] }
 0x126   : > { %6155 = vmatmul.mubr.msk.bf16.gmra.mrb[20].mxu0 %vm668_vm3, %v8075_v15  ;;  %v3989_v15 = vor.u32 %v3988_v55, %v8198_v34  ;;  %v8234_v5 = vsel %vm7050_vm6, %v4439_v31, %v4440_v52  ;;  %v3980_v10 = vrot.slane %v3979_v50, 4  ;;  %v4363_v55 = vrot.slane %v6615_v24, 5  ;;  %v5669_v52 = vld [vmem:[%s6809_s7 + $0x24] sm:$0xe]  ;;  %v6616_v50 = vld [vmem:[%s6809_s7 + $0x28] sm:$0xf] }
 0x127   : > { %6003 = vmatmul.mubr.msk.bf16.gmra.mrb[4].mxu1 %vm668_vm3, %v6560_v6  ;;  %6158 = vmatprep.mubr.msk.bf16.mxu0 %vm668_vm3, %v5647_v22  ;;  %v3994_v22 = vrot.slane %v3992_v38, 5  ;;  %v5713_v27 = vcombine.low %v8223_v51, %v8234_v5  ;;  %v4362_v45 = vrot.slane %v4360_v49, 4  ;;  %v5696_v0 = vrot.slane %v5680_v14, 9  ;;  %v6617_v31 = vld [vmem:[%s6809_s7 + $0x34] sm:$0xf] }
 0x128   : > { %6006 = vmatprep.mubr.msk.bf16.mxu1 %vm668_vm3, %v6561_v13  ;;  %v3990_v6 = vrot.slane %v3989_v15, 4  ;;  %v6563_v13 = vld [vmem:[%s6809_s7 + $0x54] sm:$0xff]   ;;  %v4444_v57 = vrot.slane %v7937_v4, 5  ;;  %v4447_v17 = vrot.slane %v7980_v59, 5  ;;  %v3985_v4 = vsel %vm6828_vm2, %v3980_v10, %v8198_v34  ;;  %v6564_v10 = vld [vmem:[%s6809_s7 + $0x60] sm:$0xff]  }
 0x129   : > { %v4361_v38 = vsel %vm7050_vm6, %v5684_v3, %v4360_v49  ;;  %v4367_v15 = vrot.slane %v6616_v50, 5  ;;  %v4364_v9 = vsel %vm7050_vm6, %v4362_v45, %v4363_v55  ;;  %v4374_v53 = vrot.slane %v6617_v31, 5  ;;  %v6618_v3 = vld [vmem:[%s6809_s7 + $0x2c] sm:$0x1]  ;;  %v6633_v51 = vld [vmem:[%s6809_s7 + $0xc8] sm:$0x1] }
 0x12a   : > { %v8248_v16 = vsel %vm7050_vm6, %v5696_v0, %v4444_v57  ;;  %v4446_v29 = vrot.slane %v4444_v57, 4  ;;  %v3995_v59 = vsel %vm6828_vm2, %v3990_v6, %v3994_v22  ;;  %v5697_v44 = vrot.slane %v5681_v26, 9  ;;  %v6565_v45 = vld [vmem:[%s6809_s7 + $0x6c] sm:$0xff]   ;;  %v5682_v26 = vld [vmem:[%s6809_s7 + $0xc0] sm:$0xe] }
 0x12b   : > { %v4451_v14 = vrot.slane %v8030_v35, 5  ;;  %v5685_v22 = vrot.slane %v5669_v52, 9  ;;  %v5702_v6 = vcombine.low %v4361_v38, %v4364_v9  ;;  %v4369_v24 = vrot.slane %v4367_v15, 4  ;;  %v6619_v35 = vld [vmem:[%s6809_s7 + $0x38] sm:$0x1] }
 0x12c   : > { %v8267_v34 = vsel %vm7050_vm6, %v4446_v29, %v4447_v17  ;;  %v5686_v0 = vrot.slane %v5670_v33, 9  ;;  %v4376_v57 = vrot.slane %v4374_v53, 4  ;;  %v4377_v17 = vrot.slane %v6619_v35, 5  ;;  %v9017_v38 = vld [vmem:[#allocation8_spill] sm:$0xff] }
 0x12d   : > { %v5714_v49 = vcombine.low %v8248_v16, %v8267_v34  ;;  %v8278_v55 = vsel %vm7050_vm6, %v5697_v44, %v4451_v14  ;;  %v4381_v52 = vrot.slane %v9017_v38, 5  ;;  %v5698_v50 = vrot.slane %v5682_v26, 9  ;;  %v5671_v44 = vld [vmem:[%s6809_s7 + $0x3c] sm:$0xe]  ;;  %v6620_v38 = vld [vmem:[%s6809_s7 + $0x70] sm:$0xf] }
 0x12e   : > { %6159 = vmatmul.mubr.msk.bf16.gmra.mrb[24].mxu0 %vm668_vm3, %v5648_v20  ;;  %v5650_v20 = vcombine.low %v3985_v4, %v3995_v59  ;;  %v4368_v4 = vsel %vm7050_vm6, %v5685_v22, %v4367_v15  ;;  %v4375_v9 = vsel %vm7050_vm6, %v5686_v0, %v4374_v53  ;;  %v4378_v31 = vsel %vm7050_vm6, %v4376_v57, %v4377_v17  ;;  %v5392_v22 = vld [vmem:[%s6809_s7 + $0x6c] sm:$0xf] }
 0x12f   : > { %6007 = vmatmul.mubr.msk.bf16.gmra.mrb[8].mxu1 %vm668_vm3, %v6562_v60  ;;  %6162 = vmatprep.mubr.msk.bf16.mxu0 %vm668_vm3, %v5649_v11  ;;  %v4370_v60 = vrot.slane %v6618_v3, 5  ;;  %v4454_v11 = vrot.slane %v8108_v30, 5  ;;  %v4458_v33 = vrot.slane %v8092_v39, 5  ;;  %v4461_v15 = vrot.slane %v8163_v18, 5 }
 0x130   : > { %6010 = vmatprep.mubr.msk.bf16.mxu1 %vm668_vm3, %v6563_v13  ;;  %v4453_v13 = vrot.slane %v4451_v14, 4  ;;  %v5683_v14 = vld [vmem:[%s6809_s7 + $0xcc] sm:$0xe]  ;;  %v4383_v53 = vrot.slane %v4381_v52, 4  ;;  %v2238_v0 = vshrl.u32 %v5392_v22, 16  ;;  %v2241_v57 = vshll.u32 %v5392_v22, 16 }
 0x131   : > { %v4371_v59 = vsel %vm7050_vm6, %v4369_v24, %v4370_v60  ;;  %v8309_v3 = vsel %vm7050_vm6, %v5698_v50, %v4458_v33  ;;  %v4460_v60 = vrot.slane %v4458_v33, 4  ;;  %v9018_v24 = vld [vmem:[#allocation9_spill] sm:$0xff]  ;;  %v5699_v18 = vrot.slane %v5683_v14, 9 }
 0x132   : > { %v8285_v29 = vsel %vm7050_vm6, %v4453_v13, %v4454_v11  ;;  %v6566_v11 = vld [vmem:[%s6809_s7 + $0x78] sm:$0xff]   ;;  %v4384_v13 = vrot.slane %v9018_v24, 5  ;;  %v4465_v17 = vrot.slane %v8151_v7, 5  ;;  %v4468_v26 = vrot.slane %v8196_v21, 5 }
 0x133   : > { %v5715_v30 = vcombine.low %v8278_v55, %v8285_v29  ;;  %v8316_v39 = vsel %vm7050_vm6, %v4460_v60, %v4461_v15  ;;  %v2247_v50 = vshll.u32 %v6620_v38, 16  ;;  %v6568_v15 = vld [vmem:[%s6809_s7 + $0x90] sm:$0xff]   ;;  %v6569_v60 = vld [vmem:[%s6809_s7 + $0x9c] sm:$0xff]   ;;  %v2425_v5 = vshll.u32 %v6633_v51, 16 }
 0x134   : > { %v5716_v35 = vcombine.low %v8309_v3, %v8316_v39  ;;  %v8333_v7 = vsel %vm7050_vm6, %v5699_v18, %v4465_v17  ;;  %v4467_v21 = vrot.slane %v4465_v17, 4  ;;  %v5401_v17 = vld [vmem:[%s6809_s7 + $0x90] sm:$0xf] }
 0x135   : > { %v2249_v14 = vrot.slane %v2247_v50, 5 }
 0x136   : > { %6163 = vmatmul.mubr.msk.bf16.gmra.mrb[28].mxu0 %vm668_vm3, %v5650_v20  ;;  %v5703_v20 = vcombine.low %v4368_v4, %v4371_v59  ;;  %v4385_v59 = vsel %vm7050_vm6, %v4383_v53, %v4384_v13 }
 0x137   : > { %6011 = vmatmul.mubr.msk.bf16.gmra.mrb[12].mxu1 %vm668_vm3, %v6564_v10  ;;  %6168 = vmatprep.mubr.msk.bf16.mxu0 %vm668_vm3, %v5702_v6  ;;  %v5704_v10 = vcombine.low %v4375_v9, %v4378_v31  ;;  %v5687_v6 = vrot.slane %v5671_v44, 9  ;;  %v2251_v9 = vshrl.u32 %v6620_v38, 16  ;;  %v2240_v31 = vrot.slane %v2238_v0, 4  ;;  %v6571_v38 = vld [vmem:[%s6809_s7 + $0xb4] sm:$0xff]  }
 0x138   : > { %6014 = vmatprep.mubr.msk.bf16.mxu1 %vm668_vm3, %v6565_v45  ;;  %v6567_v45 = vld [vmem:[%s6809_s7 + $0x84] sm:$0xff]   ;;  %v2243_v44 = vrot.slane %v2241_v57, 5 }
 0x139   : > { %v4382_v4 = vsel %vm7050_vm6, %v5687_v6, %v4381_v52  ;;  %v8337_v52 = vsel %vm7050_vm6, %v4467_v21, %v4468_v26  ;;  %v6621_v6 = vld [vmem:[%s6809_s7 + $0x74] sm:$0x1]  ;;  %v6570_v26 = vld [vmem:[%s6809_s7 + $0xa8] sm:$0xff]   ;;  %v2310_v21 = vshrl.u32 %v5401_v17, 16 }
 0x13a   : > { %v5705_v33 = vcombine.low %v4382_v4, %v4385_v59  ;;  %v5717_v22 = vcombine.low %v8333_v7, %v8337_v52  ;;  %v2257_v53 = vshll.u32 %v6621_v6, 16  ;;  %v5404_v59 = vld [vmem:[%s6809_s7 + $0x9c] sm:$0xf]  ;;  %v6625_v6 = vld [vmem:[%s6809_s7 + $0x8c] sm:$0x1] }
 0x13c   : > { %v2259_v48 = vrot.slane %v2257_v53, 5  ;;  %v2305_v53 = vshll.u32 %v6625_v6, 16 }
 0x13e   : > { %6169 = vmatmul.mubr.msk.bf16.vlgmr.msra.gmra.mrb[0].mxu0 %vm668_vm3, %v5703_v20  ;;  %v2253_v20 = vrot.slane %v2251_v9, 4 }
 0x13f   : > { %6015 = vmatmul.mubr.msk.bf16.gmra.mrb[16].mxu1 %vm668_vm3, %v6566_v11  ;;  %6172 = vmatprep.mubr.msk.bf16.mxu0 %vm668_vm3, %v5704_v10  ;;  %v5398_v11 = vld [vmem:[%s6809_s7 + $0x84] sm:$0xf]  ;;  %v2244_v10 = vor.u32 %v2243_v44, %v2240_v31  ;;  %v2313_v31 = vshll.u32 %v5401_v17, 16 }
 0x140   : > { %6018 = vmatprep.mubr.msk.bf16.mxu1 %vm668_vm3, %v6567_v45  ;;  %v2254_v2 = vor.u32 %v2253_v20, %v2249_v14  ;;  %v2286_v24 = vshrl.u32 %v5398_v11, 16  ;;  %v2289_v13 = vshll.u32 %v5398_v11, 16  ;;  %v6622_v45 = vld [vmem:[%s6809_s7 + $0x88] sm:$0xf]  ;;  %v2337_v11 = vshll.u32 %v5404_v59, 16 }
 0x141   : > { %v2295_v18 = vshll.u32 %v6622_v45, 16  ;;  %v2299_v0 = vshrl.u32 %v6622_v45, 16  ;;  %v2245_v57 = vrot.slane %v2244_v10, 4  ;;  %v2343_v10 = vshll.u32 %v6624_v62, 16 }
 0x142   : > { %v2255_v4 = vrot.slane %v2254_v2, 4  ;;  %v2288_v47 = vrot.slane %v2286_v24, 4  ;;  %v2312_v24 = vrot.slane %v2310_v21, 4  ;;  %v2315_v32 = vrot.slane %v2313_v31, 5  ;;  %v6627_v31 = vld [vmem:[%s6809_s7 + $0xa4] sm:$0x1] }
 0x143   : > { %v8357_v50 = vrot.slane %v2295_v18, 5  ;;  %v2301_v9 = vrot.slane %v2299_v0, 4  ;;  %v2250_v44 = vsel %vm6828_vm2, %v2245_v57, %v2249_v14  ;;  %v2339_v45 = vrot.slane %v2337_v11, 5  ;;  %v6572_v18 = vld [vmem:[%s6809_s7 + $0xc0] sm:$0xff]  }
 0x144   : > { %v2260_v14 = vsel %vm6828_vm2, %v2255_v4, %v2259_v48  ;;  %v8380_v17 = vrot.slane %v2343_v10, 5  ;;  %v5407_v4 = vld [vmem:[%s6809_s7 + $0xa8] sm:$0xf] }
 0x145   : > { %v2302_v2 = vor.u32 %v2301_v9, %v8357_v50  ;;  %v5426_v0 = vcombine.low %v2250_v44, %v2260_v14  ;;  %v2353_v44 = vshll.u32 %v6627_v31, 16  ;;  %v2361_v25 = vshll.u32 %v5407_v4, 16 }
 0x146   : > { %6173 = vmatmul.mubr.msk.bf16.gmra.mrb[4].mxu0 %vm668_vm3, %v5705_v33  ;;  %v6623_v33 = vld [vmem:[%s6809_s7 + $0x94] sm:$0xf] }
 0x147   : > { %6019 = vmatmul.mubr.msk.bf16.gmra.mrb[20].mxu1 %vm668_vm3, %v6568_v15  ;;  %6176 = vmatprep.mubr.msk.bf16.mxu0 %vm668_vm3, %v5706_v42  ;;  %v2291_v42 = vrot.slane %v2289_v13, 5  ;;  %v2319_v15 = vshll.u32 %v6623_v33, 16  ;;  %v2323_v20 = vshrl.u32 %v6623_v33, 16  ;;  %v2303_v48 = vrot.slane %v2302_v2, 4 }
 0x148   : > { %6022 = vmatprep.mubr.msk.bf16.mxu1 %vm668_vm3, %v6569_v60  ;;  %v2334_v60 = vshrl.u32 %v5404_v59, 16  ;;  %v6626_v59 = vld [vmem:[%s6809_s7 + $0x98] sm:$0x1]  ;;  %v2358_v33 = vshrl.u32 %v5407_v4, 16  ;;  %v5413_v4 = vld [vmem:[%s6809_s7 + $0xc0] sm:$0xf] }
 0x149   : > { %v2292_v37 = vor.u32 %v2291_v42, %v2288_v47  ;;  %v8377_v41 = vrot.slane %v2319_v15, 5  ;;  %v2307_v47 = vrot.slane %v2305_v53, 5  ;;  %v2316_v42 = vor.u32 %v2315_v32, %v2312_v24  ;;  %v5410_v15 = vld [vmem:[%s6809_s7 + $0xb4] sm:$0xf] }
 0x14a   : > { %v2336_v13 = vrot.slane %v2334_v60, 4  ;;  %v2371_v60 = vshrl.u32 %v6628_v19, 16  ;;  %v2382_v1 = vshrl.u32 %v5410_v15, 16  ;;  %v2385_v46 = vshll.u32 %v5410_v15, 16 }
 0x14b   : > { %v2293_v57 = vrot.slane %v2292_v37, 4  ;;  %v2308_v14 = vsel %vm6828_vm2, %v2303_v48, %v2307_v47  ;;  %v2317_v37 = vrot.slane %v2316_v42, 4  ;;  %v2355_v53 = vrot.slane %v2353_v44, 5 }
 0x14c   : > { %v2340_v21 = vor.u32 %v2339_v45, %v2336_v13  ;;  %v2360_v24 = vrot.slane %v2358_v33, 4  ;;  %v2373_v45 = vrot.slane %v2371_v60, 4  ;;  %v6632_v33 = vld [vmem:[%s6809_s7 + $0xbc] sm:$0x1] }
 0x14d   : > { %v2298_v11 = vsel %vm6828_vm2, %v2293_v57, %v8357_v50  ;;  %v2322_v48 = vsel %vm6828_vm2, %v2317_v37, %v8377_v41  ;;  %v2401_v40 = vshll.u32 %v6632_v33, 16 }
 0x14e   : > { %6177 = vmatmul.mubr.msk.bf16.gmra.mrb[8].mxu0 %vm668_vm3, %v5707_v56  ;;  %v2347_v56 = vshrl.u32 %v6624_v62, 16  ;;  %v2341_v6 = vrot.slane %v2340_v21, 4  ;;  %v5428_v50 = vcombine.low %v2298_v11, %v2308_v14 }
 0x14f   : > { %6023 = vmatmul.mubr.msk.bf16.gmra.mrb[24].mxu1 %vm668_vm3, %v6570_v26  ;;  %6180 = vmatprep.mubr.msk.bf16.mxu0 %vm668_vm3, %v5708_v23  ;;  %v2325_v23 = vrot.slane %v2323_v20, 4 }
 0x150   : > { %6026 = vmatprep.mubr.msk.bf16.mxu1 %vm668_vm3, %v6571_v38  ;;  %v2349_v26 = vrot.slane %v2347_v56, 4  ;;  %v2329_v38 = vshll.u32 %v6626_v59, 16  ;;  %v2346_v42 = vsel %vm6828_vm2, %v2341_v6, %v8380_v17  ;;  %v2427_v6 = vrot.slane %v2425_v5, 5 }
 0x151   : > { %v2326_v9 = vor.u32 %v2325_v23, %v8377_v41  ;;  %v2363_v23 = vrot.slane %v2361_v25, 5  ;;  %v6630_v41 = vld [vmem:[%s6809_s7 + $0xb0] sm:$0x1] }
 0x152   : > { %v2350_v20 = vor.u32 %v2349_v26, %v8380_v17  ;;  %v2331_v62 = vrot.slane %v2329_v38, 5  ;;  %v2377_v59 = vshll.u32 %v6630_v41, 16  ;;  %v2406_v38 = vshrl.u32 %v5413_v4, 16 }
 0x153   : > { %v2327_v2 = vrot.slane %v2326_v9, 4  ;;  %v2364_v58 = vor.u32 %v2363_v23, %v2360_v24  ;;  %v2409_v17 = vshll.u32 %v5413_v4, 16  ;;  %v6631_v9 = vld [vmem:[%s6809_s7 + $0xc4] sm:$0xf] }
 0x154   : > { %v2351_v32 = vrot.slane %v2350_v20, 4  ;;  %v2415_v21 = vshll.u32 %v6631_v9, 16  ;;  %v2419_v31 = vshrl.u32 %v6631_v9, 16  ;;  %v2379_v25 = vrot.slane %v2377_v59, 5 }
 0x155   : > { %v2332_v47 = vsel %vm6828_vm2, %v2327_v2, %v2331_v62  ;;  %v2365_v15 = vrot.slane %v2364_v58, 4  ;;  %v2403_v62 = vrot.slane %v2401_v40, 5 }
 0x156   : > { %6181 = vmatmul.mubr.msk.bf16.gmra.mrb[12].mxu0 %vm668_vm3, %v5709_v36  ;;  %v2367_v36 = vshll.u32 %v6628_v19, 16  ;;  %v2356_v54 = vsel %vm6828_vm2, %v2351_v32, %v2355_v53  ;;  %v5429_v63 = vcombine.low %v2322_v48, %v2332_v47  ;;  %v2408_v19 = vrot.slane %v2406_v38, 4 }
 0x157   : > { %6027 = vmatmul.mubr.msk.bf16.gmra.mrb[28].mxu1 %vm668_vm3, %v6572_v18  ;;  %6184 = vmatprep.mubr.msk.bf16.mxu0 %vm668_vm3, %v5710_v43  ;;  %v6629_v43 = vld [vmem:[%s6809_s7 + $0xb8] sm:$0xf]  ;;  %v2384_v18 = vrot.slane %v2382_v1, 4  ;;  %v2417_v60 = vrot.slane %v2415_v21, 5  ;;  %v2421_v11 = vrot.slane %v2419_v31, 4  ;;  %s5740_s7 = sshll.u32 %s6704_s12, 12 }
 0x158   : > { %6048 = vmatprep.mubr.msk.bf16.mxu1 %vm668_vm3, %v5426_v0  ;;  %v2391_v10 = vshll.u32 %v6629_v43, 16  ;;  %v2395_v56 = vshrl.u32 %v6629_v43, 16  ;;  %v2369_v13 = vrot.slane %v2367_v36, 5  ;;  %v2387_v0 = vrot.slane %v2385_v46, 5  ;;  %s8870_s16 = scalar_lea.hbm %s8952_s2, %s5740_s7 }
 0x159   : > { %v2411_v36 = vrot.slane %v2409_v17, 5 }
 0x15a   : > { %v2393_v57 = vrot.slane %v2391_v10, 5  ;;  %v2397_v26 = vrot.slane %v2395_v56, 4  ;;  %v2370_v1 = vsel %vm6828_vm2, %v2365_v15, %v2369_v13  ;;  %v2422_v10 = vor.u32 %v2421_v11, %v2417_v60 }
 0x15b   : > { %v2412_v43 = vor.u32 %v2411_v36, %v2408_v19 }
 0x15c   : > { %v2398_v44 = vor.u32 %v2397_v26, %v2393_v57  ;;  %v2423_v2 = vrot.slane %v2422_v10, 4 }
 0x15d   : > { %v2413_v56 = vrot.slane %v2412_v43, 4 }
 0x15e   : > { %6185 = vmatmul.mubr.msk.bf16.gmra.mrb[16].mxu0 %vm668_vm3, %v5711_v61  ;;  %v2374_v61 = vor.u32 %v2373_v45, %v2369_v13  ;;  %v2399_v37 = vrot.slane %v2398_v44, 4  ;;  %v2428_v24 = vsel %vm6828_vm2, %v2423_v2, %v2427_v6 }
 0x15f   : > { %6049 = vmatmul.mubr.msk.bf16.vlgmr.msra.gmra.mrb[16].mxu1 %vm668_vm3, %v8186_v8  ;;  %6188 = vmatprep.mubr.msk.bf16.mxu0 %vm668_vm3, %v5712_v12  ;;  %v2388_v8 = vor.u32 %v2387_v0, %v2384_v18  ;;  %v5430_v12 = vcombine.low %v2346_v42, %v2356_v54  ;;  %v2418_v53 = vsel %vm6828_vm2, %v2413_v56, %v2417_v60 }
 0x160   : > { %6052 = vmatprep.mubr.msk.bf16.mxu1 %vm668_vm3, %v5428_v50  ;;  %v2375_v20 = vrot.slane %v2374_v61, 4  ;;  %v2404_v16 = vsel %vm6828_vm2, %v2399_v37, %v2403_v62  ;;  %v5433_v32 = vcombine.low %v2418_v53, %v2428_v24 }
 0x161   : > { %v2389_v14 = vrot.slane %v2388_v8, 4 }
 0x162   : > { %v2380_v46 = vsel %vm6828_vm2, %v2375_v20, %v2379_v25 }
 0x163   : > { %v5431_v34 = vcombine.low %v2370_v1, %v2380_v46 }
 0x166   : > { %6189 = vmatmul.mubr.msk.bf16.gmra.mrb[20].mxu0 %vm668_vm3, %v5713_v27  ;;  %v2394_v27 = vsel %vm6828_vm2, %v2389_v14, %v2393_v57 }
 0x167   : > { %6053 = vmatmul.mubr.msk.bf16.gmra.mrb[20].mxu1 %vm668_vm3, %v5429_v63  ;;  %6192 = vmatprep.mubr.msk.bf16.mxu0 %vm668_vm3, %v5714_v49  ;;  %v5432_v49 = vcombine.low %v2394_v27, %v2404_v16 }
 0x168   : > { %6056 = vmatprep.mubr.msk.bf16.mxu1 %vm668_vm3, %v5430_v12 }
 0x16e   : > { %6193 = vmatmul.mubr.msk.bf16.gmra.mrb[24].mxu0 %vm668_vm3, %v5715_v30 }
 0x16f   : > { %6057 = vmatmul.mubr.msk.bf16.gmra.mrb[24].mxu1 %vm668_vm3, %v5431_v34  ;;  %6196 = vmatprep.mubr.msk.bf16.mxu0 %vm668_vm3, %v5716_v35 }
 0x170   : > { %6060 = vmatprep.mubr.msk.bf16.mxu1 %vm668_vm3, %v5432_v49 }
 0x176   : > { %6197 = vmatmul.mubr.msk.bf16.gmra.mrb[28].mxu0 %vm668_vm3, %v5717_v22 }
 0x177   : > { %6061 = vmatmul.mubr.msk.bf16.gmra.mrb[28].mxu1 %vm668_vm3, %v5433_v32 }
 0x1f2   : > { %v6000_v55 = vpop.f32.mrb[0].mxu1 }
 0x1f3   : > { %v1838_v29 = vpop.f32.mrb[1].mxu1 }
 0x1f4   : > { %v6001_v30 = vpop.f32.mrb[2].mxu1 }
 0x1f5   : > { %v1841_v3 = vpop.f32.mrb[3].mxu1 }
 0x1fa   : > { %v6004_v39 = vpop.f32.mrb[4].mxu1 }
 0x1fb   : > { %v1854_v35 = vpop.f32.mrb[5].mxu1 }
 0x1fc   : > { %v6005_v23 = vpop.f32.mrb[6].mxu1 }
 0x1fd   : > { %v1857_v13 = vpop.f32.mrb[7].mxu1 }
 0x202   : > { %v6008_v45 = vpop.f32.mrb[8].mxu1 }
 0x203   : > { %v1870_v50 = vpop.f32.mrb[9].mxu1 }
 0x204   : > { %v6009_v28 = vpop.f32.mrb[10].mxu1 }
 0x205   : > { %v1873_v18 = vpop.f32.mrb[11].mxu1 }
 0x20a   : > { %v6012_v0 = vpop.f32.mrb[12].mxu1 }
 0x20b   : > { %v1886_v57 = vpop.f32.mrb[13].mxu1 }
 0x20c   : > { %v6013_v26 = vpop.f32.mrb[14].mxu1 }
 0x20d   : > { %v1889_v7 = vpop.f32.mrb[15].mxu1 }
 0x211   : > { %v6170_v52 = vpop.f32.mrb[0].mxu0 }
 0x212   : > { %v8468_v22 = vadd.f32 %v6170_v52, %v6000_v55  ;;  %v4609_v4 = vpop.f32.mrb[1].mxu0 }
 0x213   : > { %v8470_v48 = vadd.f32 %v4609_v4, %v1838_v29  ;;  %v6171_v47 = vpop.f32.mrb[2].mxu0 }
 0x214   : > { %v8472_v42 = vadd.f32 %v6171_v47, %v6001_v30  ;;  %v4612_v54 = vpop.f32.mrb[3].mxu0  ;;  %v4772_v38 = vsel %vm4768_vm7, %v8468_v22, 0.0 }
 0x215   : > { %v8474_v58 = vadd.f32 %v4612_v54, %v1841_v3  ;;  %v4769_v61 = vsel %vm4768_vm7, %v8470_v48, 0.0 }
 0x216   : > { %v4774_v8 = vsel %vm4768_vm7, %v8472_v42, 0.0 }
 0x217   : > { %v4770_v41 = vsel %vm4768_vm7, %v8474_v58, 0.0 }
 0x218   : > { %v4771_v59 = vadd.f32 %v4770_v41, %v4769_v61 }
 0x219   : > { %v6174_v17 = vpop.f32.mrb[4].mxu0 }
 0x21a   : > { %v4773_v9 = vadd.f32 %v4772_v38, %v4771_v59  ;;  %v8482_v21 = vadd.f32 %v6174_v17, %v6004_v39  ;;  %v4625_v31 = vpop.f32.mrb[5].mxu0 }
 0x21b   : > { %v8486_v44 = vadd.f32 %v4625_v31, %v1854_v35  ;;  %v6175_v33 = vpop.f32.mrb[6].mxu0 }
 0x21c   : > { %v4775_v40 = vadd.f32 %v4774_v8, %v4773_v9  ;;  %v8488_v63 = vadd.f32 %v6175_v33, %v6005_v23  ;;  %v4628_v12 = vpop.f32.mrb[7].mxu0  ;;  %v4780_v60 = vsel %vm4768_vm7, %v8482_v21, 0.0 }
 0x21d   : > { %v4776_v15 = vsel %vm4768_vm7, %v8486_v44, 0.0  ;;  %v8492_v20 = vadd.f32 %v4628_v12, %v1857_v13 }
 0x21e   : > { %v4777_v25 = vadd.f32 %v4776_v15, %v4775_v40  ;;  %v4782_v1 = vsel %vm4768_vm7, %v8488_v63, 0.0 }
 0x21f   : > { %v4778_v19 = vsel %vm4768_vm7, %v8492_v20, 0.0 }
 0x220   : > { %v4779_v36 = vadd.f32 %v4778_v19, %v4777_v25 }
 0x221   : > { %v6178_v11 = vpop.f32.mrb[8].mxu0 }
 0x222   : > { %v4781_v14 = vadd.f32 %v4780_v60, %v4779_v36  ;;  %v8498_v37 = vadd.f32 %v6178_v11, %v6008_v45  ;;  %v4641_v62 = vpop.f32.mrb[9].mxu0 }
 0x223   : > { %v8502_v46 = vadd.f32 %v4641_v62, %v1870_v50  ;;  %v6179_v43 = vpop.f32.mrb[10].mxu0 }
 0x224   : > { %v4783_v10 = vadd.f32 %v4782_v1, %v4781_v14  ;;  %v8504_v51 = vadd.f32 %v6179_v43, %v6009_v28  ;;  %v4644_v5 = vpop.f32.mrb[11].mxu0  ;;  %v4788_v2 = vsel %vm4768_vm7, %v8498_v37, 0.0 }
 0x225   : > { %v4784_v27 = vsel %vm4768_vm7, %v8502_v46, 0.0  ;;  %v8508_v16 = vadd.f32 %v4644_v5, %v1873_v18 }
 0x226   : > { %v4785_v34 = vadd.f32 %v4784_v27, %v4783_v10  ;;  %v4790_v55 = vsel %vm4768_vm7, %v8504_v51, 0.0 }
 0x227   : > { %v4786_v49 = vsel %vm4768_vm7, %v8508_v16, 0.0 }
 0x228   : > { %v4787_v56 = vadd.f32 %v4786_v49, %v4785_v34 }
 0x229   : > { %v6182_v6 = vpop.f32.mrb[12].mxu0 }
 0x22a   : > { %v4789_v53 = vadd.f32 %v4788_v2, %v4787_v56  ;;  %v8514_v24 = vadd.f32 %v6182_v6, %v6012_v0  ;;  %v4657_v32 = vpop.f32.mrb[13].mxu0 }
 0x22b   : > { %v8518_v29 = vadd.f32 %v4657_v32, %v1886_v57  ;;  %v6183_v30 = vpop.f32.mrb[14].mxu0 }
 0x22c   : > { %v4791_v3 = vadd.f32 %v4790_v55, %v4789_v53  ;;  %v8520_v39 = vadd.f32 %v6183_v30, %v6013_v26  ;;  %v4660_v35 = vpop.f32.mrb[15].mxu0  ;;  %v4796_v18 = vsel %vm4768_vm7, %v8514_v24, 0.0 }
 0x22d   : > { %v4792_v23 = vsel %vm4768_vm7, %v8518_v29, 0.0  ;;  %v8524_v13 = vadd.f32 %v4660_v35, %v1889_v7 }
 0x22e   : > { %v4793_v45 = vadd.f32 %v4792_v23, %v4791_v3  ;;  %v4798_v26 = vsel %vm4768_vm7, %v8520_v39, 0.0 }
 0x22f   : > { %v4794_v50 = vsel %vm4768_vm7, %v8524_v13, 0.0 }
 0x230   : > { %v4795_v28 = vadd.f32 %v4794_v50, %v4793_v45 }
 0x231   : > { %v6186_v0 = vpop.f32.mrb[16].mxu0 }
 0x232   : > { %v4797_v57 = vadd.f32 %v4796_v18, %v4795_v28  ;;  %v6050_v52 = vpop.f32.mrb[16].mxu1  ;;  %v4673_v4 = vpop.f32.mrb[17].mxu0 }
 0x233   : > { %v8532_v47 = vadd.f32 %v6186_v0, %v6050_v52  ;;  %v2632_v54 = vpop.f32.mrb[17].mxu1  ;;  %v6187_v7 = vpop.f32.mrb[18].mxu0 }
 0x234   : > { %v8534_v61 = vadd.f32 %v4673_v4, %v2632_v54  ;;  %v4799_v41 = vadd.f32 %v4798_v26, %v4797_v57  ;;  %v6051_v59 = vpop.f32.mrb[18].mxu1  ;;  %v4676_v38 = vpop.f32.mrb[19].mxu0 }
 0x235   : > { %v8536_v17 = vadd.f32 %v6187_v7, %v6051_v59  ;;  %v2635_v9 = vpop.f32.mrb[19].mxu1  ;;  %v4804_v25 = vsel %vm4768_vm7, %v8532_v47, 0.0 }
 0x236   : > { %v4800_v31 = vsel %vm4768_vm7, %v8534_v61, 0.0  ;;  %v8540_v8 = vadd.f32 %v4676_v38, %v2635_v9 }
 0x237   : > { %v4801_v33 = vadd.f32 %v4800_v31, %v4799_v41  ;;  %v4806_v1 = vsel %vm4768_vm7, %v8536_v17, 0.0 }
 0x238   : > { %v4802_v40 = vsel %vm4768_vm7, %v8540_v8, 0.0 }
 0x239   : > { %v4803_v12 = vadd.f32 %v4802_v40, %v4801_v33  ;;  %v6190_v15 = vpop.f32.mrb[20].mxu0 }
 0x23a   : > { %v6054_v19 = vpop.f32.mrb[20].mxu1  ;;  %v4689_v36 = vpop.f32.mrb[21].mxu0 }
 0x23b   : > { %v4805_v60 = vadd.f32 %v4804_v25, %v4803_v12  ;;  %v8546_v11 = vadd.f32 %v6190_v15, %v6054_v19  ;;  %v2648_v14 = vpop.f32.mrb[21].mxu1  ;;  %v6191_v62 = vpop.f32.mrb[22].mxu0 }
 0x23c   : > { %v8550_v43 = vadd.f32 %v4689_v36, %v2648_v14  ;;  %v6055_v10 = vpop.f32.mrb[22].mxu1  ;;  %v4692_v5 = vpop.f32.mrb[23].mxu0 }
 0x23d   : > { %v4807_v27 = vadd.f32 %v4806_v1, %v4805_v60  ;;  %v8552_v34 = vadd.f32 %v6191_v62, %v6055_v10  ;;  %v2651_v49 = vpop.f32.mrb[23].mxu1  ;;  %v4812_v30 = vsel %vm4768_vm7, %v8546_v11, 0.0 }
 0x23e   : > { %v4808_v56 = vsel %vm4768_vm7, %v8550_v43, 0.0  ;;  %v8556_v2 = vadd.f32 %v4692_v5, %v2651_v49 }
 0x23f   : > { %v4809_v6 = vadd.f32 %v4808_v56, %v4807_v27  ;;  %v4814_v18 = vsel %vm4768_vm7, %v8552_v34, 0.0 }
 0x240   : > { %v4810_v53 = vsel %vm4768_vm7, %v8556_v2, 0.0 }
 0x241   : > { %v4811_v32 = vadd.f32 %v4810_v53, %v4809_v6  ;;  %v6194_v55 = vpop.f32.mrb[24].mxu0 }
 0x242   : > { %v6058_v3 = vpop.f32.mrb[24].mxu1  ;;  %v4705_v35 = vpop.f32.mrb[25].mxu0 }
 0x243   : > { %v4813_v23 = vadd.f32 %v4812_v30, %v4811_v32  ;;  %v6226_v45 = vadd.f32 %v6194_v55, %v6058_v3  ;;  %v2664_v50 = vpop.f32.mrb[25].mxu1  ;;  %v6195_v28 = vpop.f32.mrb[26].mxu0 }
 0x244   : > { %v6227_v0 = vadd.f32 %v4705_v35, %v2664_v50  ;;  %v6059_v57 = vpop.f32.mrb[26].mxu1  ;;  %v4708_v52 = vpop.f32.mrb[27].mxu0 }
 0x245   : > { %v4815_v4 = vadd.f32 %v4814_v18, %v4813_v23  ;;  %v6228_v26 = vadd.f32 %v6195_v28, %v6059_v57  ;;  %v2667_v54 = vpop.f32.mrb[27].mxu1  ;;  %v4820_v33 = vsel %vm4768_vm7, %v6226_v45, 0.0 }
 0x246   : > { %v4816_v7 = vsel %vm4768_vm7, %v6227_v0, 0.0  ;;  %v6229_v41 = vadd.f32 %v4708_v52, %v2667_v54 }
 0x247   : > { %v4817_v59 = vadd.f32 %v4816_v7, %v4815_v4  ;;  %v4822_v60 = vsel %vm4768_vm7, %v6228_v26, 0.0 }
 0x248   : > { %v4818_v38 = vsel %vm4768_vm7, %v6229_v41, 0.0 }
 0x249   : > { %v4819_v9 = vadd.f32 %v4818_v38, %v4817_v59  ;;  %v6198_v31 = vpop.f32.mrb[28].mxu0 }
 0x24a   : > { %v6062_v40 = vpop.f32.mrb[28].mxu1  ;;  %v4721_v12 = vpop.f32.mrb[29].mxu0 }
 0x24b   : > { %v4821_v15 = vadd.f32 %v4820_v33, %v4819_v9  ;;  %v6230_v25 = vadd.f32 %v6198_v31, %v6062_v40  ;;  %v2680_v19 = vpop.f32.mrb[29].mxu1  ;;  %v6199_v36 = vpop.f32.mrb[30].mxu0 }
 0x24c   : > { %v6231_v14 = vadd.f32 %v4721_v12, %v2680_v19  ;;  %v6063_v62 = vpop.f32.mrb[30].mxu1  ;;  %v4724_v1 = vpop.f32.mrb[31].mxu0 }
 0x24d   : > { %v4823_v10 = vadd.f32 %v4822_v60, %v4821_v15  ;;  %v6232_v5 = vadd.f32 %v6199_v36, %v6063_v62  ;;  %v2683_v27 = vpop.f32.mrb[31].mxu1  ;;  %v4828_v55 = vsel %vm4768_vm7, %v6230_v25, 0.0 }
 0x24e   : > { %v4824_v49 = vsel %vm4768_vm7, %v6231_v14, 0.0  ;;  %v6233_v56 = vadd.f32 %v4724_v1, %v2683_v27 }
 0x24f   : > { %v4825_v6 = vadd.f32 %v4824_v49, %v4823_v10  ;;  %v4830_v3 = vsel %vm4768_vm7, %v6232_v5, 0.0 }
 0x250   : > { %v4826_v53 = vsel %vm4768_vm7, %v6233_v56, 0.0 }
 0x251   : > { %v4827_v32 = vadd.f32 %v4826_v53, %v4825_v6 }
 0x253   : > { %v4829_v30 = vadd.f32 %v4828_v55, %v4827_v32 }
 0x255   : > { %v4831_v35 = vadd.f32 %v4830_v3, %v4829_v30 }
 0x257   : > { %v4832_v23 = vrot.slane %v4831_v35, 4 }
 0x259   : > { %v4833_v50 = vadd.f32 %v4832_v23, %v4831_v35 }
 0x25b   : > { %v4834_v28 = vrot.slane %v4833_v50, 2 }
 0x25d   : > { %v4835_v18 = vadd.f32 %v4834_v28, %v4833_v50 }
 0x25f   : > { %v4836_v57 = vrot.slane %v4835_v18, 1 }
 0x261   : > { %v4837_v52 = vadd.f32 %v4836_v57, %v4835_v18 }
 0x263   : > { %v4839_v4 = vmul.f32 0.00390625, %v4837_v52 }
 0x265   : > { %v8573_v54 = vsub.f32 %v8508_v16, %v4839_v4  ;;  %v8576_v7 = vsub.f32 %v8518_v29, %v4839_v4  ;;  %v8579_v59 = vsub.f32 %v8524_v13, %v4839_v4  ;;  %v8582_v38 = vsub.f32 %v8514_v24, %v4839_v4 }
 0x266   : > { %v8585_v9 = vsub.f32 %v8520_v39, %v4839_v4  ;;  %v8588_v31 = vsub.f32 %v8534_v61, %v4839_v4  ;;  %v8591_v33 = vsub.f32 %v8540_v8, %v4839_v4  ;;  %v8594_v16 = vsub.f32 %v8532_v47, %v4839_v4 }
 0x267   : > { %v8597_v29 = vsub.f32 %v8536_v17, %v4839_v4  ;;  %v8600_v13 = vsub.f32 %v8550_v43, %v4839_v4  ;;  %v8603_v24 = vsub.f32 %v8556_v2, %v4839_v4  ;;  %v8606_v39 = vsub.f32 %v8546_v11, %v4839_v4 }
 0x268   : > { %v8609_v61 = vsub.f32 %v8552_v34, %v4839_v4  ;;  %v8611_v8 = vsub.f32 %v6227_v0, %v4839_v4  ;;  %v8613_v40 = vsub.f32 %v6229_v41, %v4839_v4  ;;  %v8615_v47 = vsub.f32 %v6226_v45, %v4839_v4 }
 0x269   : > { %v8617_v17 = vsub.f32 %v6228_v26, %v4839_v4  ;;  %v8619_v12 = vsub.f32 %v6231_v14, %v4839_v4  ;;  %v8621_v43 = vsub.f32 %v6233_v56, %v4839_v4  ;;  %v8623_v2 = vsub.f32 %v6230_v25, %v4839_v4 }
 0x26a   : > { %v8625_v15 = vsub.f32 %v6232_v5, %v4839_v4  ;;  %v8628_v11 = vsub.f32 %v8470_v48, %v4839_v4  ;;  %v8631_v34 = vsub.f32 %v8474_v58, %v4839_v4  ;;  %v8634_v0 = vsub.f32 %v8468_v22, %v4839_v4 }
 0x26b   : > { %v8637_v45 = vsub.f32 %v8472_v42, %v4839_v4  ;;  %v8644_v25 = vsub.f32 %v8486_v44, %v4839_v4  ;;  %v8649_v58 = vsub.f32 %v8492_v20, %v4839_v4  ;;  %v8656_v60 = vsub.f32 %v8482_v21, %v4839_v4 }
 0x26c   : > { %v4872_v26 = vmul.f32 %v8628_v11, %v8628_v11  ;;  %v4873_v41 = vmul.f32 %v8631_v34, %v8631_v34  ;;  %v4874_v48 = vmul.f32 %v8634_v0, %v8634_v0  ;;  %v8662_v20 = vsub.f32 %v8488_v63, %v4839_v4 }
 0x26d   : > { %v4875_v22 = vmul.f32 %v8637_v45, %v8637_v45  ;;  %v4876_v44 = vmul.f32 %v8644_v25, %v8644_v25  ;;  %v4877_v1 = vmul.f32 %v8649_v58, %v8649_v58  ;;  %v8668_v27 = vsub.f32 %v8502_v46, %v4839_v4 }
 0x26e   : > { %v4904_v42 = vsel %vm4768_vm7, %v4872_v26, 0.0  ;;  %v4905_v19 = vsel %vm4768_vm7, %v4873_v41, 0.0  ;;  %v4907_v14 = vsel %vm4768_vm7, %v4874_v48, 0.0  ;;  %v4878_v21 = vmul.f32 %v8656_v60, %v8656_v60 }
 0x26f   : > { %v4906_v36 = vadd.f32 %v4905_v19, %v4904_v42  ;;  %v4909_v10 = vsel %vm4768_vm7, %v4875_v22, 0.0  ;;  %v4911_v49 = vsel %vm4768_vm7, %v4876_v44, 0.0  ;;  %v4879_v6 = vmul.f32 %v8662_v20, %v8662_v20 }
 0x270   : > { %v4913_v63 = vsel %vm4768_vm7, %v4877_v1, 0.0  ;;  %v8677_v32 = vsub.f32 %v8498_v37, %v4839_v4  ;;  %v4880_v55 = vmul.f32 %v8668_v27, %v8668_v27  ;;  %v4915_v46 = vsel %vm4768_vm7, %v4878_v21, 0.0 }
 0x271   : > { %v4908_v62 = vadd.f32 %v4907_v14, %v4906_v36  ;;  %v8683_v3 = vsub.f32 %v8504_v51, %v4839_v4  ;;  %v4881_v35 = vmul.f32 %v8573_v54, %v8573_v54  ;;  %v4917_v23 = vsel %vm4768_vm7, %v4879_v6, 0.0 }
 0x272   : > { %v4882_v28 = vmul.f32 %v8677_v32, %v8677_v32  ;;  %v4919_v37 = vsel %vm4768_vm7, %v4880_v55, 0.0  ;;  %v4884_v51 = vmul.f32 %v8576_v7, %v8576_v7  ;;  %v4885_v48 = vmul.f32 %v8579_v59, %v8579_v59 }
 0x273   : > { %v4910_v5 = vadd.f32 %v4909_v10, %v4908_v62  ;;  %v4883_v57 = vmul.f32 %v8683_v3, %v8683_v3  ;;  %v4921_v52 = vsel %vm4768_vm7, %v4881_v35, 0.0  ;;  %v4886_v19 = vmul.f32 %v8582_v38, %v8582_v38 }
 0x274   : > { %v4923_v4 = vsel %vm4768_vm7, %v4882_v28, 0.0  ;;  %v4927_v36 = vsel %vm4768_vm7, %v4884_v51, 0.0  ;;  %v4887_v14 = vmul.f32 %v8585_v9, %v8585_v9  ;;  %v4929_v62 = vsel %vm4768_vm7, %v4885_v48, 0.0 }
 0x275   : > { %v4912_v56 = vadd.f32 %v4911_v49, %v4910_v5  ;;  %v4925_v22 = vsel %vm4768_vm7, %v4883_v57, 0.0  ;;  %v4888_v10 = vmul.f32 %v8588_v31, %v8588_v31  ;;  %v4931_v5 = vsel %vm4768_vm7, %v4886_v19, 0.0 }
 0x276   : > { %v4889_v49 = vmul.f32 %v8591_v33, %v8591_v33 }
 0x277   : > { %v4914_v53 = vadd.f32 %v4913_v63, %v4912_v56  ;;  %v4933_v56 = vsel %vm4768_vm7, %v4887_v14, 0.0  ;;  %v4890_v63 = vmul.f32 %v8594_v16, %v8594_v16 }
 0x279   : > { %v4916_v30 = vadd.f32 %v4915_v46, %v4914_v53  ;;  %v4935_v53 = vsel %vm4768_vm7, %v4888_v10, 0.0  ;;  %v4891_v46 = vmul.f32 %v8597_v29, %v8597_v29 }
 0x27b   : > { %v4918_v50 = vadd.f32 %v4917_v23, %v4916_v30  ;;  %v4937_v30 = vsel %vm4768_vm7, %v4889_v49, 0.0  ;;  %v4892_v23 = vmul.f32 %v8600_v13, %v8600_v13 }
 0x27d   : > { %v4920_v18 = vadd.f32 %v4919_v37, %v4918_v50  ;;  %v4939_v50 = vsel %vm4768_vm7, %v4890_v63, 0.0  ;;  %v4893_v37 = vmul.f32 %v8603_v24, %v8603_v24 }
 0x27f   : > { %v4922_v26 = vadd.f32 %v4921_v52, %v4920_v18  ;;  %v4941_v18 = vsel %vm4768_vm7, %v4891_v46, 0.0  ;;  %v4894_v52 = vmul.f32 %v8606_v39, %v8606_v39 }
 0x281   : > { %v4924_v41 = vadd.f32 %v4923_v4, %v4922_v26  ;;  %v4943_v26 = vsel %vm4768_vm7, %v4892_v23, 0.0  ;;  %v4895_v4 = vmul.f32 %v8609_v61, %v8609_v61 }
 0x283   : > { %v4926_v42 = vadd.f32 %v4925_v22, %v4924_v41  ;;  %v4945_v41 = vsel %vm4768_vm7, %v4893_v37, 0.0  ;;  %v4896_v22 = vmul.f32 %v8611_v8, %v8611_v8 }
 0x285   : > { %v4928_v44 = vadd.f32 %v4927_v36, %v4926_v42  ;;  %v4947_v42 = vsel %vm4768_vm7, %v4894_v52, 0.0  ;;  %v4897_v36 = vmul.f32 %v8613_v40, %v8613_v40 }
 0x287   : > { %v4930_v1 = vadd.f32 %v4929_v62, %v4928_v44  ;;  %v4949_v44 = vsel %vm4768_vm7, %v4895_v4, 0.0  ;;  %v4898_v62 = vmul.f32 %v8615_v47, %v8615_v47 }
 0x289   : > { %v4932_v21 = vadd.f32 %v4931_v5, %v4930_v1  ;;  %v4951_v1 = vsel %vm4768_vm7, %v4896_v22, 0.0  ;;  %v4899_v5 = vmul.f32 %v8617_v17, %v8617_v17 }
 0x28b   : > { %v4934_v6 = vadd.f32 %v4933_v56, %v4932_v21  ;;  %v4953_v21 = vsel %vm4768_vm7, %v4897_v36, 0.0  ;;  %v4900_v56 = vmul.f32 %v8619_v12, %v8619_v12 }
 0x28d   : > { %v4936_v55 = vadd.f32 %v4935_v53, %v4934_v6  ;;  %v4955_v6 = vsel %vm4768_vm7, %v4898_v62, 0.0  ;;  %v4901_v53 = vmul.f32 %v8621_v43, %v8621_v43 }
 0x28f   : > { %v4938_v35 = vadd.f32 %v4937_v30, %v4936_v55  ;;  %v4957_v55 = vsel %vm4768_vm7, %v4899_v5, 0.0  ;;  %v4902_v30 = vmul.f32 %v8623_v2, %v8623_v2 }
 0x291   : > { %v4940_v28 = vadd.f32 %v4939_v50, %v4938_v35  ;;  %v4959_v35 = vsel %vm4768_vm7, %v4900_v56, 0.0  ;;  %v4903_v50 = vmul.f32 %v8625_v15, %v8625_v15 }
 0x293   : > { %v4942_v57 = vadd.f32 %v4941_v18, %v4940_v28  ;;  %v4961_v28 = vsel %vm4768_vm7, %v4901_v53, 0.0  ;;  %v4963_v18 = vsel %vm4768_vm7, %v4902_v30, 0.0  ;;  %v4965_v52 = vsel %vm4768_vm7, %v4903_v50, 0.0 }
 0x295   : > { %v4944_v51 = vadd.f32 %v4943_v26, %v4942_v57 }
 0x297   : > { %v4946_v48 = vadd.f32 %v4945_v41, %v4944_v51 }
 0x299   : > { %v4948_v19 = vadd.f32 %v4947_v42, %v4946_v48 }
 0x29b   : > { %v4950_v14 = vadd.f32 %v4949_v44, %v4948_v19 }
 0x29d   : > { %v4952_v10 = vadd.f32 %v4951_v1, %v4950_v14 }
 0x29f   : > { %v4954_v49 = vadd.f32 %v4953_v21, %v4952_v10 }
 0x2a1   : > { %v4956_v63 = vadd.f32 %v4955_v6, %v4954_v49 }
 0x2a3   : > { %v4958_v46 = vadd.f32 %v4957_v55, %v4956_v63 }
 0x2a5   : > { %v4960_v23 = vadd.f32 %v4959_v35, %v4958_v46 }
 0x2a7   : > { %v4962_v37 = vadd.f32 %v4961_v28, %v4960_v23 }
 0x2a9   : > { %v4964_v57 = vadd.f32 %v4963_v18, %v4962_v37 }
 0x2ab   : > { %v4966_v26 = vadd.f32 %v4965_v52, %v4964_v57 }
 0x2ad   : > { %v4967_v51 = vrot.slane %v4966_v26, 4 }
 0x2af   : > { %v4968_v4 = vadd.f32 %v4967_v51, %v4966_v26 }
 0x2b1   : > { %v4969_v41 = vrot.slane %v4968_v4, 2 }
 0x2b3   : > { %v4970_v48 = vadd.f32 %v4969_v41, %v4968_v4 }
 0x2b5   : > { %v4971_v22 = vrot.slane %v4970_v48, 1 }
 0x2b7   : > { %v4972_v42 = vadd.f32 %v4971_v22, %v4970_v48 }
 0x2b9   : > { %v4973_v19 = vmul.f32 0.00390625, %v4972_v42 }
 0x2bb   : > { %v4974_v36 = vadd.f32 1e-05, %v4973_v19 }
 0x2bd   : > { %6573 = vrsqrt.f32 %v4974_v36 }
 0x2c7   : > { %v6574_v44 = vpop.eup %6573 }
 0x2c8   : > { %v5005_v14 = vmul.f32 %v6574_v44, %v8621_v43  ;;  %v4976_v62 = vmul.f32 %v6574_v44, %v8628_v11  ;;  %v4977_v1 = vmul.f32 %v6574_v44, %v8631_v34  ;;  %v4978_v10 = vmul.f32 %v6574_v44, %v8634_v0 }
 0x2c9   : > { %v4979_v5 = vmul.f32 %v6574_v44, %v8637_v45  ;;  %v4980_v21 = vmul.f32 %v6574_v44, %v8644_v25  ;;  %v4981_v49 = vmul.f32 %v6574_v44, %v8649_v58  ;;  %v4982_v56 = vmul.f32 %v6574_v44, %v8656_v60 }
 0x2ca   : > { %v5037_v6 = vmax.f32 %v5005_v14, 0.0  ;;  %v4983_v63 = vmul.f32 %v6574_v44, %v8662_v20  ;;  %v4984_v53 = vmul.f32 %v6574_v44, %v8668_v27  ;;  %v4985_v43 = vmul.f32 %v6574_v44, %v8573_v54 }
 0x2cb   : > { %v4986_v11 = vmul.f32 %v6574_v44, %v8677_v32  ;;  %v4987_v34 = vmul.f32 %v6574_v44, %v8683_v3  ;;  %v4988_v0 = vmul.f32 %v6574_v44, %v8576_v7  ;;  %v4989_v45 = vmul.f32 %v6574_v44, %v8579_v59 }
 0x2cc   : > { %5069 = vst.msk [vmem:[%s8774_s6 + $0xe8] sm:$0xff] %vm4768_vm7, %v5037_v6  ;;  %v4990_v25 = vmul.f32 %v6574_v44, %v8582_v38  ;;  %v4991_v58 = vmul.f32 %v6574_v44, %v8585_v9  ;;  %v4992_v60 = vmul.f32 %v6574_v44, %v8588_v31  ;;  %v4993_v54 = vmul.f32 %v6574_v44, %v8591_v33 }
 0x2cd   : > { %v4994_v20 = vmul.f32 %v6574_v44, %v8594_v16  ;;  %v8784_v27 = vmul.f32 %v6574_v44, %v8597_v29  ;;  %v8787_v7 = vmul.f32 %v6574_v44, %v8600_v13  ;;  %v8790_v59 = vmul.f32 %v6574_v44, %v8603_v24 }
 0x2ce   : > { %v8793_v32 = vmul.f32 %v6574_v44, %v8606_v39  ;;  %v8796_v38 = vmul.f32 %v6574_v44, %v8609_v61  ;;  %v8799_v9 = vmul.f32 %v6574_v44, %v8611_v8  ;;  %v8802_v31 = vmul.f32 %v6574_v44, %v8613_v40 }
 0x2cf   : > { %v8805_v33 = vmul.f32 %v6574_v44, %v8615_v47  ;;  %v8808_v16 = vmul.f32 %v6574_v44, %v8617_v17  ;;  %v8811_v29 = vmul.f32 %v6574_v44, %v8619_v12  ;;  %v8814_v13 = vmul.f32 %v6574_v44, %v8623_v2 }
 0x2d0   : > { %v8817_v24 = vmul.f32 %v6574_v44, %v8625_v15  ;;  %v5008_v39 = vmax.f32 %v4976_v62, 0.0  ;;  %v5009_v61 = vmax.f32 %v4977_v1, 0.0  ;;  %v5010_v8 = vmax.f32 %v4978_v10, 0.0 }
 0x2d1   : > { %v5011_v40 = vmax.f32 %v4979_v5, 0.0  ;;  %v5012_v47 = vmax.f32 %v4980_v21, 0.0  ;;  %v5013_v17 = vmax.f32 %v4981_v49, 0.0  ;;  %v5014_v3 = vmax.f32 %v4982_v56, 0.0 }
 0x2d2   : > { %v5015_v12 = vmax.f32 %v4983_v63, 0.0  ;;  %v5016_v55 = vmax.f32 %v4984_v53, 0.0  ;;  %v5017_v2 = vmax.f32 %v4985_v43, 0.0  ;;  %v5018_v46 = vmax.f32 %v4986_v11, 0.0  ;;  %5040 = vst.msk [vmem:[%s8774_s6] sm:$0xff] %vm4768_vm7, %v5008_v39  ;;  %5041 = vst.msk [vmem:[%s8774_s6 + $0x8] sm:$0xff] %vm4768_vm7, %v5009_v61 }
 0x2d3   : > { %5042 = vst.msk [vmem:[%s8774_s6 + $0x10] sm:$0xff] %vm4768_vm7, %v5010_v8  ;;  %v5019_v15 = vmax.f32 %v4987_v34, 0.0  ;;  %v5020_v30 = vmax.f32 %v4988_v0, 0.0  ;;  %v5021_v35 = vmax.f32 %v4989_v45, 0.0  ;;  %v5022_v23 = vmax.f32 %v4990_v25, 0.0  ;;  %5043 = vst.msk [vmem:[%s8774_s6 + $0x18] sm:$0xff] %vm4768_vm7, %v5011_v40 }
 0x2d4   : > { %5044 = vst.msk [vmem:[%s8774_s6 + $0x20] sm:$0xff] %vm4768_vm7, %v5012_v47  ;;  %5045 = vst.msk [vmem:[%s8774_s6 + $0x28] sm:$0xff] %vm4768_vm7, %v5013_v17  ;;  %v5023_v50 = vmax.f32 %v4991_v58, 0.0  ;;  %v5024_v28 = vmax.f32 %v4992_v60, 0.0  ;;  %v5025_v37 = vmax.f32 %v4993_v54, 0.0  ;;  %v5026_v18 = vmax.f32 %v4994_v20, 0.0 }
 0x2d5   : > { %5046 = vst.msk [vmem:[%s8774_s6 + $0x30] sm:$0xff] %vm4768_vm7, %v5014_v3  ;;  %5047 = vst.msk [vmem:[%s8774_s6 + $0x38] sm:$0xff] %vm4768_vm7, %v5015_v12  ;;  %v5027_v57 = vmax.f32 %v8784_v27, 0.0  ;;  %v5028_v52 = vmax.f32 %v8787_v7, 0.0  ;;  %v5029_v26 = vmax.f32 %v8790_v59, 0.0  ;;  %v5030_v51 = vmax.f32 %v8793_v32, 0.0 }
 0x2d6   : > { %5048 = vst.msk [vmem:[%s8774_s6 + $0x40] sm:$0xff] %vm4768_vm7, %v5016_v55  ;;  %5049 = vst.msk [vmem:[%s8774_s6 + $0x48] sm:$0xff] %vm4768_vm7, %v5017_v2  ;;  %v5031_v4 = vmax.f32 %v8796_v38, 0.0  ;;  %v5032_v41 = vmax.f32 %v8799_v9, 0.0  ;;  %v5033_v48 = vmax.f32 %v8802_v31, 0.0  ;;  %v5034_v22 = vmax.f32 %v8805_v33, 0.0 }
 0x2d7   : > { %5050 = vst.msk [vmem:[%s8774_s6 + $0x50] sm:$0xff] %vm4768_vm7, %v5018_v46  ;;  %5051 = vst.msk [vmem:[%s8774_s6 + $0x58] sm:$0xff] %vm4768_vm7, %v5019_v15  ;;  %v5035_v42 = vmax.f32 %v8808_v16, 0.0  ;;  %v5036_v19 = vmax.f32 %v8811_v29, 0.0  ;;  %v5038_v36 = vmax.f32 %v8814_v13, 0.0  ;;  %v5039_v44 = vmax.f32 %v8817_v24, 0.0 }
 0x2d8   : > { %5052 = vst.msk [vmem:[%s8774_s6 + $0x60] sm:$0xff] %vm4768_vm7, %v5020_v30  ;;  %5053 = vst.msk [vmem:[%s8774_s6 + $0x68] sm:$0xff] %vm4768_vm7, %v5021_v35 }
 0x2d9   : > { %5054 = vst.msk [vmem:[%s8774_s6 + $0x70] sm:$0xff] %vm4768_vm7, %v5022_v23  ;;  %5055 = vst.msk [vmem:[%s8774_s6 + $0x78] sm:$0xff] %vm4768_vm7, %v5023_v50 }
 0x2da   : > { %5056 = vst.msk [vmem:[%s8774_s6 + $0x80] sm:$0xff] %vm4768_vm7, %v5024_v28  ;;  %5057 = vst.msk [vmem:[%s8774_s6 + $0x88] sm:$0xff] %vm4768_vm7, %v5025_v37 }
 0x2db   : > { %5058 = vst.msk [vmem:[%s8774_s6 + $0x90] sm:$0xff] %vm4768_vm7, %v5026_v18  ;;  %5059 = vst.msk [vmem:[%s8774_s6 + $0x98] sm:$0xff] %vm4768_vm7, %v5027_v57 }
 0x2dc   : > { %5060 = vst.msk [vmem:[%s8774_s6 + $0xa0] sm:$0xff] %vm4768_vm7, %v5028_v52  ;;  %5061 = vst.msk [vmem:[%s8774_s6 + $0xa8] sm:$0xff] %vm4768_vm7, %v5029_v26 }
 0x2dd   : > { %5062 = vst.msk [vmem:[%s8774_s6 + $0xb0] sm:$0xff] %vm4768_vm7, %v5030_v51  ;;  %5063 = vst.msk [vmem:[%s8774_s6 + $0xb8] sm:$0xff] %vm4768_vm7, %v5031_v4 }
 0x2de   : > { %5064 = vst.msk [vmem:[%s8774_s6 + $0xc0] sm:$0xff] %vm4768_vm7, %v5032_v41  ;;  %5065 = vst.msk [vmem:[%s8774_s6 + $0xc8] sm:$0xff] %vm4768_vm7, %v5033_v48 }
 0x2df   : > { %5066 = vst.msk [vmem:[%s8774_s6 + $0xd0] sm:$0xff] %vm4768_vm7, %v5034_v22  ;;  %5067 = vst.msk [vmem:[%s8774_s6 + $0xd8] sm:$0xff] %vm4768_vm7, %v5035_v42 }
 0x2e0   : > { %5068 = vst.msk [vmem:[%s8774_s6 + $0xe0] sm:$0xff] %vm4768_vm7, %v5036_v19  ;;  %5070 = vst.msk [vmem:[%s8774_s6 + $0xf0] sm:$0xff] %vm4768_vm7, %v5038_v36 }
 0x2e1   : > { %5071 = vst.msk [vmem:[%s8774_s6 + $0xf8] sm:$0xff] %vm4768_vm7, %v5039_v44 }
 0x2e2   : > { %6647 = shalt.err (!%p6644_p5)
}
 0x2e3   : > { %s6648_s26 = scalar_lea.hbm %s8870_s16, 4096  ;;  %s6652_s29 = scalar_lea.hbm %s8952_s2, 8192 }
 0x2e4   : > { %p6649_p6 = scmp.ne.s32.totalorder %s8870_s16, %s6648_s26  ;;  %p6653_p10 = scmp.lt.u32.totalorder %s8870_s16, %s8952_s2 }
 0x2e5   : > { %p6654_p11 = scmp.lt.u32.totalorder %s6652_s29, %s6648_s26  ;;  %p6656_p13 = scmp.lt.u32.totalorder %s6648_s26, %s8870_s16 }
 0x2e6   : > { %p6650_p7 = pnand %p6649_p6, %p6772_p4 }
 0x2e7   : > { %p6655_p12 = por %p6654_p11, %p6653_p10 }
 0x2e8   : > { %p6651_p9 = pneg %p6650_p7 }
 0x2e9   : > { %p6657_p0 = por %p6656_p13, %p6655_p12 }
 0x2eb   : > { %p6658_p1 = pnand %p6657_p0, %p6651_p9 }
 0x2ed   : > { %6661 = shalt.err (!%p6658_p1)
}
 0x2ee   : > { %s6715_s4 = smov 128   ;;  %s6716_s5 = smov 8  }
 0x2ef   : > { %6459 = dma.vmem_to_hbm [thread:$0]  (%p6772_p4), %s8872_s8, 4096, %s8870_s16, %s8904_s18, %s6715_s4, %s6715_s4, %s6716_s5  }
 0x2f0 PF: > { %p6465_p2 = scmp.ge.s32.totalorder %s6712_s14, 2  ;;  %s5102_s6 = sand.u32 1, %s6692_s9  }
 0x2f1   : > { %s5103_s7 = scalar_lea.sflag [#allocation3], %s5102_s6 }
 0x2f2   : > { %p6462_p3 = pnand %p6465_p2, %p6779_p8 }
 0x2f4   : > { %6687 = dma.done.wait (!%p6462_p3), %s5103_s7, 4096  }
 0x2f5   : > { %6689 = vsyncadd (!%p6462_p3), %s5103_s7, 4294963200  ;;  %s15_s14 = sadd.s32 1, %s6712_s14   ;;  %s9019_s9 = smov %s6696_s10 }
 0x2f6   : > { %p12_p5 = scmp.ge.s32.totalorder %s15_s14, 4   ;;  %s9020_s10 = smov %s6700_s11 }
 0x2f7   : > { %s9021_s11 = smov %s6785_s22  ;;  %s9022_s12 = smov %s6708_s13 }
 0x2f8   : > { %s9023_s13 = smov %s9025_s17  ;;  %14 = sbr.rel (!%p12_p5) target bundleno = 4 (0x4), region = 76 }
 0x2ff   :  { %5108 = vsyncpa [#allocation3], 1 }
 0x300   :  { %5110 = vsyncpa [#allocation3 + $0x1], 1 }

</bundles_post_ra>
